<compile_context>
chip_gen: v7x
topology: tpu7x:2x2x1
jax: 0.10.0
libtpu: 0.0.40
codegen_flags: <defaults>
</compile_context>

<pallas_src>
import functools
import math

import jax
import jax.numpy as jnp
from jax.experimental import pallas as pl
from jax.experimental.pallas import tpu as pltpu


def _feature_extraction_kernel(q_ref, k_ref, v_ref, wqt_ref, bq_ref, wot_ref,
                               bo_ref, o_ref, *scratch, length, d_model, scale):
    """One grid step = one batch block of TB elements.

    q_ref   : (TB, 1, D)  bf16  queries for this batch block
    k_ref   : (TB, S, D)  bf16  keys
    v_ref   : (TB, S, D)  bf16  values
    wqt_ref : (D, L*D)    bf16  stacked, pre-transposed per-slot query weights
    bq_ref  : (1, L*D)    f32   per-slot query biases (wide layout)
    wot_ref : (D, D)      bf16  pre-transposed output-projection weight
    bo_ref  : (1, D)      f32   output-projection bias
    o_ref   : (TB, L, D)        output block
    scratch : optionally one (TB, L, D) f32 VMEM buffer (conservative
              relayout fallback only; the preferred path uses no scratch).
    """
    tb = q_ref.shape[0]
    L, D = length, d_model

    # (1) All L query projections for the whole batch block in ONE lane-dense
    #     MXU matmul: (TB, D) @ (D, L*D), f32 accumulation; bias added in the
    #     wide layout.
    q = q_ref[:, 0, :]                                                 # (TB, D)
    qwide = jnp.dot(q, wqt_ref[...],
                    preferred_element_type=jnp.float32) + bq_ref[...]  # (TB, L*D)

    # (2) Single wide->rows relayout to (TB, L, D) (no per-row masked stores).
    if not scratch:
        qp = qwide.reshape(tb, L, D)
    else:
        # Conservative fallback only: aligned row copies through VMEM scratch.
        qp_scr, = scratch
        for i in range(L):
            qp_scr[:, i, :] = qwide[:, i * D:(i + 1) * D]
        qp = qp_scr[...]

    # (3) Scores, batched over the block: (TB,L,D) x (TB,S,D) -> (TB,L,S).
    s = jnp.einsum("bld,bsd->bls", qp.astype(k_ref.dtype), k_ref[...],
                   preferred_element_type=jnp.float32) * scale

    # (4) Numerically stable softmax in f32; the divide goes to the EUP slot.
    s = s - jnp.max(s, axis=-1, keepdims=True)
    p = jnp.exp(s)
    p = p * pl.reciprocal(jnp.sum(p, axis=-1, keepdims=True), approx=True)
    # TODO(synk): nn.Dropout(p) on the attention weights is skipped (eval mode).
    # TODO(synk): mask branch (masked_fill before softmax) not implemented.

    # (5) Attention-weighted values, batched: (TB,L,S) x (TB,S,D) -> (TB,L,D).
    att = jnp.einsum("bls,bsd->bld", p.astype(v_ref.dtype), v_ref[...],
                     preferred_element_type=jnp.float32)

    # (6) Output projection as a single (TB*L, D) @ (D, D) MXU matmul.
    out = jnp.dot(att.reshape(tb * L, D).astype(wot_ref.dtype), wot_ref[...],
                  preferred_element_type=jnp.float32)
    o_ref[...] = (out.reshape(tb, L, D) + bo_ref[...]).astype(o_ref.dtype)


def _pick_block_batch(b, target=256):
    """Largest divisor of b that is <= target while leaving >= 2 grid steps."""
    if b <= 1:
        return 1
    return max(d for d in range(1, b // 2 + 1) if b % d == 0 and d <= target)


def feature_extraction_forward(q, k, v, wq, bq, wo, bo, *, d_key=None, mask=None):
    """FeatureExtraction.forward.

    q : (B, d_model)
    k : (B, S, d_model)
    v : (B, S, d_model)
    wq: (length, d_model, d_model)  stacked q_linears weights (PyTorch (out,in))
    bq: (length, d_model)           stacked q_linears biases
    wo: (d_model, d_model)          out Linear weight (PyTorch (out,in))
    bo: (d_model,)                  out Linear bias
    returns (B, length, d_model)    (or (B, d_model) if length == 1)
    """
    assert mask is None, "mask path not implemented"

    B, D = q.shape
    L = wq.shape[0]
    S = k.shape[1]
    d_key = D if d_key is None else d_key
    scale = 1.0 / math.sqrt(d_key)

    cdt = jnp.bfloat16            # native MXU operand dtype on v5e/v6e/v7x

    # Linear(x) = x @ W.T + b  ->  pre-transpose once in the wrapper.  The L
    # query weights are stacked along lanes -> one lane-dense (D, L*D) operand.
    wqt = jnp.transpose(wq, (2, 0, 1)).reshape(D, L * D).astype(cdt)
    bqw = bq.reshape(1, L * D).astype(jnp.float32)
    wot = wo.T.astype(cdt)
    bo2 = bo.reshape(1, D).astype(jnp.float32)
    q3 = q.reshape(B, 1, D).astype(cdt)   # block's last-two dims == array dims
    kc = k.astype(cdt)
    vc = v.astype(cdt)

    TB = _pick_block_batch(B)
    grid = (B // TB,)

    flops = 4 * B * L * D * (D + S)
    transcendentals = B * L * (S + 1)                       # exp + reciprocal
    bytes_accessed = (2 * B * D + 2 * 2 * B * S * D + 4 * B * L * D
                      + 2 * L * D * D + 4 * L * D + 2 * D * D + 4 * D)

    # Explicit VMEM budget: resident single-buffered weights + double-buffered
    # per-step blocks + intermediate headroom; clamped to fit v7x's 64 MiB.
    resident = 2 * D * L * D + 4 * L * D + 2 * D * D + 4 * D
    per_step = 2 * TB * D + 2 * (2 * TB * S * D) + 4 * TB * L * D
    vmem_est = resident + 2 * per_step + 8 * TB * L * D
    vmem_limit = int(min(max(2 * vmem_est, 32 * 1024 * 1024), 48 * 1024 * 1024))

    def build_call(fused_relayout, single_buffer_weights):
        kernel = functools.partial(_feature_extraction_kernel,
                                   length=L, d_model=D, scale=scale)

        def wspec(shape):
            idx = lambda b: (0,) * len(shape)
            if single_buffer_weights:
                # Constant index map -> block is resident across all grid
                # steps; a single buffer halves its VMEM footprint.
                return pl.BlockSpec(shape, idx, pipeline_mode=pl.Buffered(1))
            return pl.BlockSpec(shape, idx)

        scratch = [] if fused_relayout else [pltpu.VMEM((TB, L, D), jnp.float32)]

        return pl.pallas_call(
            kernel,
            out_shape=jax.ShapeDtypeStruct((B, L, D), q.dtype),
            grid_spec=pltpu.PrefetchScalarGridSpec(
                num_scalar_prefetch=0,
                grid=grid,
                in_specs=[
                    pl.BlockSpec((TB, 1, D), lambda b: (b, 0, 0)),   # q
                    pl.BlockSpec((TB, S, D), lambda b: (b, 0, 0)),   # k
                    pl.BlockSpec((TB, S, D), lambda b: (b, 0, 0)),   # v
                    wspec((D, L * D)),                               # wqt (resident)
                    wspec((1, L * D)),                               # bq  (resident)
                    wspec((D, D)),                                   # wot (resident)
                    wspec((1, D)),                                   # bo  (resident)
                ],
                out_specs=pl.BlockSpec((TB, L, D), lambda b: (b, 0, 0)),
                scratch_shapes=scratch,
            ),
            compiler_params=pltpu.CompilerParams(
                dimension_semantics=("parallel",),   # batch-block axis -> megacore
                vmem_limit_bytes=vmem_limit,
            ),
            cost_estimate=pl.CostEstimate(flops=flops,
                                          transcendentals=transcendentals,
                                          bytes_accessed=bytes_accessed),
        )

    args = (q3, kc, vc, wqt, bqw, wot, bo2)
    # Preferred config first; degrade gracefully if an option is unsupported
    # by the installed jax/libtpu (a kernel that does not run is worth nothing).
    attempts = ((True, True), (True, False), (False, False))
    out, last_err = None, None
    for fused, single_buf in attempts:
        try:
            out = build_call(fused, single_buf)(*args)
            break
        except Exception as e:            # pragma: no cover
            last_err = e
    if out is None:
        raise last_err

    if L == 1:
        out = out[:, 0, :]
    return out


def _reference(q, k, v, wq, bq, wo, bo, d_key):
    qp = jnp.einsum("bd,led->ble", q, wq) + bq[None]            # (B, L, D)
    s = jnp.einsum("ble,bse->bls", qp, k) / math.sqrt(d_key)    # (B, L, S)
    p = jax.nn.softmax(s, axis=-1)
    att = jnp.einsum("bls,bsd->bld", p, v)                      # (B, L, D)
    return jnp.einsum("bld,ed->ble", att, wo) + bo[None, None]


if __name__ == "__main__":
    # Small shapes consistent with the module (length=8 default); d_model kept
    # lane-dense at 128.  B=8 exercises the batch-blocked path (TB=4, 2 steps).
    B, S = 8, 16
    d_model = 128
    length = 8
    d_key = d_model

    key = jax.random.PRNGKey(0)
    ks = jax.random.split(key, 7)
    q = jax.random.normal(ks[0], (B, d_model), dtype=jnp.float32)
    k = jax.random.normal(ks[1], (B, S, d_model), dtype=jnp.float32)
    v = jax.random.normal(ks[2], (B, S, d_model), dtype=jnp.float32)

    # nn.Linear default init: U(-1/sqrt(fan_in), 1/sqrt(fan_in)).
    bound = 1.0 / math.sqrt(d_model)
    wq = jax.random.uniform(ks[3], (length, d_model, d_model), jnp.float32, -bound, bound)
    bq = jax.random.uniform(ks[4], (length, d_model), jnp.float32, -bound, bound)
    wo = jax.random.uniform(ks[5], (d_model, d_model), jnp.float32, -bound, bound)
    bo = jax.random.uniform(ks[6], (d_model,), jnp.float32, -bound, bound)

    out = feature_extraction_forward(q, k, v, wq, bq, wo, bo, d_key=d_key)
    out = jax.block_until_ready(out)

    ref = _reference(q, k, v, wq, bq, wo, bo, d_key)
    assert out.shape == (B, length, d_model), out.shape
    assert out.dtype == q.dtype
    # bf16 MXU operands with f32 accumulation: expect a few 1e-3 of abs error.
    err = float(jnp.max(jnp.abs(out - ref)))
    assert jnp.allclose(out, ref, atol=3e-2, rtol=3e-2), f"max abs err {err}"

    print("KERNEL_OK")
</pallas_src>

<mosaic_0001>
module attributes {stable_mosaic.version = 11 : i64} {
  func.func @_feature_extraction_kernel(%arg0: i32, %arg1: memref<4x1x128xbf16, #tpu.memory_space<vmem>>, %arg2: memref<4x16x128xbf16, #tpu.memory_space<vmem>>, %arg3: memref<4x16x128xbf16, #tpu.memory_space<vmem>>, %arg4: memref<128x1024xbf16, #tpu.memory_space<vmem>>, %arg5: memref<1x1024xf32, #tpu.memory_space<vmem>>, %arg6: memref<128x128xbf16, #tpu.memory_space<vmem>>, %arg7: memref<1x128xf32, #tpu.memory_space<vmem>>, %arg8: memref<4x8x128xf32, #tpu.memory_space<vmem>>) attributes {dimension_semantics = [#tpu.dimension_semantics<parallel>], iteration_bounds = array<i64: 2>, scalar_prefetch = 0 : i64, scratch_operands = 0 : i64, tpu.core_type = #tpu.core_type<tc>, window_params = [{transform_indices = @transform_0, window_bounds = array<i64: 4, 1, 128>}, {transform_indices = @transform_1, window_bounds = array<i64: 4, 16, 128>}, {transform_indices = @transform_2, window_bounds = array<i64: 4, 16, 128>}, {pipeline_mode = #tpu.pipeline_mode<synchronous>, transform_indices = @transform_3, window_bounds = array<i64: 128, 1024>}, {pipeline_mode = #tpu.pipeline_mode<synchronous>, transform_indices = @transform_4, window_bounds = array<i64: 1, 1024>}, {pipeline_mode = #tpu.pipeline_mode<synchronous>, transform_indices = @transform_5, window_bounds = array<i64: 128, 128>}, {pipeline_mode = #tpu.pipeline_mode<synchronous>, transform_indices = @transform_6, window_bounds = array<i64: 1, 128>}, {transform_indices = @transform_7, window_bounds = array<i64: 4, 8, 128>}]} {
    %c0 = arith.constant 0 : index
    %c0_0 = arith.constant 0 : index
    %c0_1 = arith.constant 0 : index
    %0 = vector.load %arg1[%c0, %c0_0, %c0_1] : memref<4x1x128xbf16, #tpu.memory_space<vmem>>, vector<4x1x128xbf16>
    %1 = vector.shape_cast %0 : vector<4x1x128xbf16> to vector<4x128xbf16>
    %c0_2 = arith.constant 0 : index
    %c0_3 = arith.constant 0 : index
    %2 = vector.load %arg4[%c0_2, %c0_3] : memref<128x1024xbf16, #tpu.memory_space<vmem>>, vector<128x1024xbf16>
    %cst = arith.constant dense<0.000000e+00> : vector<4x1024xf32>
    %3 = tpu.matmul %1, %2, %cst {dimension_numbers = #tpu.dot_dimension_numbers<[1], [0], [0], [1], [0, 0, 1, 1], [], []>} : vector<4x128xbf16>, vector<128x1024xbf16>, vector<4x1024xf32> -> vector<4x1024xf32>
    %c0_4 = arith.constant 0 : index
    %c0_5 = arith.constant 0 : index
    %4 = vector.load %arg5[%c0_4, %c0_5] : memref<1x1024xf32, #tpu.memory_space<vmem>>, vector<1x1024xf32>
    %5 = vector.broadcast %4 : vector<1x1024xf32> to vector<4x1024xf32>
    %6 = arith.addf %3, %5 : vector<4x1024xf32>
    %7 = vector.shape_cast %6 : vector<4x1024xf32> to vector<4x8x128xf32>
    %8 = arith.truncf %7 : vector<4x8x128xf32> to vector<4x8x128xbf16>
    %c0_6 = arith.constant 0 : index
    %c0_7 = arith.constant 0 : index
    %c0_8 = arith.constant 0 : index
    %9 = vector.load %arg2[%c0_6, %c0_7, %c0_8] : memref<4x16x128xbf16, #tpu.memory_space<vmem>>, vector<4x16x128xbf16>
    "tpu.trace_start"() <{level = 10 : i32, message = "bld,bsd->bls"}> : () -> ()
    %cst_9 = arith.constant dense<0.000000e+00> : vector<4x8x16xf32>
    %10 = tpu.matmul %8, %9, %cst_9 {dimension_numbers = #tpu.dot_dimension_numbers<[2], [2], [1], [1], [0, 0, 0, 1, 1, 1], [0], [0]>} : vector<4x8x128xbf16>, vector<4x16x128xbf16>, vector<4x8x16xf32> -> vector<4x8x16xf32>
    "tpu.trace_stop"() : () -> ()
    %cst_10 = arith.constant 0.0883883461 : f32
    %11 = vector.broadcast %cst_10 : f32 to vector<4x8x16xf32>
    %12 = arith.mulf %10, %11 : vector<4x8x16xf32>
    %cst_11 = arith.constant dense<0xFF800000> : vector<4x8xf32>
    %13 = vector.multi_reduction <maximumf>, %12, %cst_11 [2] : vector<4x8x16xf32> to vector<4x8xf32>
    %14 = vector.shape_cast %13 : vector<4x8xf32> to vector<4x8x1xf32>
    %15 = vector.broadcast %14 : vector<4x8x1xf32> to vector<4x8x16xf32>
    %16 = arith.subf %12, %15 : vector<4x8x16xf32>
    %17 = math.exp %16 : vector<4x8x16xf32>
    %cst_12 = arith.constant dense<0.000000e+00> : vector<4x8xf32>
    %18 = vector.multi_reduction <add>, %17, %cst_12 [2] : vector<4x8x16xf32> to vector<4x8xf32>
    %19 = vector.shape_cast %18 : vector<4x8xf32> to vector<4x8x1xf32>
    %20 = tpu.reciprocal %19 {approx = true} : vector<4x8x1xf32> -> vector<4x8x1xf32>
    %21 = vector.broadcast %20 : vector<4x8x1xf32> to vector<4x8x16xf32>
    %22 = arith.mulf %17, %21 : vector<4x8x16xf32>
    %23 = arith.truncf %22 : vector<4x8x16xf32> to vector<4x8x16xbf16>
    %c0_13 = arith.constant 0 : index
    %c0_14 = arith.constant 0 : index
    %c0_15 = arith.constant 0 : index
    %24 = vector.load %arg3[%c0_13, %c0_14, %c0_15] : memref<4x16x128xbf16, #tpu.memory_space<vmem>>, vector<4x16x128xbf16>
    "tpu.trace_start"() <{level = 10 : i32, message = "bls,bsd->bld"}> : () -> ()
    %cst_16 = arith.constant dense<0.000000e+00> : vector<4x8x128xf32>
    %25 = tpu.matmul %23, %24, %cst_16 {dimension_numbers = #tpu.dot_dimension_numbers<[2], [1], [1], [2], [0, 0, 0, 1, 1, 2], [0], [0]>} : vector<4x8x16xbf16>, vector<4x16x128xbf16>, vector<4x8x128xf32> -> vector<4x8x128xf32>
    "tpu.trace_stop"() : () -> ()
    %26 = vector.shape_cast %25 : vector<4x8x128xf32> to vector<32x128xf32>
    %27 = arith.truncf %26 : vector<32x128xf32> to vector<32x128xbf16>
    %c0_17 = arith.constant 0 : index
    %c0_18 = arith.constant 0 : index
    %28 = vector.load %arg6[%c0_17, %c0_18] : memref<128x128xbf16, #tpu.memory_space<vmem>>, vector<128x128xbf16>
    %cst_19 = arith.constant dense<0.000000e+00> : vector<32x128xf32>
    %29 = tpu.matmul %27, %28, %cst_19 {dimension_numbers = #tpu.dot_dimension_numbers<[1], [0], [0], [1], [0, 0, 1, 1], [], []>} : vector<32x128xbf16>, vector<128x128xbf16>, vector<32x128xf32> -> vector<32x128xf32>
    %30 = vector.shape_cast %29 : vector<32x128xf32> to vector<4x8x128xf32>
    %c0_20 = arith.constant 0 : index
    %c0_21 = arith.constant 0 : index
    %31 = vector.load %arg7[%c0_20, %c0_21] : memref<1x128xf32, #tpu.memory_space<vmem>>, vector<1x128xf32>
    %32 = vector.shape_cast %31 : vector<1x128xf32> to vector<1x1x128xf32>
    %33 = vector.broadcast %32 : vector<1x1x128xf32> to vector<4x8x128xf32>
    %34 = arith.addf %30, %33 : vector<4x8x128xf32>
    %c0_22 = arith.constant 0 : index
    %c0_23 = arith.constant 0 : index
    %c0_24 = arith.constant 0 : index
    %35 = vector.load %arg8[%c0_22, %c0_23, %c0_24] : memref<4x8x128xf32, #tpu.memory_space<vmem>>, vector<4x8x128xf32>
    tpu.vector_store %arg8[%c0_22, %c0_23, %c0_24], %34 {strides = array<i32>} : memref<4x8x128xf32, #tpu.memory_space<vmem>>, vector<4x8x128xf32>,
    return
  }
  func.func @transform_0(%arg0: i32) -> (i32, i32, i32) {
    %c0_i32 = arith.constant 0 : i32
    %c0_i32_0 = arith.constant 0 : i32
    %c0_i32_1 = arith.constant 0 : i32
    return %arg0, %c0_i32, %c0_i32_0 : i32, i32, i32
  }
  func.func @transform_1(%arg0: i32) -> (i32, i32, i32) {
    %c0_i32 = arith.constant 0 : i32
    %c0_i32_0 = arith.constant 0 : i32
    %c0_i32_1 = arith.constant 0 : i32
    return %arg0, %c0_i32, %c0_i32_0 : i32, i32, i32
  }
  func.func @transform_2(%arg0: i32) -> (i32, i32, i32) {
    %c0_i32 = arith.constant 0 : i32
    %c0_i32_0 = arith.constant 0 : i32
    %c0_i32_1 = arith.constant 0 : i32
    return %arg0, %c0_i32, %c0_i32_0 : i32, i32, i32
  }
  func.func @transform_3(%arg0: i32) -> (i32, i32) {
    %c0_i32 = arith.constant 0 : i32
    %c0_i32_0 = arith.constant 0 : i32
    %c0_i32_1 = arith.constant 0 : i32
    return %c0_i32, %c0_i32_0 : i32, i32
  }
  func.func @transform_4(%arg0: i32) -> (i32, i32) {
    %c0_i32 = arith.constant 0 : i32
    %c0_i32_0 = arith.constant 0 : i32
    %c0_i32_1 = arith.constant 0 : i32
    return %c0_i32, %c0_i32_0 : i32, i32
  }
  func.func @transform_5(%arg0: i32) -> (i32, i32) {
    %c0_i32 = arith.constant 0 : i32
    %c0_i32_0 = arith.constant 0 : i32
    %c0_i32_1 = arith.constant 0 : i32
    return %c0_i32, %c0_i32_0 : i32, i32
  }
  func.func @transform_6(%arg0: i32) -> (i32, i32) {
    %c0_i32 = arith.constant 0 : i32
    %c0_i32_0 = arith.constant 0 : i32
    %c0_i32_1 = arith.constant 0 : i32
    return %c0_i32, %c0_i32_0 : i32, i32
  }
  func.func @transform_7(%arg0: i32) -> (i32, i32, i32) {
    %c0_i32 = arith.constant 0 : i32
    %c0_i32_0 = arith.constant 0 : i32
    %c0_i32_1 = arith.constant 0 : i32
    return %arg0, %c0_i32, %c0_i32_0 : i32, i32, i32
  }
}

module attributes {stable_mosaic.version = 11 : i64} {
  func.func @_feature_extraction_kernel(%arg0: i32, %arg1: memref<4x1x128xbf16, #tpu.memory_space<vmem>>, %arg2: memref<4x16x128xbf16, #tpu.memory_space<vmem>>, %arg3: memref<4x16x128xbf16, #tpu.memory_space<vmem>>, %arg4: memref<128x1024xbf16, #tpu.memory_space<vmem>>, %arg5: memref<1x1024xf32, #tpu.memory_space<vmem>>, %arg6: memref<128x128xbf16, #tpu.memory_space<vmem>>, %arg7: memref<1x128xf32, #tpu.memory_space<vmem>>, %arg8: memref<4x8x128xf32, #tpu.memory_space<vmem>>) attributes {dimension_semantics = [#tpu.dimension_semantics<parallel>], iteration_bounds = array<i64: 2>, scalar_prefetch = 0 : i64, scratch_operands = 0 : i64, tpu.core_type = #tpu.core_type<tc>, window_params = [{transform_indices = @transform_0, window_bounds = array<i64: 4, 1, 128>}, {transform_indices = @transform_1, window_bounds = array<i64: 4, 16, 128>}, {transform_indices = @transform_2, window_bounds = array<i64: 4, 16, 128>}, {pipeline_mode = #tpu.pipeline_mode<synchronous>, transform_indices = @transform_3, window_bounds = array<i64: 128, 1024>}, {pipeline_mode = #tpu.pipeline_mode<synchronous>, transform_indices = @transform_4, window_bounds = array<i64: 1, 1024>}, {pipeline_mode = #tpu.pipeline_mode<synchronous>, transform_indices = @transform_5, window_bounds = array<i64: 128, 128>}, {pipeline_mode = #tpu.pipeline_mode<synchronous>, transform_indices = @transform_6, window_bounds = array<i64: 1, 128>}, {transform_indices = @transform_7, window_bounds = array<i64: 4, 8, 128>}]} {
    %c0 = arith.constant 0 : index
    %c0_0 = arith.constant 0 : index
    %c0_1 = arith.constant 0 : index
    %0 = vector.load %arg1[%c0, %c0_0, %c0_1] : memref<4x1x128xbf16, #tpu.memory_space<vmem>>, vector<4x1x128xbf16>
    %1 = vector.shape_cast %0 : vector<4x1x128xbf16> to vector<4x128xbf16>
    %c0_2 = arith.constant 0 : index
    %c0_3 = arith.constant 0 : index
    %2 = vector.load %arg4[%c0_2, %c0_3] : memref<128x1024xbf16, #tpu.memory_space<vmem>>, vector<128x1024xbf16>
    %cst = arith.constant dense<0.000000e+00> : vector<4x1024xf32>
    %3 = tpu.matmul %1, %2, %cst {dimension_numbers = #tpu.dot_dimension_numbers<[1], [0], [0], [1], [0, 0, 1, 1], [], []>} : vector<4x128xbf16>, vector<128x1024xbf16>, vector<4x1024xf32> -> vector<4x1024xf32>
    %c0_4 = arith.constant 0 : index
    %c0_5 = arith.constant 0 : index
    %4 = vector.load %arg5[%c0_4, %c0_5] : memref<1x1024xf32, #tpu.memory_space<vmem>>, vector<1x1024xf32>
    %5 = vector.broadcast %4 : vector<1x1024xf32> to vector<4x1024xf32>
    %6 = arith.addf %3, %5 : vector<4x1024xf32>
    %7 = vector.shape_cast %6 : vector<4x1024xf32> to vector<4x8x128xf32>
    %8 = arith.truncf %7 : vector<4x8x128xf32> to vector<4x8x128xbf16>
    %c0_6 = arith.constant 0 : index
    %c0_7 = arith.constant 0 : index
    %c0_8 = arith.constant 0 : index
    %9 = vector.load %arg2[%c0_6, %c0_7, %c0_8] : memref<4x16x128xbf16, #tpu.memory_space<vmem>>, vector<4x16x128xbf16>
    "tpu.trace_start"() <{level = 10 : i32, message = "bld,bsd->bls"}> : () -> ()
    %cst_9 = arith.constant dense<0.000000e+00> : vector<4x8x16xf32>
    %10 = tpu.matmul %8, %9, %cst_9 {dimension_numbers = #tpu.dot_dimension_numbers<[2], [2], [1], [1], [0, 0, 0, 1, 1, 1], [0], [0]>} : vector<4x8x128xbf16>, vector<4x16x128xbf16>, vector<4x8x16xf32> -> vector<4x8x16xf32>
    "tpu.trace_stop"() : () -> ()
    %cst_10 = arith.constant 0.0883883461 : f32
    %11 = vector.broadcast %cst_10 : f32 to vector<4x8x16xf32>
    %12 = arith.mulf %10, %11 : vector<4x8x16xf32>
    %cst_11 = arith.constant dense<0xFF800000> : vector<4x8xf32>
    %13 = vector.multi_reduction <maximumf>, %12, %cst_11 [2] : vector<4x8x16xf32> to vector<4x8xf32>
    %14 = vector.shape_cast %13 : vector<4x8xf32> to vector<4x8x1xf32>
    %15 = vector.broadcast %14 : vector<4x8x1xf32> to vector<4x8x16xf32>
    %16 = arith.subf %12, %15 : vector<4x8x16xf32>
    %17 = math.exp %16 : vector<4x8x16xf32>
    %cst_12 = arith.constant dense<0.000000e+00> : vector<4x8xf32>
    %18 = vector.multi_reduction <add>, %17, %cst_12 [2] : vector<4x8x16xf32> to vector<4x8xf32>
    %19 = vector.shape_cast %18 : vector<4x8xf32> to vector<4x8x1xf32>
    %20 = tpu.reciprocal %19 {approx = true} : vector<4x8x1xf32> -> vector<4x8x1xf32>
    %21 = vector.broadcast %20 : vector<4x8x1xf32> to vector<4x8x16xf32>
    %22 = arith.mulf %17, %21 : vector<4x8x16xf32>
    %23 = arith.truncf %22 : vector<4x8x16xf32> to vector<4x8x16xbf16>
    %c0_13 = arith.constant 0 : index
    %c0_14 = arith.constant 0 : index
    %c0_15 = arith.constant 0 : index
    %24 = vector.load %arg3[%c0_13, %c0_14, %c0_15] : memref<4x16x128xbf16, #tpu.memory_space<vmem>>, vector<4x16x128xbf16>
    "tpu.trace_start"() <{level = 10 : i32, message = "bls,bsd->bld"}> : () -> ()
    %cst_16 = arith.constant dense<0.000000e+00> : vector<4x8x128xf32>
    %25 = tpu.matmul %23, %24, %cst_16 {dimension_numbers = #tpu.dot_dimension_numbers<[2], [1], [1], [2], [0, 0, 0, 1, 1, 2], [0], [0]>} : vector<4x8x16xbf16>, vector<4x16x128xbf16>, vector<4x8x128xf32> -> vector<4x8x128xf32>
    "tpu.trace_stop"() : () -> ()
    %26 = vector.shape_cast %25 : vector<4x8x128xf32> to vector<32x128xf32>
    %27 = arith.truncf %26 : vector<32x128xf32> to vector<32x128xbf16>
    %c0_17 = arith.constant 0 : index
    %c0_18 = arith.constant 0 : index
    %28 = vector.load %arg6[%c0_17, %c0_18] : memref<128x128xbf16, #tpu.memory_space<vmem>>, vector<128x128xbf16>
    %cst_19 = arith.constant dense<0.000000e+00> : vector<32x128xf32>
    %29 = tpu.matmul %27, %28, %cst_19 {dimension_numbers = #tpu.dot_dimension_numbers<[1], [0], [0], [1], [0, 0, 1, 1], [], []>} : vector<32x128xbf16>, vector<128x128xbf16>, vector<32x128xf32> -> vector<32x128xf32>
    %30 = vector.shape_cast %29 : vector<32x128xf32> to vector<4x8x128xf32>
    %c0_20 = arith.constant 0 : index
    %c0_21 = arith.constant 0 : index
    %31 = vector.load %arg7[%c0_20, %c0_21] : memref<1x128xf32, #tpu.memory_space<vmem>>, vector<1x128xf32>
    %32 = vector.shape_cast %31 : vector<1x128xf32> to vector<1x1x128xf32>
    %33 = vector.broadcast %32 : vector<1x1x128xf32> to vector<4x8x128xf32>
    %34 = arith.addf %30, %33 : vector<4x8x128xf32>
    %c0_22 = arith.constant 0 : index
    %c0_23 = arith.constant 0 : index
    %c0_24 = arith.constant 0 : index
    %35 = vector.load %arg8[%c0_22, %c0_23, %c0_24] : memref<4x8x128xf32, #tpu.memory_space<vmem>>, vector<4x8x128xf32>
    tpu.vector_store %arg8[%c0_22, %c0_23, %c0_24], %34 {strides = array<i32>} : memref<4x8x128xf32, #tpu.memory_space<vmem>>, vector<4x8x128xf32>,
    return
  }
  func.func @transform_0(%arg0: i32) -> (i32, i32, i32) {
    %c0_i32 = arith.constant 0 : i32
    %c0_i32_0 = arith.constant 0 : i32
    %c0_i32_1 = arith.constant 0 : i32
    return %arg0, %c0_i32, %c0_i32_0 : i32, i32, i32
  }
  func.func @transform_1(%arg0: i32) -> (i32, i32, i32) {
    %c0_i32 = arith.constant 0 : i32
    %c0_i32_0 = arith.constant 0 : i32
    %c0_i32_1 = arith.constant 0 : i32
    return %arg0, %c0_i32, %c0_i32_0 : i32, i32, i32
  }
  func.func @transform_2(%arg0: i32) -> (i32, i32, i32) {
    %c0_i32 = arith.constant 0 : i32
    %c0_i32_0 = arith.constant 0 : i32
    %c0_i32_1 = arith.constant 0 : i32
    return %arg0, %c0_i32, %c0_i32_0 : i32, i32, i32
  }
  func.func @transform_3(%arg0: i32) -> (i32, i32) {
    %c0_i32 = arith.constant 0 : i32
    %c0_i32_0 = arith.constant 0 : i32
    %c0_i32_1 = arith.constant 0 : i32
    return %c0_i32, %c0_i32_0 : i32, i32
  }
  func.func @transform_4(%arg0: i32) -> (i32, i32) {
    %c0_i32 = arith.constant 0 : i32
    %c0_i32_0 = arith.constant 0 : i32
    %c0_i32_1 = arith.constant 0 : i32
    return %c0_i32, %c0_i32_0 : i32, i32
  }
  func.func @transform_5(%arg0: i32) -> (i32, i32) {
    %c0_i32 = arith.constant 0 : i32
    %c0_i32_0 = arith.constant 0 : i32
    %c0_i32_1 = arith.constant 0 : i32
    return %c0_i32, %c0_i32_0 : i32, i32
  }
  func.func @transform_6(%arg0: i32) -> (i32, i32) {
    %c0_i32 = arith.constant 0 : i32
    %c0_i32_0 = arith.constant 0 : i32
    %c0_i32_1 = arith.constant 0 : i32
    return %c0_i32, %c0_i32_0 : i32, i32
  }
  func.func @transform_7(%arg0: i32) -> (i32, i32, i32) {
    %c0_i32 = arith.constant 0 : i32
    %c0_i32_0 = arith.constant 0 : i32
    %c0_i32_1 = arith.constant 0 : i32
    return %arg0, %c0_i32, %c0_i32_0 : i32, i32, i32
  }
}

module attributes {stable_mosaic.version = 11 : i64} {
  func.func @_feature_extraction_kernel(%arg0: i32, %arg1: memref<4x1x128xbf16, #tpu.memory_space<vmem>>, %arg2: memref<4x16x128xbf16, #tpu.memory_space<vmem>>, %arg3: memref<4x16x128xbf16, #tpu.memory_space<vmem>>, %arg4: memref<128x1024xbf16, #tpu.memory_space<vmem>>, %arg5: memref<1x1024xf32, #tpu.memory_space<vmem>>, %arg6: memref<128x128xbf16, #tpu.memory_space<vmem>>, %arg7: memref<1x128xf32, #tpu.memory_space<vmem>>, %arg8: memref<4x8x128xf32, #tpu.memory_space<vmem>>, %arg9: memref<4x8x128xf32, #tpu.memory_space<vmem>>) attributes {dimension_semantics = [#tpu.dimension_semantics<parallel>], iteration_bounds = array<i64: 2>, scalar_prefetch = 0 : i64, scratch_operands = 1 : i64, tpu.core_type = #tpu.core_type<tc>, window_params = [{transform_indices = @transform_0, window_bounds = array<i64: 4, 1, 128>}, {transform_indices = @transform_1, window_bounds = array<i64: 4, 16, 128>}, {transform_indices = @transform_2, window_bounds = array<i64: 4, 16, 128>}, {pipeline_mode = #tpu.pipeline_mode<synchronous>, transform_indices = @transform_3, window_bounds = array<i64: 128, 1024>}, {pipeline_mode = #tpu.pipeline_mode<synchronous>, transform_indices = @transform_4, window_bounds = array<i64: 1, 1024>}, {pipeline_mode = #tpu.pipeline_mode<synchronous>, transform_indices = @transform_5, window_bounds = array<i64: 128, 128>}, {pipeline_mode = #tpu.pipeline_mode<synchronous>, transform_indices = @transform_6, window_bounds = array<i64: 1, 128>}, {transform_indices = @transform_7, window_bounds = array<i64: 4, 8, 128>}]} {
    %c0 = arith.constant 0 : index
    %c0_0 = arith.constant 0 : index
    %c0_1 = arith.constant 0 : index
    %0 = vector.load %arg1[%c0, %c0_0, %c0_1] : memref<4x1x128xbf16, #tpu.memory_space<vmem>>, vector<4x1x128xbf16>
    %1 = vector.shape_cast %0 : vector<4x1x128xbf16> to vector<4x128xbf16>
    %c0_2 = arith.constant 0 : index
    %c0_3 = arith.constant 0 : index
    %2 = vector.load %arg4[%c0_2, %c0_3] : memref<128x1024xbf16, #tpu.memory_space<vmem>>, vector<128x1024xbf16>
    %cst = arith.constant dense<0.000000e+00> : vector<4x1024xf32>
    %3 = tpu.matmul %1, %2, %cst {dimension_numbers = #tpu.dot_dimension_numbers<[1], [0], [0], [1], [0, 0, 1, 1], [], []>} : vector<4x128xbf16>, vector<128x1024xbf16>, vector<4x1024xf32> -> vector<4x1024xf32>
    %c0_4 = arith.constant 0 : index
    %c0_5 = arith.constant 0 : index
    %4 = vector.load %arg5[%c0_4, %c0_5] : memref<1x1024xf32, #tpu.memory_space<vmem>>, vector<1x1024xf32>
    %5 = vector.broadcast %4 : vector<1x1024xf32> to vector<4x1024xf32>
    %6 = arith.addf %3, %5 : vector<4x1024xf32>
    %7 = vector.extract_strided_slice %6 {offsets = [0, 0], sizes = [4, 128], strides = [1, 1]} : vector<4x1024xf32> to vector<4x128xf32>
    %c0_6 = arith.constant 0 : index
    %c0_7 = arith.constant 0 : index
    %c0_8 = arith.constant 0 : index
    %8 = vector.load %arg9[%c0_6, %c0_7, %c0_8] : memref<4x8x128xf32, #tpu.memory_space<vmem>>, vector<4x1x128xf32>
    %9 = vector.shape_cast %8 : vector<4x1x128xf32> to vector<4x128xf32>
    %10 = vector.shape_cast %7 : vector<4x128xf32> to vector<4x1x128xf32>
    tpu.vector_store %arg9[%c0_6, %c0_7, %c0_8], %10 {strides = array<i32>} : memref<4x8x128xf32, #tpu.memory_space<vmem>>, vector<4x1x128xf32>,
    %11 = vector.extract_strided_slice %6 {offsets = [0, 128], sizes = [4, 128], strides = [1, 1]} : vector<4x1024xf32> to vector<4x128xf32>
    %c0_9 = arith.constant 0 : index
    %c1 = arith.constant 1 : index
    %c0_10 = arith.constant 0 : index
    %12 = vector.load %arg9[%c0_9, %c1, %c0_10] : memref<4x8x128xf32, #tpu.memory_space<vmem>>, vector<4x1x128xf32>
    %13 = vector.shape_cast %12 : vector<4x1x128xf32> to vector<4x128xf32>
    %14 = vector.shape_cast %11 : vector<4x128xf32> to vector<4x1x128xf32>
    tpu.vector_store %arg9[%c0_9, %c1, %c0_10], %14 {strides = array<i32>} : memref<4x8x128xf32, #tpu.memory_space<vmem>>, vector<4x1x128xf32>,
    %15 = vector.extract_strided_slice %6 {offsets = [0, 256], sizes = [4, 128], strides = [1, 1]} : vector<4x1024xf32> to vector<4x128xf32>
    %c0_11 = arith.constant 0 : index
    %c2 = arith.constant 2 : index
    %c0_12 = arith.constant 0 : index
    %16 = vector.load %arg9[%c0_11, %c2, %c0_12] : memref<4x8x128xf32, #tpu.memory_space<vmem>>, vector<4x1x128xf32>
    %17 = vector.shape_cast %16 : vector<4x1x128xf32> to vector<4x128xf32>
    %18 = vector.shape_cast %15 : vector<4x128xf32> to vector<4x1x128xf32>
    tpu.vector_store %arg9[%c0_11, %c2, %c0_12], %18 {strides = array<i32>} : memref<4x8x128xf32, #tpu.memory_space<vmem>>, vector<4x1x128xf32>,
    %19 = vector.extract_strided_slice %6 {offsets = [0, 384], sizes = [4, 128], strides = [1, 1]} : vector<4x1024xf32> to vector<4x128xf32>
    %c0_13 = arith.constant 0 : index
    %c3 = arith.constant 3 : index
    %c0_14 = arith.constant 0 : index
    %20 = vector.load %arg9[%c0_13, %c3, %c0_14] : memref<4x8x128xf32, #tpu.memory_space<vmem>>, vector<4x1x128xf32>
    %21 = vector.shape_cast %20 : vector<4x1x128xf32> to vector<4x128xf32>
    %22 = vector.shape_cast %19 : vector<4x128xf32> to vector<4x1x128xf32>
    tpu.vector_store %arg9[%c0_13, %c3, %c0_14], %22 {strides = array<i32>} : memref<4x8x128xf32, #tpu.memory_space<vmem>>, vector<4x1x128xf32>,
    %23 = vector.extract_strided_slice %6 {offsets = [0, 512], sizes = [4, 128], strides = [1, 1]} : vector<4x1024xf32> to vector<4x128xf32>
    %c0_15 = arith.constant 0 : index
    %c4 = arith.constant 4 : index
    %c0_16 = arith.constant 0 : index
    %24 = vector.load %arg9[%c0_15, %c4, %c0_16] : memref<4x8x128xf32, #tpu.memory_space<vmem>>, vector<4x1x128xf32>
    %25 = vector.shape_cast %24 : vector<4x1x128xf32> to vector<4x128xf32>
    %26 = vector.shape_cast %23 : vector<4x128xf32> to vector<4x1x128xf32>
    tpu.vector_store %arg9[%c0_15, %c4, %c0_16], %26 {strides = array<i32>} : memref<4x8x128xf32, #tpu.memory_space<vmem>>, vector<4x1x128xf32>,
    %27 = vector.extract_strided_slice %6 {offsets = [0, 640], sizes = [4, 128], strides = [1, 1]} : vector<4x1024xf32> to vector<4x128xf32>
    %c0_17 = arith.constant 0 : index
    %c5 = arith.constant 5 : index
    %c0_18 = arith.constant 0 : index
    %28 = vector.load %arg9[%c0_17, %c5, %c0_18] : memref<4x8x128xf32, #tpu.memory_space<vmem>>, vector<4x1x128xf32>
    %29 = vector.shape_cast %28 : vector<4x1x128xf32> to vector<4x128xf32>
    %30 = vector.shape_cast %27 : vector<4x128xf32> to vector<4x1x128xf32>
    tpu.vector_store %arg9[%c0_17, %c5, %c0_18], %30 {strides = array<i32>} : memref<4x8x128xf32, #tpu.memory_space<vmem>>, vector<4x1x128xf32>,
    %31 = vector.extract_strided_slice %6 {offsets = [0, 768], sizes = [4, 128], strides = [1, 1]} : vector<4x1024xf32> to vector<4x128xf32>
    %c0_19 = arith.constant 0 : index
    %c6 = arith.constant 6 : index
    %c0_20 = arith.constant 0 : index
    %32 = vector.load %arg9[%c0_19, %c6, %c0_20] : memref<4x8x128xf32, #tpu.memory_space<vmem>>, vector<4x1x128xf32>
    %33 = vector.shape_cast %32 : vector<4x1x128xf32> to vector<4x128xf32>
    %34 = vector.shape_cast %31 : vector<4x128xf32> to vector<4x1x128xf32>
    tpu.vector_store %arg9[%c0_19, %c6, %c0_20], %34 {strides = array<i32>} : memref<4x8x128xf32, #tpu.memory_space<vmem>>, vector<4x1x128xf32>,
    %35 = vector.extract_strided_slice %6 {offsets = [0, 896], sizes = [4, 128], strides = [1, 1]} : vector<4x1024xf32> to vector<4x128xf32>
    %c0_21 = arith.constant 0 : index
    %c7 = arith.constant 7 : index
    %c0_22 = arith.constant 0 : index
    %36 = vector.load %arg9[%c0_21, %c7, %c0_22] : memref<4x8x128xf32, #tpu.memory_space<vmem>>, vector<4x1x128xf32>
    %37 = vector.shape_cast %36 : vector<4x1x128xf32> to vector<4x128xf32>
    %38 = vector.shape_cast %35 : vector<4x128xf32> to vector<4x1x128xf32>
    tpu.vector_store %arg9[%c0_21, %c7, %c0_22], %38 {strides = array<i32>} : memref<4x8x128xf32, #tpu.memory_space<vmem>>, vector<4x1x128xf32>,
    %c0_23 = arith.constant 0 : index
    %c0_24 = arith.constant 0 : index
    %c0_25 = arith.constant 0 : index
    %39 = vector.load %arg9[%c0_23, %c0_24, %c0_25] : memref<4x8x128xf32, #tpu.memory_space<vmem>>, vector<4x8x128xf32>
    %40 = arith.truncf %39 : vector<4x8x128xf32> to vector<4x8x128xbf16>
    %c0_26 = arith.constant 0 : index
    %c0_27 = arith.constant 0 : index
    %c0_28 = arith.constant 0 : index
    %41 = vector.load %arg2[%c0_26, %c0_27, %c0_28] : memref<4x16x128xbf16, #tpu.memory_space<vmem>>, vector<4x16x128xbf16>
    "tpu.trace_start"() <{level = 10 : i32, message = "bld,bsd->bls"}> : () -> ()
    %cst_29 = arith.constant dense<0.000000e+00> : vector<4x8x16xf32>
    %42 = tpu.matmul %40, %41, %cst_29 {dimension_numbers = #tpu.dot_dimension_numbers<[2], [2], [1], [1], [0, 0, 0, 1, 1, 1], [0], [0]>} : vector<4x8x128xbf16>, vector<4x16x128xbf16>, vector<4x8x16xf32> -> vector<4x8x16xf32>
    "tpu.trace_stop"() : () -> ()
    %cst_30 = arith.constant 0.0883883461 : f32
    %43 = vector.broadcast %cst_30 : f32 to vector<4x8x16xf32>
    %44 = arith.mulf %42, %43 : vector<4x8x16xf32>
    %cst_31 = arith.constant dense<0xFF800000> : vector<4x8xf32>
    %45 = vector.multi_reduction <maximumf>, %44, %cst_31 [2] : vector<4x8x16xf32> to vector<4x8xf32>
    %46 = vector.shape_cast %45 : vector<4x8xf32> to vector<4x8x1xf32>
    %47 = vector.broadcast %46 : vector<4x8x1xf32> to vector<4x8x16xf32>
    %48 = arith.subf %44, %47 : vector<4x8x16xf32>
    %49 = math.exp %48 : vector<4x8x16xf32>
    %cst_32 = arith.constant dense<0.000000e+00> : vector<4x8xf32>
    %50 = vector.multi_reduction <add>, %49, %cst_32 [2] : vector<4x8x16xf32> to vector<4x8xf32>
    %51 = vector.shape_cast %50 : vector<4x8xf32> to vector<4x8x1xf32>
    %52 = tpu.reciprocal %51 {approx = true} : vector<4x8x1xf32> -> vector<4x8x1xf32>
    %53 = vector.broadcast %52 : vector<4x8x1xf32> to vector<4x8x16xf32>
    %54 = arith.mulf %49, %53 : vector<4x8x16xf32>
    %55 = arith.truncf %54 : vector<4x8x16xf32> to vector<4x8x16xbf16>
    %c0_33 = arith.constant 0 : index
    %c0_34 = arith.constant 0 : index
    %c0_35 = arith.constant 0 : index
    %56 = vector.load %arg3[%c0_33, %c0_34, %c0_35] : memref<4x16x128xbf16, #tpu.memory_space<vmem>>, vector<4x16x128xbf16>
    "tpu.trace_start"() <{level = 10 : i32, message = "bls,bsd->bld"}> : () -> ()
    %cst_36 = arith.constant dense<0.000000e+00> : vector<4x8x128xf32>
    %57 = tpu.matmul %55, %56, %cst_36 {dimension_numbers = #tpu.dot_dimension_numbers<[2], [1], [1], [2], [0, 0, 0, 1, 1, 2], [0], [0]>} : vector<4x8x16xbf16>, vector<4x16x128xbf16>, vector<4x8x128xf32> -> vector<4x8x128xf32>
    "tpu.trace_stop"() : () -> ()
    %58 = vector.shape_cast %57 : vector<4x8x128xf32> to vector<32x128xf32>
    %59 = arith.truncf %58 : vector<32x128xf32> to vector<32x128xbf16>
    %c0_37 = arith.constant 0 : index
    %c0_38 = arith.constant 0 : index
    %60 = vector.load %arg6[%c0_37, %c0_38] : memref<128x128xbf16, #tpu.memory_space<vmem>>, vector<128x128xbf16>
    %cst_39 = arith.constant dense<0.000000e+00> : vector<32x128xf32>
    %61 = tpu.matmul %59, %60, %cst_39 {dimension_numbers = #tpu.dot_dimension_numbers<[1], [0], [0], [1], [0, 0, 1, 1], [], []>} : vector<32x128xbf16>, vector<128x128xbf16>, vector<32x128xf32> -> vector<32x128xf32>
    %62 = vector.shape_cast %61 : vector<32x128xf32> to vector<4x8x128xf32>
    %c0_40 = arith.constant 0 : index
    %c0_41 = arith.constant 0 : index
    %63 = vector.load %arg7[%c0_40, %c0_41] : memref<1x128xf32, #tpu.memory_space<vmem>>, vector<1x128xf32>
    %64 = vector.shape_cast %63 : vector<1x128xf32> to vector<1x1x128xf32>
    %65 = vector.broadcast %64 : vector<1x1x128xf32> to vector<4x8x128xf32>
    %66 = arith.addf %62, %65 : vector<4x8x128xf32>
    %c0_42 = arith.constant 0 : index
    %c0_43 = arith.constant 0 : index
    %c0_44 = arith.constant 0 : index
    %67 = vector.load %arg8[%c0_42, %c0_43, %c0_44] : memref<4x8x128xf32, #tpu.memory_space<vmem>>, vector<4x8x128xf32>
    tpu.vector_store %arg8[%c0_42, %c0_43, %c0_44], %66 {strides = array<i32>} : memref<4x8x128xf32, #tpu.memory_space<vmem>>, vector<4x8x128xf32>,
    return
  }
  func.func @transform_0(%arg0: i32) -> (i32, i32, i32) {
    %c0_i32 = arith.constant 0 : i32
    %c0_i32_0 = arith.constant 0 : i32
    %c0_i32_1 = arith.constant 0 : i32
    return %arg0, %c0_i32, %c0_i32_0 : i32, i32, i32
  }
  func.func @transform_1(%arg0: i32) -> (i32, i32, i32) {
    %c0_i32 = arith.constant 0 : i32
    %c0_i32_0 = arith.constant 0 : i32
    %c0_i32_1 = arith.constant 0 : i32
    return %arg0, %c0_i32, %c0_i32_0 : i32, i32, i32
  }
  func.func @transform_2(%arg0: i32) -> (i32, i32, i32) {
    %c0_i32 = arith.constant 0 : i32
    %c0_i32_0 = arith.constant 0 : i32
    %c0_i32_1 = arith.constant 0 : i32
    return %arg0, %c0_i32, %c0_i32_0 : i32, i32, i32
  }
  func.func @transform_3(%arg0: i32) -> (i32, i32) {
    %c0_i32 = arith.constant 0 : i32
    %c0_i32_0 = arith.constant 0 : i32
    %c0_i32_1 = arith.constant 0 : i32
    return %c0_i32, %c0_i32_0 : i32, i32
  }
  func.func @transform_4(%arg0: i32) -> (i32, i32) {
    %c0_i32 = arith.constant 0 : i32
    %c0_i32_0 = arith.constant 0 : i32
    %c0_i32_1 = arith.constant 0 : i32
    return %c0_i32, %c0_i32_0 : i32, i32
  }
  func.func @transform_5(%arg0: i32) -> (i32, i32) {
    %c0_i32 = arith.constant 0 : i32
    %c0_i32_0 = arith.constant 0 : i32
    %c0_i32_1 = arith.constant 0 : i32
    return %c0_i32, %c0_i32_0 : i32, i32
  }
  func.func @transform_6(%arg0: i32) -> (i32, i32) {
    %c0_i32 = arith.constant 0 : i32
    %c0_i32_0 = arith.constant 0 : i32
    %c0_i32_1 = arith.constant 0 : i32
    return %c0_i32, %c0_i32_0 : i32, i32
  }
  func.func @transform_7(%arg0: i32) -> (i32, i32, i32) {
    %c0_i32 = arith.constant 0 : i32
    %c0_i32_0 = arith.constant 0 : i32
    %c0_i32_1 = arith.constant 0 : i32
    return %arg0, %c0_i32, %c0_i32_0 : i32, i32, i32
  }
}

</mosaic_0001>

<bundles_post_ra>
// kernel: tpu_custom_call.1
= control target key start
LH: loop header
LB: loop body
LE: loop exit
PB: predicated region body
PF: predicated region fallthrough
CT: control target
= control target key end

     0   :  { %s2814_s0 = inlined_call_operand.vmem [shape: bf16[8,1,128], index: 0, kind: input, shape index: {}]   ;;  %s2815_s1 = inlined_call_operand.hbm [shape: bf16[8,16,128], index: 1, kind: input, shape index: {}]   ;;  %s2816_s2 = inlined_call_operand.hbm [shape: bf16[8,16,128], index: 2, kind: input, shape index: {}]   ;;  %s2817_s3 = inlined_call_operand.hbm [shape: bf16[128,1024], index: 3, kind: input, shape index: {}]   ;;  %s2818_s4 = inlined_call_operand.vmem [shape: f32[1,1024], index: 4, kind: input, shape index: {}]   ;;  %s2819_s5 = inlined_call_operand.hbm [shape: bf16[128,128], index: 5, kind: input, shape index: {}]   ;;  %s2820_s6 = inlined_call_operand.vmem [shape: f32[1,128], index: 6, kind: input, shape index: {}]   ;;  %s2821_s7 = inlined_call_operand.hbm [shape: f32[8,8,128], index: 7, kind: output, shape index: {}]  }
   0x1   :  { %2829 = sst [smem:[#allocation17_spill]] %s2815_s1 }
   0x2   :  { %2830 = sst [smem:[#allocation18_spill]] %s2817_s3 }
   0x3   :  { %2831 = sst [smem:[#allocation19_spill]] %s2819_s5 }
   0x4   :  { %12 = vsyncpa [#allocation3], 0 }
   0x5   :  { %14 = vsyncpa [#allocation3 + $0x1], 0 }
   0x6   :  { %15 = vsyncpa [#allocation6], 0 }
   0x7   :  { %17 = vsyncpa [#allocation6 + $0x1], 0 }
   0x8   :  { %18 = vsyncpa [#allocation9], 0 }
   0x9   :  { %19 = vsyncpa [#allocation4], 0 }
   0xa   :  { %21 = vsyncpa [#allocation4 + $0x1], 0  ;;  %s2431_s24 = smov 0   ;;  %s2433_s25 = smov 0  }
   0xb   :  { %s2435_s26 = smov 0   ;;  %s2437_s27 = smov 0  }
   0xc LB: > { %s2452_s28 = sadd.s32 4294967295, %s2372_s27   ;;  %s1849_s29 = sadd.s32 4294967294, %s2372_s27   ;;  %s2372_s27 = sphi %s2437_s27, %s2858_s27   ;;  %s2368_s26 = sphi %s2435_s26, %s2857_s26   ;;  %s2364_s25 = sphi %s2433_s25, %s2856_s25   ;;  %s2360_s24 = sphi %s2431_s24, %s2855_s24  }
   0xd   : > { %p73_p0 = scmp.ne.s32.totalorder %s2364_s25, %s2360_s24  ;;  %p2822_p1 = scmp.eq.s32.totalorder %s2452_s28, 0 }
   0xe   : > { %p213_p3 = scmp.eq.s32.totalorder %s1849_s29, 1  ;;  %p1850_p5 = scmp.ge.s32.totalorder %s2372_s27, 1 }
   0xf   : > { %p2461_p4 = por %p2822_p1, %p73_p0  ;;  %p220_p7 = scmp.lt.s32.totalorder %s2372_s27, 3 }
  0x10   : > { %p2466_p6 = por %p213_p3, %p73_p0  ;;  %s2374_s10 = smov [#allocation7]  }
  0x11   : > { %s2832_s30 = scalar_select %p2461_p4, 1, 0 }
  0x12   : > { %s2833_s8 = scalar_select %p2466_p6, 1, 0 }
  0x13   : > { %p2471_p8 = pnand %p1850_p5, %p220_p7  ;;  %s232_s11 = sshll.u32 %s2374_s10, 4  ;;  %s2475_s11 = int_to_ptr.vmem [resolvable:$true] %s232_s11 }
  0x14   : > { %s2375_s13 = smov [#allocation8]   ;;  %s2836_s3 = sld [smem:[#allocation18_spill]] }
  0x15   : > { %p2076_p9 = pneg %p2471_p8  ;;  %s248_s14 = sshll.u32 %s2375_s13, 4  ;;  %s2486_s14 = int_to_ptr.vmem [resolvable:$true] %s248_s14 }
  0x17   : > { %p2482_p11 = pnand %p2076_p9, %p2822_p1 }
  0x19   : > { %p2180_p13 = pneg %p2482_p11 }
  0x1a   : > { %s2178_s17 = scalar_lea.hbm %s2836_s3, 8192 }
  0x1b   : > { %p2179_p12 = scmp.ne.s32.totalorder %s2836_s3, %s2178_s17  ;;  %p2185_p5 = scmp.lt.u32.totalorder %s2178_s17, %s2836_s3 }
  0x1d   : > { %p2181_p0 = pnand %p2180_p13, %p2179_p12 }
  0x1f   : > { %p2182_p3 = pneg %p2181_p0 }
  0x21   : > { %p2187_p7 = pnand %p2185_p5, %p2182_p3 }
  0x23   : > { %2190 = shalt.err (!%p2187_p7)
}
  0x24   : > { %s2191_s22 = scalar_lea.vmem %s2475_s11, 8192  ;;  %p2199_p2 = scmp.lt.s32.totalorder %s2475_s11, %s2475_s11 }
  0x25   : > { %p2192_p9 = scmp.ne.s32.totalorder %s2475_s11, %s2191_s22  ;;  %p2200_p12 = scmp.lt.s32.totalorder %s2191_s22, %s2191_s22 }
  0x27   : > { %p2194_p10 = pnand %p2192_p9, %p2180_p13  ;;  %p2201_p0 = por %p2200_p12, %p2199_p2 }
  0x29   : > { %p2195_p1 = pneg %p2194_p10 }
  0x2b   : > { %p2202_p6 = pnand %p2201_p0, %p2195_p1 }
  0x2d   : > { %2205 = shalt.err (!%p2202_p6)
}
  0x2e   : > { %s2376_s23 = smov 512   ;;  %s2377_s29 = smov 32  }
  0x2f   : > { %2079 = dma.hbm_to_vmem [thread:$0]  (!%p2482_p11), %s2836_s3, 8192, %s2475_s11, [#allocation6], %s2376_s23, %s2376_s23, %s2377_s29  }
  0x30   : > { %s2837_s5 = sld [smem:[#allocation19_spill]] }
  0x36   : > { %s2206_s17 = scalar_lea.hbm %s2837_s5, 1024 }
  0x37   : > { %p2207_p2 = scmp.ne.s32.totalorder %s2837_s5, %s2206_s17  ;;  %p2213_p10 = scmp.lt.u32.totalorder %s2206_s17, %s2837_s5 }
  0x39   : > { %p2209_p1 = pnand %p2207_p2, %p2180_p13 }
  0x3b   : > { %p2210_p6 = pneg %p2209_p1 }
  0x3d   : > { %p2215_p3 = pnand %p2213_p10, %p2210_p6 }
  0x3f   : > { %2218 = shalt.err (!%p2215_p3)
}
  0x40   : > { %s2219_s11 = scalar_lea.vmem %s2486_s14, 1024  ;;  %p2227_p12 = scmp.lt.s32.totalorder %s2486_s14, %s2486_s14 }
  0x41   : > { %p2220_p5 = scmp.ne.s32.totalorder %s2486_s14, %s2219_s11  ;;  %p2228_p0 = scmp.lt.s32.totalorder %s2219_s11, %s2219_s11 }
  0x43   : > { %p2222_p7 = pnand %p2220_p5, %p2180_p13  ;;  %p2229_p2 = por %p2228_p0, %p2227_p12 }
  0x45   : > { %p2223_p9 = pneg %p2222_p7 }
  0x47   : > { %p2230_p1 = pnand %p2229_p2, %p2223_p9 }
  0x49   : > { %2233 = shalt.err (!%p2230_p1)
}
  0x4a   : > { %s2823_s22 = smov 64   ;;  %s2825_s23 = smov 4  }
  0x4b   : > { %2082 = dma.hbm_to_vmem [thread:$0]  (!%p2482_p11), %s2837_s5, 1024, %s2486_s14, [#allocation9], %s2823_s22, %s2823_s22, %s2825_s23  }
  0x4c   : > { %s2544_s13 = sadd.s32 1, %s2372_s27   ;;  %s60_s16 = sadd.s32 1, %s2368_s26 }
  0x4d   : > { %s57_s15 = ssub.s32 %s2372_s27, %s2544_s13  ;;  %p67_p6 = scmp.ne.s32.totalorder %s2368_s26, %s2364_s25 }
  0x4e   : > { %p58_p13 = scmp.eq.s32.totalorder %s57_s15, 0  ;;  %p68_p10 = scmp.eq.s32.totalorder %s2372_s27, 0 }
  0x4f   : > { %p2839_p5 = scmp.eq.s32.totalorder %s2452_s28, 1  ;;  %p2096_p9 = scmp.lt.s32.totalorder %s2372_s27, 2 }
  0x50   : > { %s2553_s17 = scalar_select %p58_p13, %s2368_s26, %s60_s16  }
  0x51   : > { %p69_p3 = por %p68_p10, %p67_p6  ;;  %p2557_p7 = por %p2839_p5, %p67_p6 }
  0x52   : > { %2838 = sst [smem:[#allocation16_spill]] %s2553_s17  ;;  %s273_s18 = sand.u32 1, %s2368_s26  }
  0x53   : > { %s2840_s12 = scalar_select %p2557_p7, 1, 0 }
  0x54   : > { %s1854_s19 = sshll.u32 %s273_s18, 5  ;;  %s1964_s14 = sshll.u32 %s2372_s27, 9 }
  0x55   : > { %s2841_s1 = sld [smem:[#allocation17_spill]]  ;;  %s277_s29 = scalar_lea.vmem [#allocation2], %s1854_s19 }
  0x56   : > { %s285_s10 = sshll.u32 %s277_s29, 4  ;;  %p2571_p11 = pnand %p2096_p9, %p69_p3  ;;  %s2569_s10 = int_to_ptr.vmem [resolvable:$true] %s285_s10 }
  0x57   : > { %s2578_s20 = scalar_lea.hbm %s2816_s2, %s1964_s14  ;;  %s299_s21 = scalar_lea.vmem [#allocation5], %s1854_s19 }
  0x58   : > { %s2580_s23 = sshll.u32 %s299_s21, 4  ;;  %s2582_s3 = scalar_lea.sflag [#allocation3], %s273_s18  ;;  %s2614_s23 = int_to_ptr.vmem [resolvable:$true] %s2580_s23 }
  0x59   : > { %p2236_p0 = pneg %p2571_p11 }
  0x5b   : > { %s2567_s11 = scalar_lea.hbm %s2841_s1, %s1964_s14  ;;  %s2239_s22 = scalar_lea.hbm %s2841_s1, 1024 }
  0x5c   : > { %s2234_s29 = scalar_lea.hbm %s2567_s11, 512  ;;  %p2240_p13 = scmp.lt.u32.totalorder %s2567_s11, %s2841_s1 }
  0x5d   : > { %p2235_p12 = scmp.ne.s32.totalorder %s2567_s11, %s2234_s29  ;;  %p2241_p6 = scmp.lt.u32.totalorder %s2239_s22, %s2234_s29 }
  0x5e   : > { %p2243_p3 = scmp.lt.u32.totalorder %s2234_s29, %s2567_s11 }
  0x5f   : > { %p2237_p2 = pnand %p2236_p0, %p2235_p12  ;;  %p2242_p10 = por %p2241_p6, %p2240_p13 }
  0x61   : > { %p2238_p1 = pneg %p2237_p2  ;;  %p2244_p5 = por %p2243_p3, %p2242_p10 }
  0x63   : > { %p2245_p9 = pnand %p2244_p5, %p2238_p1 }
  0x65   : > { %2248 = shalt.err (!%p2245_p9)
}
  0x66   : > { %s2249_s18 = scalar_lea.vmem %s2569_s10, 512  ;;  %s2380_s5 = smov [#allocation2]  }
  0x67   : > { %p2250_p12 = scmp.ne.s32.totalorder %s2569_s10, %s2249_s18  ;;  %s2254_s17 = sshll.u32 %s2380_s5, 4  ;;  %s2255_s17 = int_to_ptr.vmem [resolvable:$false] %s2254_s17 }
  0x68   : > { %s2256_s19 = scalar_lea.vmem %s2255_s17, 1024  ;;  %p2257_p4 = scmp.lt.s32.totalorder %s2569_s10, %s2255_s17 }
  0x69   : > { %p2252_p2 = pnand %p2250_p12, %p2236_p0  ;;  %p2258_p13 = scmp.lt.s32.totalorder %s2256_s19, %s2249_s18 }
  0x6b   : > { %p2253_p7 = pneg %p2252_p2  ;;  %p2259_p6 = por %p2258_p13, %p2257_p4 }
  0x6d   : > { %p2260_p10 = pnand %p2259_p6, %p2253_p7 }
  0x6f   : > { %2263 = shalt.err (!%p2260_p10)
}
  0x70   : > { %s2843_s21 = smov 4   ;;  %s2844_s29 = smov 64  }
  0x71   : > { %2086 = dma.hbm_to_vmem [thread:$0]  (!%p2571_p11), %s2567_s11, 512, %s2569_s10, %s2582_s3, %s2844_s29, %s2844_s29, %s2843_s21  }
  0x72   : > { %s295_s22 = sand.u32 1, %s2372_s27   ;;  %s2264_s14 = scalar_lea.hbm %s2578_s20, 512 }
  0x73   : > { %s2617_s16 = scalar_lea.sflag [#allocation6], %s295_s22  ;;  %p2265_p4 = scmp.ne.s32.totalorder %s2578_s20, %s2264_s14 }
  0x74   : > { %s2269_s17 = scalar_lea.hbm %s2816_s2, 1024  ;;  %p2270_p3 = scmp.lt.u32.totalorder %s2578_s20, %s2816_s2 }
  0x75   : > { %p2267_p7 = pnand %p2265_p4, %p2236_p0  ;;  %p2271_p5 = scmp.lt.u32.totalorder %s2269_s17, %s2264_s14 }
  0x76   : > { %p2273_p12 = scmp.lt.u32.totalorder %s2264_s14, %s2578_s20 }
  0x77   : > { %p2268_p1 = pneg %p2267_p7  ;;  %p2272_p9 = por %p2271_p5, %p2270_p3 }
  0x79   : > { %p2274_p2 = por %p2273_p12, %p2272_p9 }
  0x7b   : > { %p2275_p13 = pnand %p2274_p2, %p2268_p1 }
  0x7d   : > { %2278 = shalt.err (!%p2275_p13)
}
  0x7e   : > { %s2279_s3 = scalar_lea.vmem %s2614_s23, 512  ;;  %s2381_s11 = smov [#allocation5]  }
  0x7f   : > { %p2280_p6 = scmp.ne.s32.totalorder %s2614_s23, %s2279_s3  ;;  %s2284_s10 = sshll.u32 %s2381_s11, 4  ;;  %s2285_s10 = int_to_ptr.vmem [resolvable:$false] %s2284_s10 }
  0x80   : > { %s2286_s1 = scalar_lea.vmem %s2285_s10, 1024  ;;  %p2287_p7 = scmp.lt.s32.totalorder %s2614_s23, %s2285_s10 }
  0x81   : > { %p2282_p10 = pnand %p2280_p6, %p2236_p0  ;;  %p2288_p3 = scmp.lt.s32.totalorder %s2286_s1, %s2279_s3 }
  0x83   : > { %p2283_p4 = pneg %p2282_p10  ;;  %p2289_p5 = por %p2288_p3, %p2287_p7 }
  0x85   : > { %p2290_p9 = pnand %p2289_p5, %p2283_p4 }
  0x87   : > { %2293 = shalt.err (!%p2290_p9)
}
  0x88   : > { %2089 = dma.hbm_to_vmem [thread:$0]  (!%p2571_p11), %s2578_s20, 512, %s2614_s23, %s2617_s16, %s2844_s29, %s2844_s29, %s2843_s21  }
  0x89   : > { %319 = sbr.rel (%p2471_p8) target bundleno = 1449 (0x5a9), region = 48  ;;  %s2649_s22 = sand.u32 (!%p2471_p8), 1, %s2364_s25  }
  0x8a   : > { %s2652_s14 = sshll.u32 (!%p2471_p8), %s2649_s22, 5  ;;  %s322_s15 = scalar_lea.sflag (!%p2471_p8), [#allocation3], %s2649_s22 }
  0x8b   : > { %s2656_s18 = scalar_lea.vmem (!%p2471_p8), [#allocation2], %s2652_s14  ;;  %p2845_p0 = scmp.ne.s32.totalorder (!%p2471_p8), %s2832_s30, 0 }
  0x90   : > { %2339 = dma.done.wait (%p2845_p0), %s322_s15, 512  }
  0x91   : > { %2341 = vsyncadd (%p2845_p0), %s322_s15, 4294966784  ;;  %s330_s9 = sand.u32 1, %s2452_s28   ;;  %s2664_s20 = scalar_lea.vmem [#allocation5], %s2652_s14 }
  0x92   : > { %s331_s23 = scalar_lea.sflag [#allocation6], %s330_s9 }
  0x93   : > { %2343 = dma.done.wait (%p2845_p0), %s331_s23, 512  }
  0x94   : > { %2345 = vsyncadd (%p2845_p0), %s331_s23, 4294966784  ;;  %p2846_p8 = scmp.eq.s32.totalorder %s2452_s28, 0 }
  0x96   : > { %2347 = dma.done.wait (%p2846_p8), [#allocation6], 8192   ;;  %p2847_p11 = pmov %p2846_p8 }
  0x97   : > { %p2848_p1 = pmov %p2846_p8 }
  0x98   : > { %2349 = vsyncadd (%p2847_p11), [#allocation6], 4294959104 }
  0x99   : > { %2351 = dma.done.wait (%p2848_p1), [#allocation9], 1024   ;;  %p2849_p12 = pmov %p2848_p1 }
  0x9a   : > { %v2382_v0 = vmov 0   ;;  %s1868_s30 = sshll.u32 %s2452_s28, 2  ;;  %v395_v1 = vld [vmem:[#allocation7] sm:$0xff]  ;;  %v396_v3 = vld [vmem:[#allocation7 + $0x8] sm:$0xff]  ;;  %v461_v4 = vlaneseq  ;;  %v2383_v5 = vmov 1966171168  }
  0x9b   : > { %2353 = vsyncadd (%p2849_p12), [#allocation9], 4294966272  ;;  %928 = vmatprep.mubr.bf16.mxu0 %v2382_v0  ;;  %969 = vmatprep.mubr.bf16.mxu1 %v2382_v0  ;;  %v399_v2 = vld [vmem:[#allocation7 + $0x20] sm:$0xff]  ;;  %p2681_p2 = scmp.lt.s32.totalorder %s1868_s30, 7  ;;  %v513_v6 = vunpack.c.l.s4 %v2383_v5  ;;  %v400_v8 = vld [vmem:[#allocation7 + $0x28] sm:$0xff]  ;;  %vm566_vm0 = vcmask 1041409  }
  0x9c   : > { %v1874_v7 = vcombine.high %v395_v1, %v399_v2  ;;  %v1873_v9 = vcombine.low %v395_v1, %v399_v2  ;;  %v403_v10 = vld [vmem:[#allocation7 + $0x40] sm:$0xff]  ;;  %v1876_v12 = vcombine.high %v396_v3, %v400_v8  ;;  %v1875_v13 = vcombine.low %v396_v3, %v400_v8  ;;  %v404_v15 = vld [vmem:[#allocation7 + $0x48] sm:$0xff]  ;;  %s381_s10 = scalar_lea.vmem [#allocation10], %s2652_s14  ;;  %s1967_s15 = sshll.u32 %s2452_s28, 9 }
  0x9d   : > { %v407_v11 = vld [vmem:[#allocation7 + $0x60] sm:$0xff]  ;;  %v408_v16 = vld [vmem:[#allocation7 + $0x68] sm:$0xff]  ;;  %s2860_s30 = smov (!%p2681_p2, %s1868_s30), 7  ;;  %v2687_v23 = vshrl.u32 %v461_v4, 7  ;;  %v514_v24 = vunpack.c.0.s8 %v513_v6  ;;  %vm569_vm1 = vcmask 1042434   ;;  %vm572_vm2 = vcmask 1043459   ;;  %s2770_s14 = scalar_lea.hbm %s2821_s7, %s1967_s15 }
  0x9e   : > { %v1882_v14 = vcombine.high %v403_v10, %v407_v11  ;;  %v411_v17 = vld [vmem:[#allocation7 + $0x80] sm:$0xff]  ;;  %896 = vmatprep.subr.bf16.mxu0 %v1874_v7  ;;  %v1884_v18 = vcombine.high %v404_v15, %v408_v16  ;;  %v412_v20 = vld [vmem:[#allocation7 + $0x88] sm:$0xff]  ;;  %937 = vmatprep.subr.bf16.mxu1 %v1876_v12  ;;  %v1881_v22 = vcombine.low %v403_v10, %v407_v11  ;;  %s385_s5 = scalar_lea.vmem %s2814_s0, %s2860_s30  ;;  %vm2385_vm3 = vmmov 0   ;;  %s1725_s1 = sshll.u32 %s381_s10, 4  ;;  %s2765_s1 = int_to_ptr.vmem [resolvable:$true] %s1725_s1 }
  0x9f   : > { %v415_v19 = vld [vmem:[#allocation7 + $0xa0] sm:$0xff]  ;;  %v416_v21 = vld [vmem:[#allocation7 + $0xa8] sm:$0xff]  ;;  %897 = vmatpush1.bf16.msra.mxu0 %v1873_v9  ;;  %938 = vmatpush1.bf16.msra.mxu1 %v1875_v13  ;;  %v1883_v25 = vcombine.low %v404_v15, %v408_v16  ;;  %v517_v33 = vsub.s32 %v514_v24, %v2687_v23  ;;  %v1869_v39 = vld.sshfl [vmem:[%s385_s5] sm:$0x1 pattern:$0x75316420] }
  0xa0   : > { %898 = vmatprep.subr.bf16.mxu0 %v1882_v14  ;;  %v1890_v26 = vcombine.high %v411_v17, %v415_v19  ;;  %939 = vmatprep.subr.bf16.mxu1 %v1884_v18  ;;  %v1892_v27 = vcombine.high %v412_v20, %v416_v21  ;;  %v419_v28 = vld [vmem:[#allocation7 + $0xc0] sm:$0xff]  ;;  %v420_v30 = vld [vmem:[#allocation7 + $0xc8] sm:$0xff]  ;;  %v1889_v32 = vcombine.low %v411_v17, %v415_v19  ;;  %v1870_v42 = vld.sshfl [vmem:[%s385_s5 + $0x1] sm:$0x1 pattern:$0x75316420] }
  0xa1   : > { %v423_v29 = vld [vmem:[#allocation7 + $0xe0] sm:$0xff]  ;;  %v424_v31 = vld [vmem:[#allocation7 + $0xe8] sm:$0xff]  ;;  %v1891_v34 = vcombine.low %v412_v20, %v416_v21  ;;  %v1871_v44 = vld.sshfl [vmem:[%s385_s5 + $0x2] sm:$0x1 pattern:$0x75316420]  ;;  %v532_v45 = vrot.slane %v1870_v42, %v517_v33  ;;  %v518_v53 = vrot.slane %v1869_v39, %v517_v33 }
  0xa2   : > { %v1898_v35 = vcombine.high %v419_v28, %v423_v29  ;;  %v1900_v36 = vcombine.high %v420_v30, %v424_v31  ;;  %v427_v37 = vld [vmem:[#allocation7 + $0x100] sm:$0xff]  ;;  %v428_v40 = vld [vmem:[#allocation7 + $0x108] sm:$0xff]  ;;  %v1897_v43 = vcombine.low %v419_v28, %v423_v29  ;;  %v1899_v46 = vcombine.low %v420_v30, %v424_v31  ;;  %v1872_v48 = vld.sshfl [vmem:[%s385_s5 + $0x3] sm:$0x1 pattern:$0x75316420] }
  0xa3   : > { %899 = vmatpush1.bf16.msra.mxu0 %v1881_v22  ;;  %940 = vmatpush1.bf16.msra.mxu1 %v1883_v25  ;;  %v431_v38 = vld [vmem:[#allocation7 + $0x120] sm:$0xff]  ;;  %v432_v41 = vld [vmem:[#allocation7 + $0x128] sm:$0xff]  ;;  %v546_v49 = vrot.slane %v1871_v44, %v517_v33  ;;  %v560_v54 = vrot.slane %v1872_v48, %v517_v33  ;;  %v562_v55 = vunpack.c.l.b16 %v532_v45  ;;  %v561_v2 = vunpack.c.l.b16 %v518_v53  ;;  %v397_v19 = vld [vmem:[#allocation7 + $0x10] sm:$0xff]  ;;  %s1712_s28 = scalar_lea.sflag [#allocation4], %s2649_s22  ;;  %s2294_s23 = scalar_lea.vmem %s2765_s1, 512 }
  0xa4   : > { %900 = vmatprep.subr.bf16.mxu0 %v1890_v26  ;;  %941 = vmatprep.subr.bf16.mxu1 %v1892_v27  ;;  %v1906_v47 = vcombine.high %v427_v37, %v431_v38  ;;  %v1908_v50 = vcombine.high %v428_v40, %v432_v41  ;;  %v435_v51 = vld [vmem:[#allocation7 + $0x140] sm:$0xff]  ;;  %v436_v56 = vld [vmem:[#allocation7 + $0x148] sm:$0xff]  ;;  %v1905_v58 = vcombine.low %v427_v37, %v431_v38  ;;  %v401_v20 = vld [vmem:[#allocation7 + $0x30] sm:$0xff]  ;;  %vm1328_vm4 = vcmask 130048   ;;  %p2295_p13 = scmp.ne.s32.totalorder %s2765_s1, %s2294_s23  ;;  %p2851_p6 = scmp.ne.s32.totalorder %s2840_s12, 0 }
  0xa5   : > { %v439_v52 = vld [vmem:[#allocation7 + $0x160] sm:$0xff]  ;;  %v440_v57 = vld [vmem:[#allocation7 + $0x168] sm:$0xff]  ;;  %v1907_v59 = vcombine.low %v428_v40, %v432_v41  ;;  %v563_v61 = vunpack.c.l.b16 %v546_v49  ;;  %v564_v3 = vunpack.c.l.b16 %v560_v54  ;;  %v565_v4 = vrot.slane %v562_v55, 7  ;;  %v398_v25 = vld [vmem:[#allocation7 + $0x18] sm:$0xff] }
  0xa6   : > { %v1914_v60 = vcombine.high %v435_v51, %v439_v52  ;;  %v1916_v62 = vcombine.high %v436_v56, %v440_v57  ;;  %v443_v63 = vld [vmem:[#allocation7 + $0x180] sm:$0xff]  ;;  %v444_v5 = vld [vmem:[#allocation7 + $0x188] sm:$0xff]  ;;  %v1913_v7 = vcombine.low %v435_v51, %v439_v52  ;;  %v1915_v8 = vcombine.low %v436_v56, %v440_v57  ;;  %v402_v26 = vld [vmem:[#allocation7 + $0x38] sm:$0xff]  ;;  %p2296_p10 = pnand %p2295_p13, %p2851_p6 }
  0xa7   : > { %901 = vmatpush1.bf16.msra.mxu0 %v1889_v32  ;;  %942 = vmatpush1.bf16.msra.mxu1 %v1891_v34  ;;  %v447_v1 = vld [vmem:[#allocation7 + $0x1a0] sm:$0xff]  ;;  %v448_v6 = vld [vmem:[#allocation7 + $0x1a8] sm:$0xff]  ;;  %v568_v11 = vrot.slane %v563_v61, 6  ;;  %v567_v16 = vsel %vm566_vm0, %v565_v4, %v561_v2  ;;  %v571_v17 = vrot.slane %v564_v3, 5  ;;  %v405_v30 = vld [vmem:[#allocation7 + $0x50] sm:$0xff]  ;;  %v1878_v33 = vcombine.high %v397_v19, %v401_v20 }
  0xa8   : > { %902 = vmatprep.subr.bf16.mxu0 %v1898_v35  ;;  %943 = vmatprep.subr.bf16.mxu1 %v1900_v36  ;;  %v1922_v9 = vcombine.high %v443_v63, %v447_v1  ;;  %v451_v10 = vld [vmem:[#allocation7 + $0x1c0] sm:$0xff]  ;;  %v1924_v12 = vcombine.high %v444_v5, %v448_v6  ;;  %v452_v14 = vld [vmem:[#allocation7 + $0x1c8] sm:$0xff]  ;;  %v1921_v18 = vcombine.low %v443_v63, %v447_v1  ;;  %v409_v31 = vld [vmem:[#allocation7 + $0x70] sm:$0xff]  ;;  %p2297_p4 = pneg %p2296_p10 }
  0xa9   : > { %v455_v13 = vld [vmem:[#allocation7 + $0x1e0] sm:$0xff]  ;;  %v456_v15 = vld [vmem:[#allocation7 + $0x1e8] sm:$0xff]  ;;  %v1923_v21 = vcombine.low %v444_v5, %v448_v6  ;;  %v570_v24 = vsel %vm569_vm1, %v568_v11, %v567_v16  ;;  %v406_v34 = vld [vmem:[#allocation7 + $0x58] sm:$0xff]  ;;  %v1880_v36 = vcombine.high %v398_v25, %v402_v26  ;;  %v1877_v38 = vcombine.low %v397_v19, %v401_v20 }
  0xaa   : > { %v1930_v22 = vcombine.high %v451_v10, %v455_v13  ;;  %v1932_v27 = vcombine.high %v452_v14, %v456_v15  ;;  %v1929_v28 = vcombine.low %v451_v10, %v455_v13  ;;  %v573_v29 = vsel %vm572_vm2, %v571_v17, %v570_v24  ;;  %v410_v35 = vld [vmem:[#allocation7 + $0x78] sm:$0xff]  ;;  %v413_v42 = vld [vmem:[#allocation7 + $0x90] sm:$0xff] }
  0xab   : > { %903 = vmatpush1.bf16.msra.mxu0 %v1897_v43  ;;  %944 = vmatpush1.bf16.msra.mxu1 %v1899_v46  ;;  %v1931_v32 = vcombine.low %v452_v14, %v456_v15  ;;  %v2695_v37 = vpack.c.b16 %v573_v29, %v573_v29  ;;  %v1879_v39 = vcombine.low %v398_v25, %v402_v26  ;;  %v417_v43 = vld [vmem:[#allocation7 + $0xb0] sm:$0xff]  ;;  %v414_v44 = vld [vmem:[#allocation7 + $0x98] sm:$0xff]  ;;  %v2146_v29 = vld [vmem:[%s2656_s18] sm:$0xff]  }
  0xac   : > { %904 = vmatprep.subr.bf16.mxu0 %v1906_v47  ;;  %945 = vmatprep.subr.bf16.mxu1 %v1908_v50  ;;  %v1886_v40 = vcombine.high %v405_v30, %v409_v31  ;;  %v1888_v41 = vcombine.high %v406_v34, %v410_v35  ;;  %v418_v45 = vld [vmem:[#allocation7 + $0xb8] sm:$0xff]  ;;  %v1885_v46 = vcombine.low %v405_v30, %v409_v31  ;;  %v421_v50 = vld [vmem:[#allocation7 + $0xd0] sm:$0xff]  ;;  %v2384_v30 = vmov 0.0  }
  0xad   : > { %v1887_v47 = vcombine.low %v406_v34, %v410_v35  ;;  %v1894_v48 = vcombine.high %v413_v42, %v417_v43  ;;  %v1896_v49 = vcombine.high %v414_v44, %v418_v45  ;;  %v425_v51 = vld [vmem:[#allocation7 + $0xf0] sm:$0xff]  ;;  %v422_v52 = vld [vmem:[#allocation7 + $0xd8] sm:$0xff]  ;;  %v1893_v54 = vcombine.low %v413_v42, %v417_v43 }
  0xae   : > { %v426_v53 = vld [vmem:[#allocation7 + $0xf8] sm:$0xff]  ;;  %v1895_v55 = vcombine.low %v414_v44, %v418_v45  ;;  %v1902_v56 = vcombine.high %v421_v50, %v425_v51  ;;  %v437_v2 = vld [vmem:[#allocation7 + $0x150] sm:$0xff]  ;;  %v463_v31 = vsub.s32 0, %v2687_v23  ;;  %v2386_v34 = vmov 1983009808  }
  0xaf   : > { %905 = vmatpush1.bf16.msra.mxu0 %v1905_v58  ;;  %946 = vmatpush1.bf16.msra.mxu1 %v1907_v59  ;;  %v1904_v57 = vcombine.high %v422_v52, %v426_v53  ;;  %v429_v58 = vld [vmem:[#allocation7 + $0x110] sm:$0xff]  ;;  %v434_v61 = vld [vmem:[#allocation7 + $0x138] sm:$0xff]  ;;  %v1903_v63 = vcombine.low %v422_v52, %v426_v53  ;;  %v1062_v35 = vunpack.c.l.s4 %v2386_v34 }
  0xb0   : > { %906 = vmatprep.subr.bf16.mxu0 %v1914_v60  ;;  %947 = vmatprep.subr.bf16.mxu1 %v1916_v62  ;;  %v433_v59 = vld [vmem:[#allocation7 + $0x130] sm:$0xff]  ;;  %v430_v60 = vld [vmem:[#allocation7 + $0x118] sm:$0xff]  ;;  %v1901_v62 = vcombine.low %v421_v50, %v425_v51 }
  0xb1   : > { %v1910_v1 = vcombine.high %v429_v58, %v433_v59  ;;  %v441_v3 = vld [vmem:[#allocation7 + $0x170] sm:$0xff]  ;;  %v438_v4 = vld [vmem:[#allocation7 + $0x158] sm:$0xff]  ;;  %v1909_v6 = vcombine.low %v429_v58, %v433_v59 }
  0xb2   : > { %v442_v5 = vld [vmem:[#allocation7 + $0x178] sm:$0xff]  ;;  %v445_v10 = vld [vmem:[#allocation7 + $0x190] sm:$0xff]  ;;  %v1917_v14 = vcombine.low %v437_v2, %v441_v3 }
  0xb3   : > { %907 = vmatpush1.bf16.msra.mxu0 %v1913_v7  ;;  %948 = vmatpush1.bf16.msra.mxu1 %v1915_v8  ;;  %v1911_v7 = vcombine.low %v430_v60, %v434_v61  ;;  %v1918_v8 = vcombine.high %v437_v2, %v441_v3  ;;  %v449_v11 = vld [vmem:[#allocation7 + $0x1b0] sm:$0xff]  ;;  %v450_v13 = vld [vmem:[#allocation7 + $0x1b8] sm:$0xff]  ;;  %v1919_v15 = vcombine.low %v438_v4, %v442_v5 }
  0xb4   : > { %908 = vmatprep.subr.bf16.mxu0 %v1922_v9  ;;  %949 = vmatprep.subr.bf16.mxu1 %v1924_v12  ;;  %v1920_v9 = vcombine.high %v438_v4, %v442_v5  ;;  %v446_v12 = vld [vmem:[#allocation7 + $0x198] sm:$0xff]  ;;  %v1926_v16 = vcombine.high %v445_v10, %v449_v11  ;;  %v457_v19 = vld [vmem:[#allocation7 + $0x1f0] sm:$0xff]  ;;  %v2387_v5 = vmov 1934713408  }
  0xb5   : > { %v1928_v17 = vcombine.high %v446_v12, %v450_v13  ;;  %v454_v20 = vld [vmem:[#allocation7 + $0x1d8] sm:$0xff]  ;;  %v1927_v24 = vcombine.low %v446_v12, %v450_v13 }
  0xb7   : > { %909 = vmatpush1.bf16.msra.mxu0 %v1921_v18  ;;  %950 = vmatpush1.bf16.msra.mxu1 %v1923_v21  ;;  %v453_v18 = vld [vmem:[#allocation7 + $0x1d0] sm:$0xff]  ;;  %v458_v21 = vld [vmem:[#allocation7 + $0x1f8] sm:$0xff] }
  0xb8   : > { %910 = vmatprep.subr.bf16.mxu0 %v1930_v22  ;;  %951 = vmatprep.subr.bf16.mxu1 %v1932_v27  ;;  %v1925_v22 = vcombine.low %v445_v10, %v449_v11  ;;  %v1934_v25 = vcombine.high %v453_v18, %v457_v19  ;;  %v1936_v26 = vcombine.high %v454_v20, %v458_v21 }
  0xb9   : > { %v1933_v27 = vcombine.low %v453_v18, %v457_v19 }
  0xbb   : > { %911 = vmatpush1.bf16.msra.mxu0 %v1929_v28  ;;  %952 = vmatpush1.bf16.msra.mxu1 %v1931_v32  ;;  %v1935_v28 = vcombine.low %v454_v20, %v458_v21  ;;  %v459_v32 = vld [vmem:[%s2818_s4] sm:$0xff] }
  0xbc   : > { %978 = vmatprep.subr.bf16.mxu0 %v1878_v33  ;;  %1019 = vmatprep.subr.bf16.mxu1 %v1880_v36  ;;  %v471_v33 = vsub.s32 2, %v2687_v23  ;;  %v467_v36 = vsub.s32 1, %v2687_v23 }
  0xbe   : > { %929 = vmatmul.mubr.bf16.vlgmr.msra.gmra.mrb[0].mxu0 %v2695_v37  ;;  %970 = vmatmul.mubr.bf16.vlgmr.msra.gmra.mrb[0].mxu1 %v2695_v37 }
  0xbf   : > { %979 = vmatpush1.bf16.msra.mxu0 %v1877_v38  ;;  %1020 = vmatpush1.bf16.msra.mxu1 %v1879_v39  ;;  %v464_v38 = vrot.slane %v459_v32, %v463_v31  ;;  %v472_v39 = vrot.slane %v459_v32, %v471_v33 }
  0xc0   : > { %980 = vmatprep.subr.bf16.mxu0 %v1886_v40  ;;  %1021 = vmatprep.subr.bf16.mxu1 %v1888_v41  ;;  %v1063_v40 = vunpack.c.0.s8 %v1062_v35  ;;  %v468_v41 = vrot.slane %v459_v32, %v467_v36 }
  0xc1   : > { %1010 = vmatprep.mubr.bf16.mxu0 %v2382_v0  ;;  %1051 = vmatprep.mubr.bf16.mxu1 %v2382_v0  ;;  %v1912_v0 = vcombine.high %v430_v60, %v434_v61 }
  0xc3   : > { %981 = vmatpush1.bf16.msra.mxu0 %v1885_v46  ;;  %1022 = vmatpush1.bf16.msra.mxu1 %v1887_v47 }
  0xc4   : > { %982 = vmatprep.subr.bf16.mxu0 %v1894_v48  ;;  %1023 = vmatprep.subr.bf16.mxu1 %v1896_v49  ;;  %v1066_v48 = vsub.s32 %v1063_v40, %v2687_v23 }
  0xc7   : > { %983 = vmatpush1.bf16.msra.mxu0 %v1893_v54  ;;  %1024 = vmatpush1.bf16.msra.mxu1 %v1895_v55 }
  0xc8   : > { %984 = vmatprep.subr.bf16.mxu0 %v1902_v56  ;;  %1025 = vmatprep.subr.bf16.mxu1 %v1904_v57 }
  0xcb   : > { %985 = vmatpush1.bf16.msra.mxu0 %v1901_v62  ;;  %1026 = vmatpush1.bf16.msra.mxu1 %v1903_v63  ;;  %v479_v62 = vsub.s32 4, %v2687_v23  ;;  %v487_v63 = vsub.s32 6, %v2687_v23 }
  0xcc   : > { %986 = vmatprep.subr.bf16.mxu0 %v1910_v1  ;;  %1027 = vmatprep.subr.bf16.mxu1 %v1912_v0  ;;  %v483_v1 = vsub.s32 5, %v2687_v23  ;;  %v491_v0 = vsub.s32 7, %v2687_v23 }
  0xcd   : > { %v480_v2 = vrot.slane %v459_v32, %v479_v62  ;;  %v488_v3 = vrot.slane %v459_v32, %v487_v63 }
  0xce   : > { %v484_v4 = vrot.slane %v459_v32, %v483_v1 }
  0xcf   : > { %987 = vmatpush1.bf16.msra.mxu0 %v1909_v6  ;;  %1028 = vmatpush1.bf16.msra.mxu1 %v1911_v7  ;;  %v1095_v6 = vunpack.c.l.s4 %v2387_v5  ;;  %v492_v7 = vrot.slane %v459_v32, %v491_v0 }
  0xd0   : > { %988 = vmatprep.subr.bf16.mxu0 %v1918_v8  ;;  %1029 = vmatprep.subr.bf16.mxu1 %v1920_v9 }
  0xd3   : > { %989 = vmatpush1.bf16.msra.mxu0 %v1917_v14  ;;  %1030 = vmatpush1.bf16.msra.mxu1 %v1919_v15 }
  0xd4   : > { %990 = vmatprep.subr.bf16.mxu0 %v1926_v16  ;;  %1031 = vmatprep.subr.bf16.mxu1 %v1928_v17  ;;  %v1096_v16 = vunpack.c.0.s8 %v1095_v6 }
  0xd7   : > { %991 = vmatpush1.bf16.msra.mxu0 %v1925_v22  ;;  %1032 = vmatpush1.bf16.msra.mxu1 %v1927_v24 }
  0xd8   : > { %992 = vmatprep.subr.bf16.mxu0 %v1934_v25  ;;  %1033 = vmatprep.subr.bf16.mxu1 %v1936_v26  ;;  %v1099_v25 = vsub.s32 %v1096_v16, %v2687_v23 }
  0xdb   : > { %993 = vmatpush1.bf16.msra.mxu0 %v1933_v27  ;;  %1034 = vmatpush1.bf16.msra.mxu1 %v1935_v28 }
  0xdc   : > { %1994 = vmatprep.subr.bf16.mxu1 %v2384_v30  ;;  %2018 = vmatprep.subr.bf16.mxu0 %v2384_v30 }
  0xde   : > { %1011 = vmatmul.mubr.bf16.vlgmr.msra.gmra.mrb[4].mxu0 %v2695_v37  ;;  %1052 = vmatmul.mubr.bf16.vlgmr.msra.gmra.mrb[4].mxu1 %v2695_v37  ;;  %v475_v37 = vsub.s32 3, %v2687_v23  ;;  %v2148_v23 = vld [vmem:[%s2656_s18 + $0x10] sm:$0xff]  }
  0xdf   : > { %1996 = vmatprep.mubr.msk.bf16.mxu1 %vm2385_vm3, %v2384_v30  ;;  %2020 = vmatprep.mubr.msk.bf16.mxu0 %vm2385_vm3, %v2384_v30 }
  0xe0   : > { %v476_v42 = vrot.slane %v459_v32, %v475_v37 }
  0xe4   : > { %1995 = vmatpush3.bf16.xpose.msra.mxu1 %v2146_v29 }
  0xe5   : > { %2000 = vmatprep.subr.bf16.mxu1 %v2384_v30 }
 0x191   : > { %v930_v43 = vpop.f32.mrb[0].mxu0  ;;  %v971_v45 = vpop.f32.mrb[0].mxu1 }
 0x192   : > { %v931_v44 = vadd.f32 %v930_v43, %v464_v38  ;;  %v932_v46 = vpop.f32.mrb[1].mxu0  ;;  %v972_v47 = vadd.f32 %v971_v45, %v472_v39  ;;  %v973_v50 = vpop.f32.mrb[1].mxu1  ;;  %v2147_v38 = vld [vmem:[%s2656_s18 + $0x8] sm:$0xff]  }
 0x193   : > { %v933_v49 = vadd.f32 %v932_v46, %v468_v41  ;;  %v934_v51 = vpop.f32.mrb[2].mxu0  ;;  %v974_v52 = vadd.f32 %v973_v50, %v476_v42  ;;  %v975_v53 = vpop.f32.mrb[2].mxu1  ;;  %v2149_v41 = vld [vmem:[%s2656_s18 + $0x18] sm:$0xff]  }
 0x194   : > { %v935_v54 = vpop.f32.mrb[3].mxu0  ;;  %v1060_v55 = vcombine.low %v931_v44, %v972_v47  ;;  %v976_v56 = vpop.f32.mrb[3].mxu1 }
 0x195   : > { %v1068_v57 = vcombine.low %v933_v49, %v974_v52 }
 0x196   : > { %v1067_v58 = vrot.slane %v1060_v55, %v1066_v48 }
 0x197   : > { %v1075_v59 = vrot.slane %v1068_v57, %v1066_v48 }
 0x199   : > { %v1092_v60 = vcombine.low %v1067_v58, %v1075_v59  ;;  %v1093_v61 = vcombine.high %v1067_v58, %v1075_v59 }
 0x19b   : > { %v1100_v29 = vrot.slane %v1092_v60, %v1099_v25  ;;  %v1107_v31 = vrot.slane %v1093_v61, %v1099_v25 }
 0x1b1   : > { %v1012_v8 = vpop.f32.mrb[4].mxu0  ;;  %v1053_v10 = vpop.f32.mrb[4].mxu1 }
 0x1b2   : > { %v1013_v9 = vadd.f32 %v1012_v8, %v480_v2  ;;  %v1014_v11 = vpop.f32.mrb[5].mxu0  ;;  %v1054_v12 = vadd.f32 %v1053_v10, %v488_v3  ;;  %v1055_v14 = vpop.f32.mrb[5].mxu1 }
 0x1b3   : > { %v1015_v13 = vadd.f32 %v1014_v11, %v484_v4  ;;  %v1016_v15 = vpop.f32.mrb[6].mxu0  ;;  %v1056_v17 = vadd.f32 %v1055_v14, %v492_v7  ;;  %v1057_v18 = vpop.f32.mrb[6].mxu1 }
 0x1b4   : > { %v1017_v19 = vpop.f32.mrb[7].mxu0  ;;  %v1076_v20 = vcombine.low %v1013_v9, %v1054_v12  ;;  %v1058_v21 = vpop.f32.mrb[7].mxu1 }
 0x1b5   : > { %v1084_v22 = vcombine.low %v1015_v13, %v1056_v17 }
 0x1b6   : > { %v1083_v24 = vrot.slane %v1076_v20, %v1066_v48 }
 0x1b7   : > { %v1091_v26 = vrot.slane %v1084_v22, %v1066_v48 }
 0x1b9   : > { %v1108_v27 = vcombine.low %v1083_v24, %v1091_v26  ;;  %v1109_v28 = vcombine.high %v1083_v24, %v1091_v26  ;;  %v2151_v26 = vld [vmem:[%s2664_s20 + $0x8] sm:$0xff]  }
 0x1bb   : > { %v1116_v32 = vrot.slane %v1108_v27, %v1099_v25  ;;  %v1123_v33 = vrot.slane %v1109_v28, %v1099_v25  ;;  %v2150_v25 = vld [vmem:[%s2664_s20] sm:$0xff]  }
 0x1bc   : > { %2019 = vmatpush3.bf16.msra.mxu0 %v2150_v25 }
 0x1bd   : > { %v1124_v34 = vcombine.low %v1100_v29, %v1116_v32  ;;  %v1125_v35 = vcombine.high %v1100_v29, %v1116_v32  ;;  %v1126_v36 = vcombine.low %v1107_v31, %v1123_v33  ;;  %v1127_v37 = vcombine.high %v1107_v31, %v1123_v33  ;;  %2030 = vmatprep.subr.bf16.mxu0 %v2384_v30  ;;  %v2152_v32 = vld [vmem:[%s2664_s20 + $0x10] sm:$0xff]  }
 0x1bf   : > { %v1128_v39 = vpack.c.bf16 %v1124_v34, %v1124_v34  ;;  %v1129_v40 = vpack.c.bf16 %v1125_v35, %v1125_v35  ;;  %v1130_v42 = vpack.c.bf16 %v1126_v36, %v1126_v36  ;;  %v1131_v43 = vpack.c.bf16 %v1127_v37, %v1127_v37  ;;  %v2154_v34 = vld [vmem:[#allocation8] sm:$0xff]  }
 0x1c1   : > { %1997 = vmatmul.mubr.bf16.vlgmr.msra.gmra.mrb[8].mxu1 %v1128_v39 }
 0x1c2   : > { %2001 = vmatpush3.bf16.xpose.msra.mxu1 %v2147_v38  ;;  %2002 = vmatprep.mubr.msk.bf16.mxu1 %vm2385_vm3, %v2384_v30  ;;  %v2153_v38 = vld [vmem:[%s2664_s20 + $0x18] sm:$0xff]   ;;  %s2388_s20 = smov [#allocation10]  }
 0x1c3   : > { %2006 = vmatprep.subr.bf16.mxu1 %v2384_v30  ;;  %s2298_s30 = sshll.u32 %s2388_s20, 4  ;;  %s2299_s30 = int_to_ptr.vmem [resolvable:$false] %s2298_s30 }
 0x1c4   : > { %s2300_s21 = scalar_lea.vmem %s2299_s30, 1024  ;;  %p2301_p7 = scmp.lt.s32.totalorder %s2765_s1, %s2299_s30 }
 0x1c5   : > { %p2302_p3 = scmp.lt.s32.totalorder %s2300_s21, %s2294_s23 }
 0x1c7   : > { %p2303_p5 = por %p2302_p3, %p2301_p7 }
 0x1c9   : > { %2003 = vmatmul.mubr.bf16.vlgmr.msra.gmra.mrb[12].mxu1 %v1129_v40  ;;  %p2304_p9 = pnand %p2303_p5, %p2297_p4 }
 0x1ca   : > { %2007 = vmatpush3.bf16.xpose.msra.mxu1 %v2148_v23  ;;  %2008 = vmatprep.mubr.msk.bf16.mxu1 %vm2385_vm3, %v2384_v30 }
 0x1cb   : > { %2012 = vmatprep.subr.bf16.mxu1 %v2384_v30 }
 0x1d1   : > { %2009 = vmatmul.mubr.bf16.vlgmr.msra.gmra.mrb[16].mxu1 %v1130_v42 }
 0x1d2   : > { %2013 = vmatpush3.bf16.xpose.msra.mxu1 %v2149_v41  ;;  %2014 = vmatprep.mubr.msk.bf16.mxu1 %vm2385_vm3, %v2384_v30 }
 0x1d3   : > { %2024 = vmatprep.subr.bf16.mxu1 %v2384_v30 }
 0x1d9   : > { %2015 = vmatmul.mubr.bf16.vlgmr.msra.gmra.mrb[20].mxu1 %v1131_v43  ;;  %v2155_v43 = vld [vmem:[#allocation8 + $0x8] sm:$0xff]  }
 0x1da   : > { %2026 = vmatprep.mubr.msk.bf16.mxu1 %vm2385_vm3, %v2384_v30  ;;  %2025 = vmatpush3.bf16.msra.mxu1 %v2151_v26 }
 0x1db   : > { %2036 = vmatprep.subr.bf16.mxu1 %v2384_v30 }
 0x294   : > { %v1180_v44 = vpop.f32.mrb[8].mxu1 }
 0x295   : > { %v1324_v45 = vmul.f32 0.088388346, %v1180_v44  ;;  %v1998_v46 = vpop.f32.mrb[9].mxu1 }
 0x296   : > { %v1183_v47 = vpop.f32.mrb[10].mxu1 }
 0x297   : > { %v1999_v48 = vpop.f32.mrb[11].mxu1  ;;  %v1329_v49 = vsel %vm1328_vm4, %v1324_v45, -inf  ;;  %v2156_v47 = vld [vmem:[#allocation8 + $0x10] sm:$0xff]  }
 0x298   : > { %1330 = vmax.xlane.f32.xlu0 %v1329_v49  ;;  %v2157_v48 = vld [vmem:[#allocation8 + $0x18] sm:$0xff]   ;;  %v2159_v49 = vld [vmem:[#allocation8 + $0x28] sm:$0xff]  }
 0x29c   : > { %v1226_v50 = vpop.f32.mrb[12].mxu1 }
 0x29d   : > { %v1325_v51 = vmul.f32 0.088388346, %v1226_v50  ;;  %v2004_v52 = vpop.f32.mrb[13].mxu1  ;;  %v2160_v50 = vld [vmem:[#allocation8 + $0x30] sm:$0xff]  }
 0x29e   : > { %v1229_v53 = vpop.f32.mrb[14].mxu1 }
 0x29f   : > { %v2005_v54 = vpop.f32.mrb[15].mxu1  ;;  %v1332_v55 = vsel %vm1328_vm4, %v1325_v51, -inf }
 0x2a0   : > { %1333 = vmax.xlane.f32.xlu0 %v1332_v55 }
 0x2a4   : > { %v1272_v56 = vpop.f32.mrb[16].mxu1 }
 0x2a5   : > { %v1326_v57 = vmul.f32 0.088388346, %v1272_v56  ;;  %v2010_v58 = vpop.f32.mrb[17].mxu1 }
 0x2a6   : > { %v1275_v59 = vpop.f32.mrb[18].mxu1 }
 0x2a7   : > { %v2011_v60 = vpop.f32.mrb[19].mxu1  ;;  %v1335_v61 = vsel %vm1328_vm4, %v1326_v57, -inf }
 0x2a8   : > { %1336 = vmax.xlane.f32.xlu1 %v1335_v61 }
 0x2ac   : > { %v1318_v62 = vpop.f32.mrb[20].mxu1 }
 0x2ad   : > { %v1327_v63 = vmul.f32 0.088388346, %v1318_v62  ;;  %v2016_v1 = vpop.f32.mrb[21].mxu1 }
 0x2ae   : > { %v1321_v0 = vpop.f32.mrb[22].mxu1 }
 0x2af   : > { %v2017_v2 = vpop.f32.mrb[23].mxu1  ;;  %v1338_v3 = vsel %vm1328_vm4, %v1327_v63, -inf }
 0x2b0   : > { %1339 = vmax.xlane.f32.xlu1 %v1338_v3 }
 0x325   : > { %v1331_v4 = vpop.xlane.xlu0 %1330 }
 0x326   : > { %v1341_v5 = vsub.f32 %v1324_v45, %v1331_v4 }
 0x328   : > { %v1345_v6 = vmul.f32 1.442695, %v1341_v5 }
 0x32a   : > { %2162 = vpow2.f32 %v1345_v6  ;;  %v1957_v6 = vld [vmem:[%s2820_s6] ss:$0 sm:$0xff] }
 0x32d   : > { %v1334_v7 = vpop.xlane.xlu0 %1333 }
 0x32e   : > { %v1342_v8 = vsub.f32 %v1325_v51, %v1334_v7  ;;  %v2161_v51 = vld [vmem:[#allocation8 + $0x38] sm:$0xff]  }
 0x330   : > { %v1347_v9 = vmul.f32 1.442695, %v1342_v8 }
 0x332   : > { %2164 = vpow2.f32 %v1347_v9 }
 0x334   : > { %v2163_v10 = vpop.eup %2162 }
 0x335   : > { %v1337_v11 = vpop.xlane.xlu1 %1336  ;;  %v1353_v12 = vsel %vm1328_vm4, %v2163_v10, 0.0 }
 0x336   : > { %v1343_v13 = vsub.f32 %v1326_v57, %v1337_v11  ;;  %1354 = vadd.xlane.f32.xlu0 %v1353_v12 }
 0x338   : > { %v1349_v14 = vmul.f32 1.442695, %v1343_v13 }
 0x33a   : > { %2166 = vpow2.f32 %v1349_v14 }
 0x33c   : > { %v2165_v15 = vpop.eup %2164 }
 0x33d   : > { %v1340_v16 = vpop.xlane.xlu1 %1339  ;;  %v1356_v17 = vsel %vm1328_vm4, %v2165_v15, 0.0 }
 0x33e   : > { %v1344_v18 = vsub.f32 %v1327_v63, %v1340_v16  ;;  %1357 = vadd.xlane.f32.xlu1 %v1356_v17 }
 0x340   : > { %v1351_v19 = vmul.f32 1.442695, %v1344_v18 }
 0x342   : > { %2168 = vpow2.f32 %v1351_v19 }
 0x344   : > { %v2167_v20 = vpop.eup %2166 }
 0x345   : > { %v1359_v21 = vsel %vm1328_vm4, %v2167_v20, 0.0 }
 0x346   : > { %1360 = vadd.xlane.f32.xlu0 %v1359_v21 }
 0x34c   : > { %v2169_v22 = vpop.eup %2168 }
 0x34d   : > { %v1362_v24 = vsel %vm1328_vm4, %v2169_v22, 0.0 }
 0x34e   : > { %1363 = vadd.xlane.f32.xlu1 %v1362_v24 }
 0x3c3   : > { %v1355_v27 = vpop.xlane.xlu0 %1354 }
 0x3c4   : > { %2170 = vrcp.f32 %v1355_v27 }
 0x3cb   : > { %v1358_v28 = vpop.xlane.xlu1 %1357 }
 0x3cc   : > { %2172 = vrcp.f32 %v1358_v28 }
 0x3ce   : > { %v2171_v29 = vpop.eup %2170 }
 0x3cf   : > { %v1369_v31 = vmul.f32 %v2171_v29, %v2163_v10 }
 0x3d1   : > { %v1373_v33 = vpack.c.bf16 %v1369_v31, %v1369_v31 }
 0x3d3   : > { %2021 = vmatmul.mubr.msk.bf16.vlgmr.msra.gmra.mrb[8].mxu0 %vm1328_vm4, %v1373_v33  ;;  %v1361_v35 = vpop.xlane.xlu0 %1360 }
 0x3d4   : > { %2174 = vrcp.f32 %v1361_v35  ;;  %2031 = vmatpush3.bf16.msra.mxu0 %v2152_v32  ;;  %2032 = vmatprep.mubr.msk.bf16.mxu0 %vm2385_vm3, %v2384_v30 }
 0x3d5   : > { %2042 = vmatprep.subr.bf16.mxu0 %v2154_v34 }
 0x3d6   : > { %v2173_v36 = vpop.eup %2172 }
 0x3d7   : > { %v1370_v37 = vmul.f32 %v2173_v36, %v2165_v15 }
 0x3d9   : > { %v1374_v39 = vpack.c.bf16 %v1370_v37, %v1370_v37 }
 0x3db   : > { %2027 = vmatmul.mubr.msk.bf16.vlgmr.msra.gmra.mrb[24].mxu1 %vm1328_vm4, %v1374_v39  ;;  %v1364_v23 = vpop.xlane.xlu1 %1363 }
 0x3dc   : > { %2176 = vrcp.f32 %v1364_v23  ;;  %2037 = vmatpush3.bf16.msra.mxu1 %v2153_v38  ;;  %2038 = vmatprep.mubr.msk.bf16.mxu1 %vm2385_vm3, %v2384_v30  ;;  %v2158_v30 = vld [vmem:[#allocation8 + $0x20] sm:$0xff]  }
 0x3de   : > { %v2175_v40 = vpop.eup %2174 }
 0x3df   : > { %v1371_v41 = vmul.f32 %v2175_v40, %v2167_v20 }
 0x3e1   : > { %v1375_v42 = vpack.c.bf16 %v1371_v41, %v1371_v41 }
 0x3e3   : > { %2033 = vmatmul.mubr.msk.bf16.vlgmr.msra.gmra.mrb[12].mxu0 %vm1328_vm4, %v1375_v42 }
 0x3e4   : > { %2043 = vmatpush3.bf16.msra.mxu0 %v2154_v34 }
 0x3e5   : > { %2044 = vmatprep.subr.bf16.mxu0 %v2155_v43 }
 0x3e6   : > { %v2177_v44 = vpop.eup %2176 }
 0x3e7   : > { %v1372_v45 = vmul.f32 %v2177_v44, %v2169_v22 }
 0x3e8   : > { %2045 = vmatpush3.bf16.msra.mxu0 %v2155_v43 }
 0x3e9   : > { %v1376_v46 = vpack.c.bf16 %v1372_v45, %v1372_v45  ;;  %2046 = vmatprep.subr.bf16.mxu0 %v2156_v47 }
 0x3eb   : > { %2039 = vmatmul.mubr.msk.bf16.vlgmr.msra.gmra.mrb[28].mxu1 %vm1328_vm4, %v1376_v46 }
 0x3ec   : > { %2047 = vmatpush3.bf16.msra.mxu0 %v2156_v47 }
 0x3ed   : > { %2048 = vmatprep.subr.bf16.mxu0 %v2157_v48 }
 0x3f0   : > { %2049 = vmatpush3.bf16.msra.mxu0 %v2157_v48 }
 0x3f1   : > { %2050 = vmatprep.subr.bf16.mxu0 %v2158_v30 }
 0x3f4   : > { %2051 = vmatpush3.bf16.msra.mxu0 %v2158_v30 }
 0x3f5   : > { %2052 = vmatprep.subr.bf16.mxu0 %v2159_v49 }
 0x3f8   : > { %2053 = vmatpush3.bf16.msra.mxu0 %v2159_v49 }
 0x3f9   : > { %2054 = vmatprep.subr.bf16.mxu0 %v2160_v50 }
 0x3fc   : > { %2055 = vmatpush3.bf16.msra.mxu0 %v2160_v50 }
 0x3fd   : > { %2056 = vmatprep.subr.bf16.mxu0 %v2161_v51 }
 0x400   : > { %2057 = vmatpush3.bf16.msra.mxu0 %v2161_v51 }
 0x4a6   : > { %v1428_v52 = vpop.f32.mrb[8].mxu0 }
 0x4a7   : > { %v2022_v53 = vpop.f32.mrb[9].mxu0 }
 0x4a8   : > { %v1431_v54 = vpop.f32.mrb[10].mxu0 }
 0x4a9   : > { %v2023_v55 = vpop.f32.mrb[11].mxu0 }
 0x4ae   : > { %v1477_v56 = vpop.f32.mrb[24].mxu1 }
 0x4af   : > { %v1581_v57 = vpack.c.bf16 %v1477_v56, %v1428_v52  ;;  %v2028_v58 = vpop.f32.mrb[25].mxu1 }
 0x4b0   : > { %v1480_v59 = vpop.f32.mrb[26].mxu1 }
 0x4b1   : > { %v2029_v60 = vpop.f32.mrb[27].mxu1  ;;  %2058 = vmatprep.mubr.bf16.mxu0 %v1581_v57 }
 0x4b6   : > { %v1526_v61 = vpop.f32.mrb[12].mxu0 }
 0x4b7   : > { %v2034_v62 = vpop.f32.mrb[13].mxu0 }
 0x4b8   : > { %v1529_v63 = vpop.f32.mrb[14].mxu0 }
 0x4b9   : > { %v2035_v1 = vpop.f32.mrb[15].mxu0 }
 0x4be   : > { %v1575_v0 = vpop.f32.mrb[28].mxu1 }
 0x4bf   : > { %v1582_v2 = vpack.c.bf16 %v1575_v0, %v1526_v61  ;;  %v2040_v3 = vpop.f32.mrb[29].mxu1 }
 0x4c0   : > { %v1578_v4 = vpop.f32.mrb[30].mxu1 }
 0x4c1   : > { %v2041_v5 = vpop.f32.mrb[31].mxu1  ;;  %2059 = vmatmul.mubr.bf16.vlgmr.msra.gmra.mrb[16].mxu0 %v1582_v2 }
 0x594   : > { %v2060_v7 = vpop.f32.mrb[16].mxu0 }
 0x595   : > { %v1705_v8 = vadd.f32 %v2060_v7, %v1957_v6  ;;  %v1681_v9 = vpop.f32.mrb[17].mxu0 }
 0x596   : > { %v1703_v10 = vadd.f32 %v1957_v6, %v1681_v9  ;;  %v2061_v11 = vpop.f32.mrb[18].mxu0 }
 0x597   : > { %1709 = vst [vmem:[%s381_s10 + $0x10] sm:$0xff] %v1705_v8  ;;  %v1706_v12 = vadd.f32 %v2061_v11, %v1957_v6  ;;  %v1684_v13 = vpop.f32.mrb[19].mxu0 }
 0x598   : > { %1707 = vst [vmem:[%s381_s10] sm:$0xff] %v1703_v10  ;;  %v1704_v14 = vadd.f32 %v1957_v6, %v1684_v13 }
 0x599   : > { %1710 = vst [vmem:[%s381_s10 + $0x18] sm:$0xff] %v1706_v12 }
 0x59a   : > { %1708 = vst [vmem:[%s381_s10 + $0x8] sm:$0xff] %v1704_v14 }
 0x59b   : > { %2307 = shalt.err (!%p2304_p9)
}
 0x59c   : > { %s2308_s29 = scalar_lea.hbm %s2770_s14, 512  ;;  %s2312_s17 = scalar_lea.hbm %s2821_s7, 1024 }
 0x59d   : > { %p2309_p0 = scmp.ne.s32.totalorder %s2770_s14, %s2308_s29  ;;  %p2313_p1 = scmp.lt.u32.totalorder %s2770_s14, %s2821_s7 }
 0x59e   : > { %p2314_p12 = scmp.lt.u32.totalorder %s2312_s17, %s2308_s29  ;;  %p2316_p13 = scmp.lt.u32.totalorder %s2308_s29, %s2770_s14 }
 0x59f   : > { %p2310_p8 = pnand %p2309_p0, %p2851_p6 }
 0x5a0   : > { %p2315_p2 = por %p2314_p12, %p2313_p1 }
 0x5a1   : > { %p2311_p11 = pneg %p2310_p8 }
 0x5a2   : > { %p2317_p10 = por %p2316_p13, %p2315_p2 }
 0x5a4   : > { %p2318_p4 = pnand %p2317_p10, %p2311_p11 }
 0x5a6   : > { %2321 = shalt.err (!%p2318_p4)
}
 0x5a7   : > { %s2389_s11 = smov 128   ;;  %s2390_s10 = smov 8  }
 0x5a8   : > { %2074 = dma.vmem_to_hbm [thread:$0]  (%p2851_p6), %s2765_s1, 512, %s2770_s14, %s1712_s28, %s2389_s11, %s2389_s11, %s2390_s10  }
 0x5a9 PF: > { %s1740_s15 = sand.u32 1, %s2360_s24   ;;  %p2852_p7 = scmp.ne.s32.totalorder %s2833_s8, 0 }
 0x5aa   : > { %p2853_p3 = scmp.ge.s32.totalorder %s2372_s27, 2  ;;  %s1741_s18 = scalar_lea.sflag [#allocation4], %s1740_s15 }
 0x5ac   : > { %p2091_p5 = pnand %p2853_p3, %p2852_p7 }
 0x5ae   : > { %2355 = dma.done.wait (!%p2091_p5), %s1741_s18, 512  }
 0x5af   : > { %2357 = vsyncadd (!%p2091_p5), %s1741_s18, 4294966784  ;;  %s2854_s9 = sld [smem:[#allocation16_spill]]  ;;  %p24_p9 = scmp.ge.s32.totalorder %s2544_s13, 4  }
 0x5b0   : > { %s2855_s24 = smov %s2364_s25  ;;  %s2856_s25 = smov %s2368_s26 }
 0x5b1   : > { %s2858_s27 = smov %s2544_s13  ;;  %26 = sbr.rel (!%p24_p9) target bundleno = 12 (0xc), region = 117 }
 0x5b5   : > { %s2857_s26 = smov %s2854_s9 }
 0x5b8   :  { %1746 = vsyncpa [#allocation3], 1 }
 0x5b9   :  { %1748 = vsyncpa [#allocation3 + $0x1], 1 }
 0x5ba   :  { %1749 = vsyncpa [#allocation6], 1 }
 0x5bb   :  { %1751 = vsyncpa [#allocation6 + $0x1], 1 }
 0x5bc   :  { %1752 = vsyncpa [#allocation9], 1 }
 0x5bd   :  { %1753 = vsyncpa [#allocation4], 1 }
 0x5be   :  { %1755 = vsyncpa [#allocation4 + $0x1], 1 }

// kernel: tpu_custom_call.1
= control target key start
LH: loop header
LB: loop body
LE: loop exit
PB: predicated region body
PF: predicated region fallthrough
CT: control target
= control target key end

     0   :  { %s2814_s0 = inlined_call_operand.vmem [shape: bf16[8,1,128], index: 0, kind: input, shape index: {}]   ;;  %s2815_s1 = inlined_call_operand.hbm [shape: bf16[8,16,128], index: 1, kind: input, shape index: {}]   ;;  %s2816_s2 = inlined_call_operand.hbm [shape: bf16[8,16,128], index: 2, kind: input, shape index: {}]   ;;  %s2817_s3 = inlined_call_operand.hbm [shape: bf16[128,1024], index: 3, kind: input, shape index: {}]   ;;  %s2818_s4 = inlined_call_operand.vmem [shape: f32[1,1024], index: 4, kind: input, shape index: {}]   ;;  %s2819_s5 = inlined_call_operand.hbm [shape: bf16[128,128], index: 5, kind: input, shape index: {}]   ;;  %s2820_s6 = inlined_call_operand.vmem [shape: f32[1,128], index: 6, kind: input, shape index: {}]   ;;  %s2821_s7 = inlined_call_operand.hbm [shape: f32[8,8,128], index: 7, kind: output, shape index: {}]  }
   0x1   :  { %2829 = sst [smem:[#allocation17_spill]] %s2815_s1 }
   0x2   :  { %2830 = sst [smem:[#allocation18_spill]] %s2817_s3 }
   0x3   :  { %2831 = sst [smem:[#allocation19_spill]] %s2819_s5 }
   0x4   :  { %12 = vsyncpa [#allocation3], 0 }
   0x5   :  { %14 = vsyncpa [#allocation3 + $0x1], 0 }
   0x6   :  { %15 = vsyncpa [#allocation6], 0 }
   0x7   :  { %17 = vsyncpa [#allocation6 + $0x1], 0 }
   0x8   :  { %18 = vsyncpa [#allocation9], 0 }
   0x9   :  { %19 = vsyncpa [#allocation4], 0 }
   0xa   :  { %21 = vsyncpa [#allocation4 + $0x1], 0  ;;  %s2431_s24 = smov 0   ;;  %s2433_s25 = smov 0  }
   0xb   :  { %s2435_s26 = smov 0   ;;  %s2437_s27 = smov 0  }
   0xc LB: > { %s2452_s28 = sadd.s32 4294967295, %s2372_s27   ;;  %s1849_s29 = sadd.s32 4294967294, %s2372_s27   ;;  %s2372_s27 = sphi %s2437_s27, %s2858_s27   ;;  %s2368_s26 = sphi %s2435_s26, %s2857_s26   ;;  %s2364_s25 = sphi %s2433_s25, %s2856_s25   ;;  %s2360_s24 = sphi %s2431_s24, %s2855_s24  }
   0xd   : > { %p73_p0 = scmp.ne.s32.totalorder %s2364_s25, %s2360_s24  ;;  %p2822_p1 = scmp.eq.s32.totalorder %s2452_s28, 0 }
   0xe   : > { %p213_p3 = scmp.eq.s32.totalorder %s1849_s29, 1  ;;  %p1850_p5 = scmp.ge.s32.totalorder %s2372_s27, 1 }
   0xf   : > { %p2461_p4 = por %p2822_p1, %p73_p0  ;;  %p220_p7 = scmp.lt.s32.totalorder %s2372_s27, 3 }
  0x10   : > { %p2466_p6 = por %p213_p3, %p73_p0  ;;  %s2374_s10 = smov [#allocation7]  }
  0x11   : > { %s2832_s30 = scalar_select %p2461_p4, 1, 0 }
  0x12   : > { %s2833_s8 = scalar_select %p2466_p6, 1, 0 }
  0x13   : > { %p2471_p8 = pnand %p1850_p5, %p220_p7  ;;  %s232_s11 = sshll.u32 %s2374_s10, 4  ;;  %s2475_s11 = int_to_ptr.vmem [resolvable:$true] %s232_s11 }
  0x14   : > { %s2375_s13 = smov [#allocation8]   ;;  %s2836_s3 = sld [smem:[#allocation18_spill]] }
  0x15   : > { %p2076_p9 = pneg %p2471_p8  ;;  %s248_s14 = sshll.u32 %s2375_s13, 4  ;;  %s2486_s14 = int_to_ptr.vmem [resolvable:$true] %s248_s14 }
  0x17   : > { %p2482_p11 = pnand %p2076_p9, %p2822_p1 }
  0x19   : > { %p2180_p13 = pneg %p2482_p11 }
  0x1a   : > { %s2178_s17 = scalar_lea.hbm %s2836_s3, 8192 }
  0x1b   : > { %p2179_p12 = scmp.ne.s32.totalorder %s2836_s3, %s2178_s17  ;;  %p2185_p5 = scmp.lt.u32.totalorder %s2178_s17, %s2836_s3 }
  0x1d   : > { %p2181_p0 = pnand %p2180_p13, %p2179_p12 }
  0x1f   : > { %p2182_p3 = pneg %p2181_p0 }
  0x21   : > { %p2187_p7 = pnand %p2185_p5, %p2182_p3 }
  0x23   : > { %2190 = shalt.err (!%p2187_p7)
}
  0x24   : > { %s2191_s22 = scalar_lea.vmem %s2475_s11, 8192  ;;  %p2199_p2 = scmp.lt.s32.totalorder %s2475_s11, %s2475_s11 }
  0x25   : > { %p2192_p9 = scmp.ne.s32.totalorder %s2475_s11, %s2191_s22  ;;  %p2200_p12 = scmp.lt.s32.totalorder %s2191_s22, %s2191_s22 }
  0x27   : > { %p2194_p10 = pnand %p2192_p9, %p2180_p13  ;;  %p2201_p0 = por %p2200_p12, %p2199_p2 }
  0x29   : > { %p2195_p1 = pneg %p2194_p10 }
  0x2b   : > { %p2202_p6 = pnand %p2201_p0, %p2195_p1 }
  0x2d   : > { %2205 = shalt.err (!%p2202_p6)
}
  0x2e   : > { %s2376_s23 = smov 512   ;;  %s2377_s29 = smov 32  }
  0x2f   : > { %2079 = dma.hbm_to_vmem [thread:$0]  (!%p2482_p11), %s2836_s3, 8192, %s2475_s11, [#allocation6], %s2376_s23, %s2376_s23, %s2377_s29  }
  0x30   : > { %s2837_s5 = sld [smem:[#allocation19_spill]] }
  0x36   : > { %s2206_s17 = scalar_lea.hbm %s2837_s5, 1024 }
  0x37   : > { %p2207_p2 = scmp.ne.s32.totalorder %s2837_s5, %s2206_s17  ;;  %p2213_p10 = scmp.lt.u32.totalorder %s2206_s17, %s2837_s5 }
  0x39   : > { %p2209_p1 = pnand %p2207_p2, %p2180_p13 }
  0x3b   : > { %p2210_p6 = pneg %p2209_p1 }
  0x3d   : > { %p2215_p3 = pnand %p2213_p10, %p2210_p6 }
  0x3f   : > { %2218 = shalt.err (!%p2215_p3)
}
  0x40   : > { %s2219_s11 = scalar_lea.vmem %s2486_s14, 1024  ;;  %p2227_p12 = scmp.lt.s32.totalorder %s2486_s14, %s2486_s14 }
  0x41   : > { %p2220_p5 = scmp.ne.s32.totalorder %s2486_s14, %s2219_s11  ;;  %p2228_p0 = scmp.lt.s32.totalorder %s2219_s11, %s2219_s11 }
  0x43   : > { %p2222_p7 = pnand %p2220_p5, %p2180_p13  ;;  %p2229_p2 = por %p2228_p0, %p2227_p12 }
  0x45   : > { %p2223_p9 = pneg %p2222_p7 }
  0x47   : > { %p2230_p1 = pnand %p2229_p2, %p2223_p9 }
  0x49   : > { %2233 = shalt.err (!%p2230_p1)
}
  0x4a   : > { %s2823_s22 = smov 64   ;;  %s2825_s23 = smov 4  }
  0x4b   : > { %2082 = dma.hbm_to_vmem [thread:$0]  (!%p2482_p11), %s2837_s5, 1024, %s2486_s14, [#allocation9], %s2823_s22, %s2823_s22, %s2825_s23  }
  0x4c   : > { %s2544_s13 = sadd.s32 1, %s2372_s27   ;;  %s60_s16 = sadd.s32 1, %s2368_s26 }
  0x4d   : > { %s57_s15 = ssub.s32 %s2372_s27, %s2544_s13  ;;  %p67_p6 = scmp.ne.s32.totalorder %s2368_s26, %s2364_s25 }
  0x4e   : > { %p58_p13 = scmp.eq.s32.totalorder %s57_s15, 0  ;;  %p68_p10 = scmp.eq.s32.totalorder %s2372_s27, 0 }
  0x4f   : > { %p2839_p5 = scmp.eq.s32.totalorder %s2452_s28, 1  ;;  %p2096_p9 = scmp.lt.s32.totalorder %s2372_s27, 2 }
  0x50   : > { %s2553_s17 = scalar_select %p58_p13, %s2368_s26, %s60_s16  }
  0x51   : > { %p69_p3 = por %p68_p10, %p67_p6  ;;  %p2557_p7 = por %p2839_p5, %p67_p6 }
  0x52   : > { %2838 = sst [smem:[#allocation16_spill]] %s2553_s17  ;;  %s273_s18 = sand.u32 1, %s2368_s26  }
  0x53   : > { %s2840_s12 = scalar_select %p2557_p7, 1, 0 }
  0x54   : > { %s1854_s19 = sshll.u32 %s273_s18, 5  ;;  %s1964_s14 = sshll.u32 %s2372_s27, 9 }
  0x55   : > { %s2841_s1 = sld [smem:[#allocation17_spill]]  ;;  %s277_s29 = scalar_lea.vmem [#allocation2], %s1854_s19 }
  0x56   : > { %s285_s10 = sshll.u32 %s277_s29, 4  ;;  %p2571_p11 = pnand %p2096_p9, %p69_p3  ;;  %s2569_s10 = int_to_ptr.vmem [resolvable:$true] %s285_s10 }
  0x57   : > { %s2578_s20 = scalar_lea.hbm %s2816_s2, %s1964_s14  ;;  %s299_s21 = scalar_lea.vmem [#allocation5], %s1854_s19 }
  0x58   : > { %s2580_s23 = sshll.u32 %s299_s21, 4  ;;  %s2582_s3 = scalar_lea.sflag [#allocation3], %s273_s18  ;;  %s2614_s23 = int_to_ptr.vmem [resolvable:$true] %s2580_s23 }
  0x59   : > { %p2236_p0 = pneg %p2571_p11 }
  0x5b   : > { %s2567_s11 = scalar_lea.hbm %s2841_s1, %s1964_s14  ;;  %s2239_s22 = scalar_lea.hbm %s2841_s1, 1024 }
  0x5c   : > { %s2234_s29 = scalar_lea.hbm %s2567_s11, 512  ;;  %p2240_p13 = scmp.lt.u32.totalorder %s2567_s11, %s2841_s1 }
  0x5d   : > { %p2235_p12 = scmp.ne.s32.totalorder %s2567_s11, %s2234_s29  ;;  %p2241_p6 = scmp.lt.u32.totalorder %s2239_s22, %s2234_s29 }
  0x5e   : > { %p2243_p3 = scmp.lt.u32.totalorder %s2234_s29, %s2567_s11 }
  0x5f   : > { %p2237_p2 = pnand %p2236_p0, %p2235_p12  ;;  %p2242_p10 = por %p2241_p6, %p2240_p13 }
  0x61   : > { %p2238_p1 = pneg %p2237_p2  ;;  %p2244_p5 = por %p2243_p3, %p2242_p10 }
  0x63   : > { %p2245_p9 = pnand %p2244_p5, %p2238_p1 }
  0x65   : > { %2248 = shalt.err (!%p2245_p9)
}
  0x66   : > { %s2249_s18 = scalar_lea.vmem %s2569_s10, 512  ;;  %s2380_s5 = smov [#allocation2]  }
  0x67   : > { %p2250_p12 = scmp.ne.s32.totalorder %s2569_s10, %s2249_s18  ;;  %s2254_s17 = sshll.u32 %s2380_s5, 4  ;;  %s2255_s17 = int_to_ptr.vmem [resolvable:$false] %s2254_s17 }
  0x68   : > { %s2256_s19 = scalar_lea.vmem %s2255_s17, 1024  ;;  %p2257_p4 = scmp.lt.s32.totalorder %s2569_s10, %s2255_s17 }
  0x69   : > { %p2252_p2 = pnand %p2250_p12, %p2236_p0  ;;  %p2258_p13 = scmp.lt.s32.totalorder %s2256_s19, %s2249_s18 }
  0x6b   : > { %p2253_p7 = pneg %p2252_p2  ;;  %p2259_p6 = por %p2258_p13, %p2257_p4 }
  0x6d   : > { %p2260_p10 = pnand %p2259_p6, %p2253_p7 }
  0x6f   : > { %2263 = shalt.err (!%p2260_p10)
}
  0x70   : > { %s2843_s21 = smov 4   ;;  %s2844_s29 = smov 64  }
  0x71   : > { %2086 = dma.hbm_to_vmem [thread:$0]  (!%p2571_p11), %s2567_s11, 512, %s2569_s10, %s2582_s3, %s2844_s29, %s2844_s29, %s2843_s21  }
  0x72   : > { %s295_s22 = sand.u32 1, %s2372_s27   ;;  %s2264_s14 = scalar_lea.hbm %s2578_s20, 512 }
  0x73   : > { %s2617_s16 = scalar_lea.sflag [#allocation6], %s295_s22  ;;  %p2265_p4 = scmp.ne.s32.totalorder %s2578_s20, %s2264_s14 }
  0x74   : > { %s2269_s17 = scalar_lea.hbm %s2816_s2, 1024  ;;  %p2270_p3 = scmp.lt.u32.totalorder %s2578_s20, %s2816_s2 }
  0x75   : > { %p2267_p7 = pnand %p2265_p4, %p2236_p0  ;;  %p2271_p5 = scmp.lt.u32.totalorder %s2269_s17, %s2264_s14 }
  0x76   : > { %p2273_p12 = scmp.lt.u32.totalorder %s2264_s14, %s2578_s20 }
  0x77   : > { %p2268_p1 = pneg %p2267_p7  ;;  %p2272_p9 = por %p2271_p5, %p2270_p3 }
  0x79   : > { %p2274_p2 = por %p2273_p12, %p2272_p9 }
  0x7b   : > { %p2275_p13 = pnand %p2274_p2, %p2268_p1 }
  0x7d   : > { %2278 = shalt.err (!%p2275_p13)
}
  0x7e   : > { %s2279_s3 = scalar_lea.vmem %s2614_s23, 512  ;;  %s2381_s11 = smov [#allocation5]  }
  0x7f   : > { %p2280_p6 = scmp.ne.s32.totalorder %s2614_s23, %s2279_s3  ;;  %s2284_s10 = sshll.u32 %s2381_s11, 4  ;;  %s2285_s10 = int_to_ptr.vmem [resolvable:$false] %s2284_s10 }
  0x80   : > { %s2286_s1 = scalar_lea.vmem %s2285_s10, 1024  ;;  %p2287_p7 = scmp.lt.s32.totalorder %s2614_s23, %s2285_s10 }
  0x81   : > { %p2282_p10 = pnand %p2280_p6, %p2236_p0  ;;  %p2288_p3 = scmp.lt.s32.totalorder %s2286_s1, %s2279_s3 }
  0x83   : > { %p2283_p4 = pneg %p2282_p10  ;;  %p2289_p5 = por %p2288_p3, %p2287_p7 }
  0x85   : > { %p2290_p9 = pnand %p2289_p5, %p2283_p4 }
  0x87   : > { %2293 = shalt.err (!%p2290_p9)
}
  0x88   : > { %2089 = dma.hbm_to_vmem [thread:$0]  (!%p2571_p11), %s2578_s20, 512, %s2614_s23, %s2617_s16, %s2844_s29, %s2844_s29, %s2843_s21  }
  0x89   : > { %319 = sbr.rel (%p2471_p8) target bundleno = 1449 (0x5a9), region = 48  ;;  %s2649_s22 = sand.u32 (!%p2471_p8), 1, %s2364_s25  }
  0x8a   : > { %s2652_s14 = sshll.u32 (!%p2471_p8), %s2649_s22, 5  ;;  %s322_s15 = scalar_lea.sflag (!%p2471_p8), [#allocation3], %s2649_s22 }
  0x8b   : > { %s2656_s18 = scalar_lea.vmem (!%p2471_p8), [#allocation2], %s2652_s14  ;;  %p2845_p0 = scmp.ne.s32.totalorder (!%p2471_p8), %s2832_s30, 0 }
  0x90   : > { %2339 = dma.done.wait (%p2845_p0), %s322_s15, 512  }
  0x91   : > { %2341 = vsyncadd (%p2845_p0), %s322_s15, 4294966784  ;;  %s330_s9 = sand.u32 1, %s2452_s28   ;;  %s2664_s20 = scalar_lea.vmem [#allocation5], %s2652_s14 }
  0x92   : > { %s331_s23 = scalar_lea.sflag [#allocation6], %s330_s9 }
  0x93   : > { %2343 = dma.done.wait (%p2845_p0), %s331_s23, 512  }
  0x94   : > { %2345 = vsyncadd (%p2845_p0), %s331_s23, 4294966784  ;;  %p2846_p8 = scmp.eq.s32.totalorder %s2452_s28, 0 }
  0x96   : > { %2347 = dma.done.wait (%p2846_p8), [#allocation6], 8192   ;;  %p2847_p11 = pmov %p2846_p8 }
  0x97   : > { %p2848_p1 = pmov %p2846_p8 }
  0x98   : > { %2349 = vsyncadd (%p2847_p11), [#allocation6], 4294959104 }
  0x99   : > { %2351 = dma.done.wait (%p2848_p1), [#allocation9], 1024   ;;  %p2849_p12 = pmov %p2848_p1 }
  0x9a   : > { %v2382_v0 = vmov 0   ;;  %s1868_s30 = sshll.u32 %s2452_s28, 2  ;;  %v395_v1 = vld [vmem:[#allocation7] sm:$0xff]  ;;  %v396_v3 = vld [vmem:[#allocation7 + $0x8] sm:$0xff]  ;;  %v461_v4 = vlaneseq  ;;  %v2383_v5 = vmov 1966171168  }
  0x9b   : > { %2353 = vsyncadd (%p2849_p12), [#allocation9], 4294966272  ;;  %928 = vmatprep.mubr.bf16.mxu0 %v2382_v0  ;;  %969 = vmatprep.mubr.bf16.mxu1 %v2382_v0  ;;  %v399_v2 = vld [vmem:[#allocation7 + $0x20] sm:$0xff]  ;;  %p2681_p2 = scmp.lt.s32.totalorder %s1868_s30, 7  ;;  %v513_v6 = vunpack.c.l.s4 %v2383_v5  ;;  %v400_v8 = vld [vmem:[#allocation7 + $0x28] sm:$0xff]  ;;  %vm566_vm0 = vcmask 1041409  }
  0x9c   : > { %v1874_v7 = vcombine.high %v395_v1, %v399_v2  ;;  %v1873_v9 = vcombine.low %v395_v1, %v399_v2  ;;  %v403_v10 = vld [vmem:[#allocation7 + $0x40] sm:$0xff]  ;;  %v1876_v12 = vcombine.high %v396_v3, %v400_v8  ;;  %v1875_v13 = vcombine.low %v396_v3, %v400_v8  ;;  %v404_v15 = vld [vmem:[#allocation7 + $0x48] sm:$0xff]  ;;  %s381_s10 = scalar_lea.vmem [#allocation10], %s2652_s14  ;;  %s1967_s15 = sshll.u32 %s2452_s28, 9 }
  0x9d   : > { %v407_v11 = vld [vmem:[#allocation7 + $0x60] sm:$0xff]  ;;  %v408_v16 = vld [vmem:[#allocation7 + $0x68] sm:$0xff]  ;;  %s2860_s30 = smov (!%p2681_p2, %s1868_s30), 7  ;;  %v2687_v23 = vshrl.u32 %v461_v4, 7  ;;  %v514_v24 = vunpack.c.0.s8 %v513_v6  ;;  %vm569_vm1 = vcmask 1042434   ;;  %vm572_vm2 = vcmask 1043459   ;;  %s2770_s14 = scalar_lea.hbm %s2821_s7, %s1967_s15 }
  0x9e   : > { %v1882_v14 = vcombine.high %v403_v10, %v407_v11  ;;  %v411_v17 = vld [vmem:[#allocation7 + $0x80] sm:$0xff]  ;;  %896 = vmatprep.subr.bf16.mxu0 %v1874_v7  ;;  %v1884_v18 = vcombine.high %v404_v15, %v408_v16  ;;  %v412_v20 = vld [vmem:[#allocation7 + $0x88] sm:$0xff]  ;;  %937 = vmatprep.subr.bf16.mxu1 %v1876_v12  ;;  %v1881_v22 = vcombine.low %v403_v10, %v407_v11  ;;  %s385_s5 = scalar_lea.vmem %s2814_s0, %s2860_s30  ;;  %vm2385_vm3 = vmmov 0   ;;  %s1725_s1 = sshll.u32 %s381_s10, 4  ;;  %s2765_s1 = int_to_ptr.vmem [resolvable:$true] %s1725_s1 }
  0x9f   : > { %v415_v19 = vld [vmem:[#allocation7 + $0xa0] sm:$0xff]  ;;  %v416_v21 = vld [vmem:[#allocation7 + $0xa8] sm:$0xff]  ;;  %897 = vmatpush1.bf16.msra.mxu0 %v1873_v9  ;;  %938 = vmatpush1.bf16.msra.mxu1 %v1875_v13  ;;  %v1883_v25 = vcombine.low %v404_v15, %v408_v16  ;;  %v517_v33 = vsub.s32 %v514_v24, %v2687_v23  ;;  %v1869_v39 = vld.sshfl [vmem:[%s385_s5] sm:$0x1 pattern:$0x75316420] }
  0xa0   : > { %898 = vmatprep.subr.bf16.mxu0 %v1882_v14  ;;  %v1890_v26 = vcombine.high %v411_v17, %v415_v19  ;;  %939 = vmatprep.subr.bf16.mxu1 %v1884_v18  ;;  %v1892_v27 = vcombine.high %v412_v20, %v416_v21  ;;  %v419_v28 = vld [vmem:[#allocation7 + $0xc0] sm:$0xff]  ;;  %v420_v30 = vld [vmem:[#allocation7 + $0xc8] sm:$0xff]  ;;  %v1889_v32 = vcombine.low %v411_v17, %v415_v19  ;;  %v1870_v42 = vld.sshfl [vmem:[%s385_s5 + $0x1] sm:$0x1 pattern:$0x75316420] }
  0xa1   : > { %v423_v29 = vld [vmem:[#allocation7 + $0xe0] sm:$0xff]  ;;  %v424_v31 = vld [vmem:[#allocation7 + $0xe8] sm:$0xff]  ;;  %v1891_v34 = vcombine.low %v412_v20, %v416_v21  ;;  %v1871_v44 = vld.sshfl [vmem:[%s385_s5 + $0x2] sm:$0x1 pattern:$0x75316420]  ;;  %v532_v45 = vrot.slane %v1870_v42, %v517_v33  ;;  %v518_v53 = vrot.slane %v1869_v39, %v517_v33 }
  0xa2   : > { %v1898_v35 = vcombine.high %v419_v28, %v423_v29  ;;  %v1900_v36 = vcombine.high %v420_v30, %v424_v31  ;;  %v427_v37 = vld [vmem:[#allocation7 + $0x100] sm:$0xff]  ;;  %v428_v40 = vld [vmem:[#allocation7 + $0x108] sm:$0xff]  ;;  %v1897_v43 = vcombine.low %v419_v28, %v423_v29  ;;  %v1899_v46 = vcombine.low %v420_v30, %v424_v31  ;;  %v1872_v48 = vld.sshfl [vmem:[%s385_s5 + $0x3] sm:$0x1 pattern:$0x75316420] }
  0xa3   : > { %899 = vmatpush1.bf16.msra.mxu0 %v1881_v22  ;;  %940 = vmatpush1.bf16.msra.mxu1 %v1883_v25  ;;  %v431_v38 = vld [vmem:[#allocation7 + $0x120] sm:$0xff]  ;;  %v432_v41 = vld [vmem:[#allocation7 + $0x128] sm:$0xff]  ;;  %v546_v49 = vrot.slane %v1871_v44, %v517_v33  ;;  %v560_v54 = vrot.slane %v1872_v48, %v517_v33  ;;  %v562_v55 = vunpack.c.l.b16 %v532_v45  ;;  %v561_v2 = vunpack.c.l.b16 %v518_v53  ;;  %v397_v19 = vld [vmem:[#allocation7 + $0x10] sm:$0xff]  ;;  %s1712_s28 = scalar_lea.sflag [#allocation4], %s2649_s22  ;;  %s2294_s23 = scalar_lea.vmem %s2765_s1, 512 }
  0xa4   : > { %900 = vmatprep.subr.bf16.mxu0 %v1890_v26  ;;  %941 = vmatprep.subr.bf16.mxu1 %v1892_v27  ;;  %v1906_v47 = vcombine.high %v427_v37, %v431_v38  ;;  %v1908_v50 = vcombine.high %v428_v40, %v432_v41  ;;  %v435_v51 = vld [vmem:[#allocation7 + $0x140] sm:$0xff]  ;;  %v436_v56 = vld [vmem:[#allocation7 + $0x148] sm:$0xff]  ;;  %v1905_v58 = vcombine.low %v427_v37, %v431_v38  ;;  %v401_v20 = vld [vmem:[#allocation7 + $0x30] sm:$0xff]  ;;  %vm1328_vm4 = vcmask 130048   ;;  %p2295_p13 = scmp.ne.s32.totalorder %s2765_s1, %s2294_s23  ;;  %p2851_p6 = scmp.ne.s32.totalorder %s2840_s12, 0 }
  0xa5   : > { %v439_v52 = vld [vmem:[#allocation7 + $0x160] sm:$0xff]  ;;  %v440_v57 = vld [vmem:[#allocation7 + $0x168] sm:$0xff]  ;;  %v1907_v59 = vcombine.low %v428_v40, %v432_v41  ;;  %v563_v61 = vunpack.c.l.b16 %v546_v49  ;;  %v564_v3 = vunpack.c.l.b16 %v560_v54  ;;  %v565_v4 = vrot.slane %v562_v55, 7  ;;  %v398_v25 = vld [vmem:[#allocation7 + $0x18] sm:$0xff] }
  0xa6   : > { %v1914_v60 = vcombine.high %v435_v51, %v439_v52  ;;  %v1916_v62 = vcombine.high %v436_v56, %v440_v57  ;;  %v443_v63 = vld [vmem:[#allocation7 + $0x180] sm:$0xff]  ;;  %v444_v5 = vld [vmem:[#allocation7 + $0x188] sm:$0xff]  ;;  %v1913_v7 = vcombine.low %v435_v51, %v439_v52  ;;  %v1915_v8 = vcombine.low %v436_v56, %v440_v57  ;;  %v402_v26 = vld [vmem:[#allocation7 + $0x38] sm:$0xff]  ;;  %p2296_p10 = pnand %p2295_p13, %p2851_p6 }
  0xa7   : > { %901 = vmatpush1.bf16.msra.mxu0 %v1889_v32  ;;  %942 = vmatpush1.bf16.msra.mxu1 %v1891_v34  ;;  %v447_v1 = vld [vmem:[#allocation7 + $0x1a0] sm:$0xff]  ;;  %v448_v6 = vld [vmem:[#allocation7 + $0x1a8] sm:$0xff]  ;;  %v568_v11 = vrot.slane %v563_v61, 6  ;;  %v567_v16 = vsel %vm566_vm0, %v565_v4, %v561_v2  ;;  %v571_v17 = vrot.slane %v564_v3, 5  ;;  %v405_v30 = vld [vmem:[#allocation7 + $0x50] sm:$0xff]  ;;  %v1878_v33 = vcombine.high %v397_v19, %v401_v20 }
  0xa8   : > { %902 = vmatprep.subr.bf16.mxu0 %v1898_v35  ;;  %943 = vmatprep.subr.bf16.mxu1 %v1900_v36  ;;  %v1922_v9 = vcombine.high %v443_v63, %v447_v1  ;;  %v451_v10 = vld [vmem:[#allocation7 + $0x1c0] sm:$0xff]  ;;  %v1924_v12 = vcombine.high %v444_v5, %v448_v6  ;;  %v452_v14 = vld [vmem:[#allocation7 + $0x1c8] sm:$0xff]  ;;  %v1921_v18 = vcombine.low %v443_v63, %v447_v1  ;;  %v409_v31 = vld [vmem:[#allocation7 + $0x70] sm:$0xff]  ;;  %p2297_p4 = pneg %p2296_p10 }
  0xa9   : > { %v455_v13 = vld [vmem:[#allocation7 + $0x1e0] sm:$0xff]  ;;  %v456_v15 = vld [vmem:[#allocation7 + $0x1e8] sm:$0xff]  ;;  %v1923_v21 = vcombine.low %v444_v5, %v448_v6  ;;  %v570_v24 = vsel %vm569_vm1, %v568_v11, %v567_v16  ;;  %v406_v34 = vld [vmem:[#allocation7 + $0x58] sm:$0xff]  ;;  %v1880_v36 = vcombine.high %v398_v25, %v402_v26  ;;  %v1877_v38 = vcombine.low %v397_v19, %v401_v20 }
  0xaa   : > { %v1930_v22 = vcombine.high %v451_v10, %v455_v13  ;;  %v1932_v27 = vcombine.high %v452_v14, %v456_v15  ;;  %v1929_v28 = vcombine.low %v451_v10, %v455_v13  ;;  %v573_v29 = vsel %vm572_vm2, %v571_v17, %v570_v24  ;;  %v410_v35 = vld [vmem:[#allocation7 + $0x78] sm:$0xff]  ;;  %v413_v42 = vld [vmem:[#allocation7 + $0x90] sm:$0xff] }
  0xab   : > { %903 = vmatpush1.bf16.msra.mxu0 %v1897_v43  ;;  %944 = vmatpush1.bf16.msra.mxu1 %v1899_v46  ;;  %v1931_v32 = vcombine.low %v452_v14, %v456_v15  ;;  %v2695_v37 = vpack.c.b16 %v573_v29, %v573_v29  ;;  %v1879_v39 = vcombine.low %v398_v25, %v402_v26  ;;  %v417_v43 = vld [vmem:[#allocation7 + $0xb0] sm:$0xff]  ;;  %v414_v44 = vld [vmem:[#allocation7 + $0x98] sm:$0xff]  ;;  %v2146_v29 = vld [vmem:[%s2656_s18] sm:$0xff]  }
  0xac   : > { %904 = vmatprep.subr.bf16.mxu0 %v1906_v47  ;;  %945 = vmatprep.subr.bf16.mxu1 %v1908_v50  ;;  %v1886_v40 = vcombine.high %v405_v30, %v409_v31  ;;  %v1888_v41 = vcombine.high %v406_v34, %v410_v35  ;;  %v418_v45 = vld [vmem:[#allocation7 + $0xb8] sm:$0xff]  ;;  %v1885_v46 = vcombine.low %v405_v30, %v409_v31  ;;  %v421_v50 = vld [vmem:[#allocation7 + $0xd0] sm:$0xff]  ;;  %v2384_v30 = vmov 0.0  }
  0xad   : > { %v1887_v47 = vcombine.low %v406_v34, %v410_v35  ;;  %v1894_v48 = vcombine.high %v413_v42, %v417_v43  ;;  %v1896_v49 = vcombine.high %v414_v44, %v418_v45  ;;  %v425_v51 = vld [vmem:[#allocation7 + $0xf0] sm:$0xff]  ;;  %v422_v52 = vld [vmem:[#allocation7 + $0xd8] sm:$0xff]  ;;  %v1893_v54 = vcombine.low %v413_v42, %v417_v43 }
  0xae   : > { %v426_v53 = vld [vmem:[#allocation7 + $0xf8] sm:$0xff]  ;;  %v1895_v55 = vcombine.low %v414_v44, %v418_v45  ;;  %v1902_v56 = vcombine.high %v421_v50, %v425_v51  ;;  %v437_v2 = vld [vmem:[#allocation7 + $0x150] sm:$0xff]  ;;  %v463_v31 = vsub.s32 0, %v2687_v23  ;;  %v2386_v34 = vmov 1983009808  }
  0xaf   : > { %905 = vmatpush1.bf16.msra.mxu0 %v1905_v58  ;;  %946 = vmatpush1.bf16.msra.mxu1 %v1907_v59  ;;  %v1904_v57 = vcombine.high %v422_v52, %v426_v53  ;;  %v429_v58 = vld [vmem:[#allocation7 + $0x110] sm:$0xff]  ;;  %v434_v61 = vld [vmem:[#allocation7 + $0x138] sm:$0xff]  ;;  %v1903_v63 = vcombine.low %v422_v52, %v426_v53  ;;  %v1062_v35 = vunpack.c.l.s4 %v2386_v34 }
  0xb0   : > { %906 = vmatprep.subr.bf16.mxu0 %v1914_v60  ;;  %947 = vmatprep.subr.bf16.mxu1 %v1916_v62  ;;  %v433_v59 = vld [vmem:[#allocation7 + $0x130] sm:$0xff]  ;;  %v430_v60 = vld [vmem:[#allocation7 + $0x118] sm:$0xff]  ;;  %v1901_v62 = vcombine.low %v421_v50, %v425_v51 }
  0xb1   : > { %v1910_v1 = vcombine.high %v429_v58, %v433_v59  ;;  %v441_v3 = vld [vmem:[#allocation7 + $0x170] sm:$0xff]  ;;  %v438_v4 = vld [vmem:[#allocation7 + $0x158] sm:$0xff]  ;;  %v1909_v6 = vcombine.low %v429_v58, %v433_v59 }
  0xb2   : > { %v442_v5 = vld [vmem:[#allocation7 + $0x178] sm:$0xff]  ;;  %v445_v10 = vld [vmem:[#allocation7 + $0x190] sm:$0xff]  ;;  %v1917_v14 = vcombine.low %v437_v2, %v441_v3 }
  0xb3   : > { %907 = vmatpush1.bf16.msra.mxu0 %v1913_v7  ;;  %948 = vmatpush1.bf16.msra.mxu1 %v1915_v8  ;;  %v1911_v7 = vcombine.low %v430_v60, %v434_v61  ;;  %v1918_v8 = vcombine.high %v437_v2, %v441_v3  ;;  %v449_v11 = vld [vmem:[#allocation7 + $0x1b0] sm:$0xff]  ;;  %v450_v13 = vld [vmem:[#allocation7 + $0x1b8] sm:$0xff]  ;;  %v1919_v15 = vcombine.low %v438_v4, %v442_v5 }
  0xb4   : > { %908 = vmatprep.subr.bf16.mxu0 %v1922_v9  ;;  %949 = vmatprep.subr.bf16.mxu1 %v1924_v12  ;;  %v1920_v9 = vcombine.high %v438_v4, %v442_v5  ;;  %v446_v12 = vld [vmem:[#allocation7 + $0x198] sm:$0xff]  ;;  %v1926_v16 = vcombine.high %v445_v10, %v449_v11  ;;  %v457_v19 = vld [vmem:[#allocation7 + $0x1f0] sm:$0xff]  ;;  %v2387_v5 = vmov 1934713408  }
  0xb5   : > { %v1928_v17 = vcombine.high %v446_v12, %v450_v13  ;;  %v454_v20 = vld [vmem:[#allocation7 + $0x1d8] sm:$0xff]  ;;  %v1927_v24 = vcombine.low %v446_v12, %v450_v13 }
  0xb7   : > { %909 = vmatpush1.bf16.msra.mxu0 %v1921_v18  ;;  %950 = vmatpush1.bf16.msra.mxu1 %v1923_v21  ;;  %v453_v18 = vld [vmem:[#allocation7 + $0x1d0] sm:$0xff]  ;;  %v458_v21 = vld [vmem:[#allocation7 + $0x1f8] sm:$0xff] }
  0xb8   : > { %910 = vmatprep.subr.bf16.mxu0 %v1930_v22  ;;  %951 = vmatprep.subr.bf16.mxu1 %v1932_v27  ;;  %v1925_v22 = vcombine.low %v445_v10, %v449_v11  ;;  %v1934_v25 = vcombine.high %v453_v18, %v457_v19  ;;  %v1936_v26 = vcombine.high %v454_v20, %v458_v21 }
  0xb9   : > { %v1933_v27 = vcombine.low %v453_v18, %v457_v19 }
  0xbb   : > { %911 = vmatpush1.bf16.msra.mxu0 %v1929_v28  ;;  %952 = vmatpush1.bf16.msra.mxu1 %v1931_v32  ;;  %v1935_v28 = vcombine.low %v454_v20, %v458_v21  ;;  %v459_v32 = vld [vmem:[%s2818_s4] sm:$0xff] }
  0xbc   : > { %978 = vmatprep.subr.bf16.mxu0 %v1878_v33  ;;  %1019 = vmatprep.subr.bf16.mxu1 %v1880_v36  ;;  %v471_v33 = vsub.s32 2, %v2687_v23  ;;  %v467_v36 = vsub.s32 1, %v2687_v23 }
  0xbe   : > { %929 = vmatmul.mubr.bf16.vlgmr.msra.gmra.mrb[0].mxu0 %v2695_v37  ;;  %970 = vmatmul.mubr.bf16.vlgmr.msra.gmra.mrb[0].mxu1 %v2695_v37 }
  0xbf   : > { %979 = vmatpush1.bf16.msra.mxu0 %v1877_v38  ;;  %1020 = vmatpush1.bf16.msra.mxu1 %v1879_v39  ;;  %v464_v38 = vrot.slane %v459_v32, %v463_v31  ;;  %v472_v39 = vrot.slane %v459_v32, %v471_v33 }
  0xc0   : > { %980 = vmatprep.subr.bf16.mxu0 %v1886_v40  ;;  %1021 = vmatprep.subr.bf16.mxu1 %v1888_v41  ;;  %v1063_v40 = vunpack.c.0.s8 %v1062_v35  ;;  %v468_v41 = vrot.slane %v459_v32, %v467_v36 }
  0xc1   : > { %1010 = vmatprep.mubr.bf16.mxu0 %v2382_v0  ;;  %1051 = vmatprep.mubr.bf16.mxu1 %v2382_v0  ;;  %v1912_v0 = vcombine.high %v430_v60, %v434_v61 }
  0xc3   : > { %981 = vmatpush1.bf16.msra.mxu0 %v1885_v46  ;;  %1022 = vmatpush1.bf16.msra.mxu1 %v1887_v47 }
  0xc4   : > { %982 = vmatprep.subr.bf16.mxu0 %v1894_v48  ;;  %1023 = vmatprep.subr.bf16.mxu1 %v1896_v49  ;;  %v1066_v48 = vsub.s32 %v1063_v40, %v2687_v23 }
  0xc7   : > { %983 = vmatpush1.bf16.msra.mxu0 %v1893_v54  ;;  %1024 = vmatpush1.bf16.msra.mxu1 %v1895_v55 }
  0xc8   : > { %984 = vmatprep.subr.bf16.mxu0 %v1902_v56  ;;  %1025 = vmatprep.subr.bf16.mxu1 %v1904_v57 }
  0xcb   : > { %985 = vmatpush1.bf16.msra.mxu0 %v1901_v62  ;;  %1026 = vmatpush1.bf16.msra.mxu1 %v1903_v63  ;;  %v479_v62 = vsub.s32 4, %v2687_v23  ;;  %v487_v63 = vsub.s32 6, %v2687_v23 }
  0xcc   : > { %986 = vmatprep.subr.bf16.mxu0 %v1910_v1  ;;  %1027 = vmatprep.subr.bf16.mxu1 %v1912_v0  ;;  %v483_v1 = vsub.s32 5, %v2687_v23  ;;  %v491_v0 = vsub.s32 7, %v2687_v23 }
  0xcd   : > { %v480_v2 = vrot.slane %v459_v32, %v479_v62  ;;  %v488_v3 = vrot.slane %v459_v32, %v487_v63 }
  0xce   : > { %v484_v4 = vrot.slane %v459_v32, %v483_v1 }
  0xcf   : > { %987 = vmatpush1.bf16.msra.mxu0 %v1909_v6  ;;  %1028 = vmatpush1.bf16.msra.mxu1 %v1911_v7  ;;  %v1095_v6 = vunpack.c.l.s4 %v2387_v5  ;;  %v492_v7 = vrot.slane %v459_v32, %v491_v0 }
  0xd0   : > { %988 = vmatprep.subr.bf16.mxu0 %v1918_v8  ;;  %1029 = vmatprep.subr.bf16.mxu1 %v1920_v9 }
  0xd3   : > { %989 = vmatpush1.bf16.msra.mxu0 %v1917_v14  ;;  %1030 = vmatpush1.bf16.msra.mxu1 %v1919_v15 }
  0xd4   : > { %990 = vmatprep.subr.bf16.mxu0 %v1926_v16  ;;  %1031 = vmatprep.subr.bf16.mxu1 %v1928_v17  ;;  %v1096_v16 = vunpack.c.0.s8 %v1095_v6 }
  0xd7   : > { %991 = vmatpush1.bf16.msra.mxu0 %v1925_v22  ;;  %1032 = vmatpush1.bf16.msra.mxu1 %v1927_v24 }
  0xd8   : > { %992 = vmatprep.subr.bf16.mxu0 %v1934_v25  ;;  %1033 = vmatprep.subr.bf16.mxu1 %v1936_v26  ;;  %v1099_v25 = vsub.s32 %v1096_v16, %v2687_v23 }
  0xdb   : > { %993 = vmatpush1.bf16.msra.mxu0 %v1933_v27  ;;  %1034 = vmatpush1.bf16.msra.mxu1 %v1935_v28 }
  0xdc   : > { %1994 = vmatprep.subr.bf16.mxu1 %v2384_v30  ;;  %2018 = vmatprep.subr.bf16.mxu0 %v2384_v30 }
  0xde   : > { %1011 = vmatmul.mubr.bf16.vlgmr.msra.gmra.mrb[4].mxu0 %v2695_v37  ;;  %1052 = vmatmul.mubr.bf16.vlgmr.msra.gmra.mrb[4].mxu1 %v2695_v37  ;;  %v475_v37 = vsub.s32 3, %v2687_v23  ;;  %v2148_v23 = vld [vmem:[%s2656_s18 + $0x10] sm:$0xff]  }
  0xdf   : > { %1996 = vmatprep.mubr.msk.bf16.mxu1 %vm2385_vm3, %v2384_v30  ;;  %2020 = vmatprep.mubr.msk.bf16.mxu0 %vm2385_vm3, %v2384_v30 }
  0xe0   : > { %v476_v42 = vrot.slane %v459_v32, %v475_v37 }
  0xe4   : > { %1995 = vmatpush3.bf16.xpose.msra.mxu1 %v2146_v29 }
  0xe5   : > { %2000 = vmatprep.subr.bf16.mxu1 %v2384_v30 }
 0x191   : > { %v930_v43 = vpop.f32.mrb[0].mxu0  ;;  %v971_v45 = vpop.f32.mrb[0].mxu1 }
 0x192   : > { %v931_v44 = vadd.f32 %v930_v43, %v464_v38  ;;  %v932_v46 = vpop.f32.mrb[1].mxu0  ;;  %v972_v47 = vadd.f32 %v971_v45, %v472_v39  ;;  %v973_v50 = vpop.f32.mrb[1].mxu1  ;;  %v2147_v38 = vld [vmem:[%s2656_s18 + $0x8] sm:$0xff]  }
 0x193   : > { %v933_v49 = vadd.f32 %v932_v46, %v468_v41  ;;  %v934_v51 = vpop.f32.mrb[2].mxu0  ;;  %v974_v52 = vadd.f32 %v973_v50, %v476_v42  ;;  %v975_v53 = vpop.f32.mrb[2].mxu1  ;;  %v2149_v41 = vld [vmem:[%s2656_s18 + $0x18] sm:$0xff]  }
 0x194   : > { %v935_v54 = vpop.f32.mrb[3].mxu0  ;;  %v1060_v55 = vcombine.low %v931_v44, %v972_v47  ;;  %v976_v56 = vpop.f32.mrb[3].mxu1 }
 0x195   : > { %v1068_v57 = vcombine.low %v933_v49, %v974_v52 }
 0x196   : > { %v1067_v58 = vrot.slane %v1060_v55, %v1066_v48 }
 0x197   : > { %v1075_v59 = vrot.slane %v1068_v57, %v1066_v48 }
 0x199   : > { %v1092_v60 = vcombine.low %v1067_v58, %v1075_v59  ;;  %v1093_v61 = vcombine.high %v1067_v58, %v1075_v59 }
 0x19b   : > { %v1100_v29 = vrot.slane %v1092_v60, %v1099_v25  ;;  %v1107_v31 = vrot.slane %v1093_v61, %v1099_v25 }
 0x1b1   : > { %v1012_v8 = vpop.f32.mrb[4].mxu0  ;;  %v1053_v10 = vpop.f32.mrb[4].mxu1 }
 0x1b2   : > { %v1013_v9 = vadd.f32 %v1012_v8, %v480_v2  ;;  %v1014_v11 = vpop.f32.mrb[5].mxu0  ;;  %v1054_v12 = vadd.f32 %v1053_v10, %v488_v3  ;;  %v1055_v14 = vpop.f32.mrb[5].mxu1 }
 0x1b3   : > { %v1015_v13 = vadd.f32 %v1014_v11, %v484_v4  ;;  %v1016_v15 = vpop.f32.mrb[6].mxu0  ;;  %v1056_v17 = vadd.f32 %v1055_v14, %v492_v7  ;;  %v1057_v18 = vpop.f32.mrb[6].mxu1 }
 0x1b4   : > { %v1017_v19 = vpop.f32.mrb[7].mxu0  ;;  %v1076_v20 = vcombine.low %v1013_v9, %v1054_v12  ;;  %v1058_v21 = vpop.f32.mrb[7].mxu1 }
 0x1b5   : > { %v1084_v22 = vcombine.low %v1015_v13, %v1056_v17 }
 0x1b6   : > { %v1083_v24 = vrot.slane %v1076_v20, %v1066_v48 }
 0x1b7   : > { %v1091_v26 = vrot.slane %v1084_v22, %v1066_v48 }
 0x1b9   : > { %v1108_v27 = vcombine.low %v1083_v24, %v1091_v26  ;;  %v1109_v28 = vcombine.high %v1083_v24, %v1091_v26  ;;  %v2151_v26 = vld [vmem:[%s2664_s20 + $0x8] sm:$0xff]  }
 0x1bb   : > { %v1116_v32 = vrot.slane %v1108_v27, %v1099_v25  ;;  %v1123_v33 = vrot.slane %v1109_v28, %v1099_v25  ;;  %v2150_v25 = vld [vmem:[%s2664_s20] sm:$0xff]  }
 0x1bc   : > { %2019 = vmatpush3.bf16.msra.mxu0 %v2150_v25 }
 0x1bd   : > { %v1124_v34 = vcombine.low %v1100_v29, %v1116_v32  ;;  %v1125_v35 = vcombine.high %v1100_v29, %v1116_v32  ;;  %v1126_v36 = vcombine.low %v1107_v31, %v1123_v33  ;;  %v1127_v37 = vcombine.high %v1107_v31, %v1123_v33  ;;  %2030 = vmatprep.subr.bf16.mxu0 %v2384_v30  ;;  %v2152_v32 = vld [vmem:[%s2664_s20 + $0x10] sm:$0xff]  }
 0x1bf   : > { %v1128_v39 = vpack.c.bf16 %v1124_v34, %v1124_v34  ;;  %v1129_v40 = vpack.c.bf16 %v1125_v35, %v1125_v35  ;;  %v1130_v42 = vpack.c.bf16 %v1126_v36, %v1126_v36  ;;  %v1131_v43 = vpack.c.bf16 %v1127_v37, %v1127_v37  ;;  %v2154_v34 = vld [vmem:[#allocation8] sm:$0xff]  }
 0x1c1   : > { %1997 = vmatmul.mubr.bf16.vlgmr.msra.gmra.mrb[8].mxu1 %v1128_v39 }
 0x1c2   : > { %2001 = vmatpush3.bf16.xpose.msra.mxu1 %v2147_v38  ;;  %2002 = vmatprep.mubr.msk.bf16.mxu1 %vm2385_vm3, %v2384_v30  ;;  %v2153_v38 = vld [vmem:[%s2664_s20 + $0x18] sm:$0xff]   ;;  %s2388_s20 = smov [#allocation10]  }
 0x1c3   : > { %2006 = vmatprep.subr.bf16.mxu1 %v2384_v30  ;;  %s2298_s30 = sshll.u32 %s2388_s20, 4  ;;  %s2299_s30 = int_to_ptr.vmem [resolvable:$false] %s2298_s30 }
 0x1c4   : > { %s2300_s21 = scalar_lea.vmem %s2299_s30, 1024  ;;  %p2301_p7 = scmp.lt.s32.totalorder %s2765_s1, %s2299_s30 }
 0x1c5   : > { %p2302_p3 = scmp.lt.s32.totalorder %s2300_s21, %s2294_s23 }
 0x1c7   : > { %p2303_p5 = por %p2302_p3, %p2301_p7 }
 0x1c9   : > { %2003 = vmatmul.mubr.bf16.vlgmr.msra.gmra.mrb[12].mxu1 %v1129_v40  ;;  %p2304_p9 = pnand %p2303_p5, %p2297_p4 }
 0x1ca   : > { %2007 = vmatpush3.bf16.xpose.msra.mxu1 %v2148_v23  ;;  %2008 = vmatprep.mubr.msk.bf16.mxu1 %vm2385_vm3, %v2384_v30 }
 0x1cb   : > { %2012 = vmatprep.subr.bf16.mxu1 %v2384_v30 }
 0x1d1   : > { %2009 = vmatmul.mubr.bf16.vlgmr.msra.gmra.mrb[16].mxu1 %v1130_v42 }
 0x1d2   : > { %2013 = vmatpush3.bf16.xpose.msra.mxu1 %v2149_v41  ;;  %2014 = vmatprep.mubr.msk.bf16.mxu1 %vm2385_vm3, %v2384_v30 }
 0x1d3   : > { %2024 = vmatprep.subr.bf16.mxu1 %v2384_v30 }
 0x1d9   : > { %2015 = vmatmul.mubr.bf16.vlgmr.msra.gmra.mrb[20].mxu1 %v1131_v43  ;;  %v2155_v43 = vld [vmem:[#allocation8 + $0x8] sm:$0xff]  }
 0x1da   : > { %2026 = vmatprep.mubr.msk.bf16.mxu1 %vm2385_vm3, %v2384_v30  ;;  %2025 = vmatpush3.bf16.msra.mxu1 %v2151_v26 }
 0x1db   : > { %2036 = vmatprep.subr.bf16.mxu1 %v2384_v30 }
 0x294   : > { %v1180_v44 = vpop.f32.mrb[8].mxu1 }
 0x295   : > { %v1324_v45 = vmul.f32 0.088388346, %v1180_v44  ;;  %v1998_v46 = vpop.f32.mrb[9].mxu1 }
 0x296   : > { %v1183_v47 = vpop.f32.mrb[10].mxu1 }
 0x297   : > { %v1999_v48 = vpop.f32.mrb[11].mxu1  ;;  %v1329_v49 = vsel %vm1328_vm4, %v1324_v45, -inf  ;;  %v2156_v47 = vld [vmem:[#allocation8 + $0x10] sm:$0xff]  }
 0x298   : > { %1330 = vmax.xlane.f32.xlu0 %v1329_v49  ;;  %v2157_v48 = vld [vmem:[#allocation8 + $0x18] sm:$0xff]   ;;  %v2159_v49 = vld [vmem:[#allocation8 + $0x28] sm:$0xff]  }
 0x29c   : > { %v1226_v50 = vpop.f32.mrb[12].mxu1 }
 0x29d   : > { %v1325_v51 = vmul.f32 0.088388346, %v1226_v50  ;;  %v2004_v52 = vpop.f32.mrb[13].mxu1  ;;  %v2160_v50 = vld [vmem:[#allocation8 + $0x30] sm:$0xff]  }
 0x29e   : > { %v1229_v53 = vpop.f32.mrb[14].mxu1 }
 0x29f   : > { %v2005_v54 = vpop.f32.mrb[15].mxu1  ;;  %v1332_v55 = vsel %vm1328_vm4, %v1325_v51, -inf }
 0x2a0   : > { %1333 = vmax.xlane.f32.xlu0 %v1332_v55 }
 0x2a4   : > { %v1272_v56 = vpop.f32.mrb[16].mxu1 }
 0x2a5   : > { %v1326_v57 = vmul.f32 0.088388346, %v1272_v56  ;;  %v2010_v58 = vpop.f32.mrb[17].mxu1 }
 0x2a6   : > { %v1275_v59 = vpop.f32.mrb[18].mxu1 }
 0x2a7   : > { %v2011_v60 = vpop.f32.mrb[19].mxu1  ;;  %v1335_v61 = vsel %vm1328_vm4, %v1326_v57, -inf }
 0x2a8   : > { %1336 = vmax.xlane.f32.xlu1 %v1335_v61 }
 0x2ac   : > { %v1318_v62 = vpop.f32.mrb[20].mxu1 }
 0x2ad   : > { %v1327_v63 = vmul.f32 0.088388346, %v1318_v62  ;;  %v2016_v1 = vpop.f32.mrb[21].mxu1 }
 0x2ae   : > { %v1321_v0 = vpop.f32.mrb[22].mxu1 }
 0x2af   : > { %v2017_v2 = vpop.f32.mrb[23].mxu1  ;;  %v1338_v3 = vsel %vm1328_vm4, %v1327_v63, -inf }
 0x2b0   : > { %1339 = vmax.xlane.f32.xlu1 %v1338_v3 }
 0x325   : > { %v1331_v4 = vpop.xlane.xlu0 %1330 }
 0x326   : > { %v1341_v5 = vsub.f32 %v1324_v45, %v1331_v4 }
 0x328   : > { %v1345_v6 = vmul.f32 1.442695, %v1341_v5 }
 0x32a   : > { %2162 = vpow2.f32 %v1345_v6  ;;  %v1957_v6 = vld [vmem:[%s2820_s6] ss:$0 sm:$0xff] }
 0x32d   : > { %v1334_v7 = vpop.xlane.xlu0 %1333 }
 0x32e   : > { %v1342_v8 = vsub.f32 %v1325_v51, %v1334_v7  ;;  %v2161_v51 = vld [vmem:[#allocation8 + $0x38] sm:$0xff]  }
 0x330   : > { %v1347_v9 = vmul.f32 1.442695, %v1342_v8 }
 0x332   : > { %2164 = vpow2.f32 %v1347_v9 }
 0x334   : > { %v2163_v10 = vpop.eup %2162 }
 0x335   : > { %v1337_v11 = vpop.xlane.xlu1 %1336  ;;  %v1353_v12 = vsel %vm1328_vm4, %v2163_v10, 0.0 }
 0x336   : > { %v1343_v13 = vsub.f32 %v1326_v57, %v1337_v11  ;;  %1354 = vadd.xlane.f32.xlu0 %v1353_v12 }
 0x338   : > { %v1349_v14 = vmul.f32 1.442695, %v1343_v13 }
 0x33a   : > { %2166 = vpow2.f32 %v1349_v14 }
 0x33c   : > { %v2165_v15 = vpop.eup %2164 }
 0x33d   : > { %v1340_v16 = vpop.xlane.xlu1 %1339  ;;  %v1356_v17 = vsel %vm1328_vm4, %v2165_v15, 0.0 }
 0x33e   : > { %v1344_v18 = vsub.f32 %v1327_v63, %v1340_v16  ;;  %1357 = vadd.xlane.f32.xlu1 %v1356_v17 }
 0x340   : > { %v1351_v19 = vmul.f32 1.442695, %v1344_v18 }
 0x342   : > { %2168 = vpow2.f32 %v1351_v19 }
 0x344   : > { %v2167_v20 = vpop.eup %2166 }
 0x345   : > { %v1359_v21 = vsel %vm1328_vm4, %v2167_v20, 0.0 }
 0x346   : > { %1360 = vadd.xlane.f32.xlu0 %v1359_v21 }
 0x34c   : > { %v2169_v22 = vpop.eup %2168 }
 0x34d   : > { %v1362_v24 = vsel %vm1328_vm4, %v2169_v22, 0.0 }
 0x34e   : > { %1363 = vadd.xlane.f32.xlu1 %v1362_v24 }
 0x3c3   : > { %v1355_v27 = vpop.xlane.xlu0 %1354 }
 0x3c4   : > { %2170 = vrcp.f32 %v1355_v27 }
 0x3cb   : > { %v1358_v28 = vpop.xlane.xlu1 %1357 }
 0x3cc   : > { %2172 = vrcp.f32 %v1358_v28 }
 0x3ce   : > { %v2171_v29 = vpop.eup %2170 }
 0x3cf   : > { %v1369_v31 = vmul.f32 %v2171_v29, %v2163_v10 }
 0x3d1   : > { %v1373_v33 = vpack.c.bf16 %v1369_v31, %v1369_v31 }
 0x3d3   : > { %2021 = vmatmul.mubr.msk.bf16.vlgmr.msra.gmra.mrb[8].mxu0 %vm1328_vm4, %v1373_v33  ;;  %v1361_v35 = vpop.xlane.xlu0 %1360 }
 0x3d4   : > { %2174 = vrcp.f32 %v1361_v35  ;;  %2031 = vmatpush3.bf16.msra.mxu0 %v2152_v32  ;;  %2032 = vmatprep.mubr.msk.bf16.mxu0 %vm2385_vm3, %v2384_v30 }
 0x3d5   : > { %2042 = vmatprep.subr.bf16.mxu0 %v2154_v34 }
 0x3d6   : > { %v2173_v36 = vpop.eup %2172 }
 0x3d7   : > { %v1370_v37 = vmul.f32 %v2173_v36, %v2165_v15 }
 0x3d9   : > { %v1374_v39 = vpack.c.bf16 %v1370_v37, %v1370_v37 }
 0x3db   : > { %2027 = vmatmul.mubr.msk.bf16.vlgmr.msra.gmra.mrb[24].mxu1 %vm1328_vm4, %v1374_v39  ;;  %v1364_v23 = vpop.xlane.xlu1 %1363 }
 0x3dc   : > { %2176 = vrcp.f32 %v1364_v23  ;;  %2037 = vmatpush3.bf16.msra.mxu1 %v2153_v38  ;;  %2038 = vmatprep.mubr.msk.bf16.mxu1 %vm2385_vm3, %v2384_v30  ;;  %v2158_v30 = vld [vmem:[#allocation8 + $0x20] sm:$0xff]  }
 0x3de   : > { %v2175_v40 = vpop.eup %2174 }
 0x3df   : > { %v1371_v41 = vmul.f32 %v2175_v40, %v2167_v20 }
 0x3e1   : > { %v1375_v42 = vpack.c.bf16 %v1371_v41, %v1371_v41 }
 0x3e3   : > { %2033 = vmatmul.mubr.msk.bf16.vlgmr.msra.gmra.mrb[12].mxu0 %vm1328_vm4, %v1375_v42 }
 0x3e4   : > { %2043 = vmatpush3.bf16.msra.mxu0 %v2154_v34 }
 0x3e5   : > { %2044 = vmatprep.subr.bf16.mxu0 %v2155_v43 }
 0x3e6   : > { %v2177_v44 = vpop.eup %2176 }
 0x3e7   : > { %v1372_v45 = vmul.f32 %v2177_v44, %v2169_v22 }
 0x3e8   : > { %2045 = vmatpush3.bf16.msra.mxu0 %v2155_v43 }
 0x3e9   : > { %v1376_v46 = vpack.c.bf16 %v1372_v45, %v1372_v45  ;;  %2046 = vmatprep.subr.bf16.mxu0 %v2156_v47 }
 0x3eb   : > { %2039 = vmatmul.mubr.msk.bf16.vlgmr.msra.gmra.mrb[28].mxu1 %vm1328_vm4, %v1376_v46 }
 0x3ec   : > { %2047 = vmatpush3.bf16.msra.mxu0 %v2156_v47 }
 0x3ed   : > { %2048 = vmatprep.subr.bf16.mxu0 %v2157_v48 }
 0x3f0   : > { %2049 = vmatpush3.bf16.msra.mxu0 %v2157_v48 }
 0x3f1   : > { %2050 = vmatprep.subr.bf16.mxu0 %v2158_v30 }
 0x3f4   : > { %2051 = vmatpush3.bf16.msra.mxu0 %v2158_v30 }
 0x3f5   : > { %2052 = vmatprep.subr.bf16.mxu0 %v2159_v49 }
 0x3f8   : > { %2053 = vmatpush3.bf16.msra.mxu0 %v2159_v49 }
 0x3f9   : > { %2054 = vmatprep.subr.bf16.mxu0 %v2160_v50 }
 0x3fc   : > { %2055 = vmatpush3.bf16.msra.mxu0 %v2160_v50 }
 0x3fd   : > { %2056 = vmatprep.subr.bf16.mxu0 %v2161_v51 }
 0x400   : > { %2057 = vmatpush3.bf16.msra.mxu0 %v2161_v51 }
 0x4a6   : > { %v1428_v52 = vpop.f32.mrb[8].mxu0 }
 0x4a7   : > { %v2022_v53 = vpop.f32.mrb[9].mxu0 }
 0x4a8   : > { %v1431_v54 = vpop.f32.mrb[10].mxu0 }
 0x4a9   : > { %v2023_v55 = vpop.f32.mrb[11].mxu0 }
 0x4ae   : > { %v1477_v56 = vpop.f32.mrb[24].mxu1 }
 0x4af   : > { %v1581_v57 = vpack.c.bf16 %v1477_v56, %v1428_v52  ;;  %v2028_v58 = vpop.f32.mrb[25].mxu1 }
 0x4b0   : > { %v1480_v59 = vpop.f32.mrb[26].mxu1 }
 0x4b1   : > { %v2029_v60 = vpop.f32.mrb[27].mxu1  ;;  %2058 = vmatprep.mubr.bf16.mxu0 %v1581_v57 }
 0x4b6   : > { %v1526_v61 = vpop.f32.mrb[12].mxu0 }
 0x4b7   : > { %v2034_v62 = vpop.f32.mrb[13].mxu0 }
 0x4b8   : > { %v1529_v63 = vpop.f32.mrb[14].mxu0 }
 0x4b9   : > { %v2035_v1 = vpop.f32.mrb[15].mxu0 }
 0x4be   : > { %v1575_v0 = vpop.f32.mrb[28].mxu1 }
 0x4bf   : > { %v1582_v2 = vpack.c.bf16 %v1575_v0, %v1526_v61  ;;  %v2040_v3 = vpop.f32.mrb[29].mxu1 }
 0x4c0   : > { %v1578_v4 = vpop.f32.mrb[30].mxu1 }
 0x4c1   : > { %v2041_v5 = vpop.f32.mrb[31].mxu1  ;;  %2059 = vmatmul.mubr.bf16.vlgmr.msra.gmra.mrb[16].mxu0 %v1582_v2 }
 0x594   : > { %v2060_v7 = vpop.f32.mrb[16].mxu0 }
 0x595   : > { %v1705_v8 = vadd.f32 %v2060_v7, %v1957_v6  ;;  %v1681_v9 = vpop.f32.mrb[17].mxu0 }
 0x596   : > { %v1703_v10 = vadd.f32 %v1957_v6, %v1681_v9  ;;  %v2061_v11 = vpop.f32.mrb[18].mxu0 }
 0x597   : > { %1709 = vst [vmem:[%s381_s10 + $0x10] sm:$0xff] %v1705_v8  ;;  %v1706_v12 = vadd.f32 %v2061_v11, %v1957_v6  ;;  %v1684_v13 = vpop.f32.mrb[19].mxu0 }
 0x598   : > { %1707 = vst [vmem:[%s381_s10] sm:$0xff] %v1703_v10  ;;  %v1704_v14 = vadd.f32 %v1957_v6, %v1684_v13 }
 0x599   : > { %1710 = vst [vmem:[%s381_s10 + $0x18] sm:$0xff] %v1706_v12 }
 0x59a   : > { %1708 = vst [vmem:[%s381_s10 + $0x8] sm:$0xff] %v1704_v14 }
 0x59b   : > { %2307 = shalt.err (!%p2304_p9)
}
 0x59c   : > { %s2308_s29 = scalar_lea.hbm %s2770_s14, 512  ;;  %s2312_s17 = scalar_lea.hbm %s2821_s7, 1024 }
 0x59d   : > { %p2309_p0 = scmp.ne.s32.totalorder %s2770_s14, %s2308_s29  ;;  %p2313_p1 = scmp.lt.u32.totalorder %s2770_s14, %s2821_s7 }
 0x59e   : > { %p2314_p12 = scmp.lt.u32.totalorder %s2312_s17, %s2308_s29  ;;  %p2316_p13 = scmp.lt.u32.totalorder %s2308_s29, %s2770_s14 }
 0x59f   : > { %p2310_p8 = pnand %p2309_p0, %p2851_p6 }
 0x5a0   : > { %p2315_p2 = por %p2314_p12, %p2313_p1 }
 0x5a1   : > { %p2311_p11 = pneg %p2310_p8 }
 0x5a2   : > { %p2317_p10 = por %p2316_p13, %p2315_p2 }
 0x5a4   : > { %p2318_p4 = pnand %p2317_p10, %p2311_p11 }
 0x5a6   : > { %2321 = shalt.err (!%p2318_p4)
}
 0x5a7   : > { %s2389_s11 = smov 128   ;;  %s2390_s10 = smov 8  }
 0x5a8   : > { %2074 = dma.vmem_to_hbm [thread:$0]  (%p2851_p6), %s2765_s1, 512, %s2770_s14, %s1712_s28, %s2389_s11, %s2389_s11, %s2390_s10  }
 0x5a9 PF: > { %s1740_s15 = sand.u32 1, %s2360_s24   ;;  %p2852_p7 = scmp.ne.s32.totalorder %s2833_s8, 0 }
 0x5aa   : > { %p2853_p3 = scmp.ge.s32.totalorder %s2372_s27, 2  ;;  %s1741_s18 = scalar_lea.sflag [#allocation4], %s1740_s15 }
 0x5ac   : > { %p2091_p5 = pnand %p2853_p3, %p2852_p7 }
 0x5ae   : > { %2355 = dma.done.wait (!%p2091_p5), %s1741_s18, 512  }
 0x5af   : > { %2357 = vsyncadd (!%p2091_p5), %s1741_s18, 4294966784  ;;  %s2854_s9 = sld [smem:[#allocation16_spill]]  ;;  %p24_p9 = scmp.ge.s32.totalorder %s2544_s13, 4  }
 0x5b0   : > { %s2855_s24 = smov %s2364_s25  ;;  %s2856_s25 = smov %s2368_s26 }
 0x5b1   : > { %s2858_s27 = smov %s2544_s13  ;;  %26 = sbr.rel (!%p24_p9) target bundleno = 12 (0xc), region = 117 }
 0x5b5   : > { %s2857_s26 = smov %s2854_s9 }
 0x5b8   :  { %1746 = vsyncpa [#allocation3], 1 }
 0x5b9   :  { %1748 = vsyncpa [#allocation3 + $0x1], 1 }
 0x5ba   :  { %1749 = vsyncpa [#allocation6], 1 }
 0x5bb   :  { %1751 = vsyncpa [#allocation6 + $0x1], 1 }
 0x5bc   :  { %1752 = vsyncpa [#allocation9], 1 }
 0x5bd   :  { %1753 = vsyncpa [#allocation4], 1 }
 0x5be   :  { %1755 = vsyncpa [#allocation4 + $0x1], 1 }

// kernel: tpu_custom_call.1
= control target key start
LH: loop header
LB: loop body
LE: loop exit
PB: predicated region body
PF: predicated region fallthrough
CT: control target
= control target key end

     0   :  { %s3064_s0 = inlined_call_operand.vmem [shape: bf16[8,1,128], index: 0, kind: input, shape index: {}]   ;;  %s3065_s1 = inlined_call_operand.hbm [shape: bf16[8,16,128], index: 1, kind: input, shape index: {}]   ;;  %s3066_s2 = inlined_call_operand.hbm [shape: bf16[8,16,128], index: 2, kind: input, shape index: {}]   ;;  %s3067_s3 = inlined_call_operand.hbm [shape: bf16[128,1024], index: 3, kind: input, shape index: {}]   ;;  %s3068_s4 = inlined_call_operand.vmem [shape: f32[1,1024], index: 4, kind: input, shape index: {}]   ;;  %s3069_s5 = inlined_call_operand.hbm [shape: bf16[128,128], index: 5, kind: input, shape index: {}]   ;;  %s3070_s6 = inlined_call_operand.vmem [shape: f32[1,128], index: 6, kind: input, shape index: {}]   ;;  %s3071_s7 = inlined_call_operand.hbm [shape: f32[8,8,128], index: 7, kind: output, shape index: {}]  }
   0x1   :  { %3079 = sst [smem:[#allocation18_spill]] %s3065_s1 }
   0x2   :  { %3080 = sst [smem:[#allocation19_spill]] %s3067_s3 }
   0x3   :  { %3081 = sst [smem:[#allocation20_spill]] %s3069_s5 }
   0x4   :  { %12 = vsyncpa [#allocation4], 0 }
   0x5   :  { %14 = vsyncpa [#allocation4 + $0x1], 0 }
   0x6   :  { %15 = vsyncpa [#allocation7], 0 }
   0x7   :  { %17 = vsyncpa [#allocation7 + $0x1], 0 }
   0x8   :  { %18 = vsyncpa [#allocation10], 0 }
   0x9   :  { %19 = vsyncpa [#allocation5], 0 }
   0xa   :  { %21 = vsyncpa [#allocation5 + $0x1], 0  ;;  %s2643_s24 = smov 0   ;;  %s2645_s25 = smov 0  }
   0xb   :  { %s2647_s26 = smov 0   ;;  %s2649_s27 = smov 0  }
   0xc LB: > { %s2664_s28 = sadd.s32 4294967295, %s2586_s27   ;;  %s2049_s29 = sadd.s32 4294967294, %s2586_s27   ;;  %s2586_s27 = sphi %s2649_s27, %s3108_s27   ;;  %s2582_s26 = sphi %s2647_s26, %s3107_s26   ;;  %s2578_s25 = sphi %s2645_s25, %s3106_s25   ;;  %s2574_s24 = sphi %s2643_s24, %s3105_s24  }
   0xd   : > { %p73_p0 = scmp.ne.s32.totalorder %s2578_s25, %s2574_s24  ;;  %p3072_p1 = scmp.eq.s32.totalorder %s2664_s28, 0 }
   0xe   : > { %p213_p3 = scmp.eq.s32.totalorder %s2049_s29, 1  ;;  %p2050_p5 = scmp.ge.s32.totalorder %s2586_s27, 1 }
   0xf   : > { %p2673_p4 = por %p3072_p1, %p73_p0  ;;  %p220_p7 = scmp.lt.s32.totalorder %s2586_s27, 3 }
  0x10   : > { %p2678_p6 = por %p213_p3, %p73_p0  ;;  %s2588_s10 = smov [#allocation8]  }
  0x11   : > { %s3082_s30 = scalar_select %p2673_p4, 1, 0 }
  0x12   : > { %s3083_s8 = scalar_select %p2678_p6, 1, 0 }
  0x13   : > { %p2683_p8 = pnand %p2050_p5, %p220_p7  ;;  %s232_s11 = sshll.u32 %s2588_s10, 4  ;;  %s2687_s11 = int_to_ptr.vmem [resolvable:$true] %s232_s11 }
  0x14   : > { %s2589_s13 = smov [#allocation9]   ;;  %s3086_s3 = sld [smem:[#allocation19_spill]] }
  0x15   : > { %p2292_p9 = pneg %p2683_p8  ;;  %s248_s14 = sshll.u32 %s2589_s13, 4  ;;  %s2698_s14 = int_to_ptr.vmem [resolvable:$true] %s248_s14 }
  0x17   : > { %p2694_p11 = pnand %p2292_p9, %p3072_p1 }
  0x19   : > { %p2394_p13 = pneg %p2694_p11 }
  0x1a   : > { %s2392_s17 = scalar_lea.hbm %s3086_s3, 8192 }
  0x1b   : > { %p2393_p12 = scmp.ne.s32.totalorder %s3086_s3, %s2392_s17  ;;  %p2399_p5 = scmp.lt.u32.totalorder %s2392_s17, %s3086_s3 }
  0x1d   : > { %p2395_p0 = pnand %p2394_p13, %p2393_p12 }
  0x1f   : > { %p2396_p3 = pneg %p2395_p0 }
  0x21   : > { %p2401_p7 = pnand %p2399_p5, %p2396_p3 }
  0x23   : > { %2404 = shalt.err (!%p2401_p7)
}
  0x24   : > { %s2405_s22 = scalar_lea.vmem %s2687_s11, 8192  ;;  %p2413_p2 = scmp.lt.s32.totalorder %s2687_s11, %s2687_s11 }
  0x25   : > { %p2406_p9 = scmp.ne.s32.totalorder %s2687_s11, %s2405_s22  ;;  %p2414_p12 = scmp.lt.s32.totalorder %s2405_s22, %s2405_s22 }
  0x27   : > { %p2408_p10 = pnand %p2406_p9, %p2394_p13  ;;  %p2415_p0 = por %p2414_p12, %p2413_p2 }
  0x29   : > { %p2409_p1 = pneg %p2408_p10 }
  0x2b   : > { %p2416_p6 = pnand %p2415_p0, %p2409_p1 }
  0x2d   : > { %2419 = shalt.err (!%p2416_p6)
}
  0x2e   : > { %s2590_s23 = smov 512   ;;  %s2591_s29 = smov 32  }
  0x2f   : > { %2295 = dma.hbm_to_vmem [thread:$0]  (!%p2694_p11), %s3086_s3, 8192, %s2687_s11, [#allocation7], %s2590_s23, %s2590_s23, %s2591_s29  }
  0x30   : > { %s3087_s5 = sld [smem:[#allocation20_spill]] }
  0x36   : > { %s2420_s17 = scalar_lea.hbm %s3087_s5, 1024 }
  0x37   : > { %p2421_p2 = scmp.ne.s32.totalorder %s3087_s5, %s2420_s17  ;;  %p2427_p10 = scmp.lt.u32.totalorder %s2420_s17, %s3087_s5 }
  0x39   : > { %p2423_p1 = pnand %p2421_p2, %p2394_p13 }
  0x3b   : > { %p2424_p6 = pneg %p2423_p1 }
  0x3d   : > { %p2429_p3 = pnand %p2427_p10, %p2424_p6 }
  0x3f   : > { %2432 = shalt.err (!%p2429_p3)
}
  0x40   : > { %s2433_s11 = scalar_lea.vmem %s2698_s14, 1024  ;;  %p2441_p12 = scmp.lt.s32.totalorder %s2698_s14, %s2698_s14 }
  0x41   : > { %p2434_p5 = scmp.ne.s32.totalorder %s2698_s14, %s2433_s11  ;;  %p2442_p0 = scmp.lt.s32.totalorder %s2433_s11, %s2433_s11 }
  0x43   : > { %p2436_p7 = pnand %p2434_p5, %p2394_p13  ;;  %p2443_p2 = por %p2442_p0, %p2441_p12 }
  0x45   : > { %p2437_p9 = pneg %p2436_p7 }
  0x47   : > { %p2444_p1 = pnand %p2443_p2, %p2437_p9 }
  0x49   : > { %2447 = shalt.err (!%p2444_p1)
}
  0x4a   : > { %s3073_s22 = smov 64   ;;  %s3075_s23 = smov 4  }
  0x4b   : > { %2298 = dma.hbm_to_vmem [thread:$0]  (!%p2694_p11), %s3087_s5, 1024, %s2698_s14, [#allocation10], %s3073_s22, %s3073_s22, %s3075_s23  }
  0x4c   : > { %s2756_s13 = sadd.s32 1, %s2586_s27   ;;  %s60_s16 = sadd.s32 1, %s2582_s26 }
  0x4d   : > { %s57_s15 = ssub.s32 %s2586_s27, %s2756_s13  ;;  %p67_p6 = scmp.ne.s32.totalorder %s2582_s26, %s2578_s25 }
  0x4e   : > { %p58_p13 = scmp.eq.s32.totalorder %s57_s15, 0  ;;  %p68_p10 = scmp.eq.s32.totalorder %s2586_s27, 0 }
  0x4f   : > { %p3089_p5 = scmp.eq.s32.totalorder %s2664_s28, 1  ;;  %p2312_p9 = scmp.lt.s32.totalorder %s2586_s27, 2 }
  0x50   : > { %s2765_s17 = scalar_select %p58_p13, %s2582_s26, %s60_s16  }
  0x51   : > { %p69_p3 = por %p68_p10, %p67_p6  ;;  %p2769_p7 = por %p3089_p5, %p67_p6 }
  0x52   : > { %3088 = sst [smem:[#allocation17_spill]] %s2765_s17  ;;  %s273_s18 = sand.u32 1, %s2582_s26  }
  0x53   : > { %s3090_s12 = scalar_select %p2769_p7, 1, 0 }
  0x54   : > { %s2054_s19 = sshll.u32 %s273_s18, 5  ;;  %s2180_s14 = sshll.u32 %s2586_s27, 9 }
  0x55   : > { %s3091_s1 = sld [smem:[#allocation18_spill]]  ;;  %s277_s29 = scalar_lea.vmem [#allocation3], %s2054_s19 }
  0x56   : > { %s285_s10 = sshll.u32 %s277_s29, 4  ;;  %p2783_p11 = pnand %p2312_p9, %p69_p3  ;;  %s2781_s10 = int_to_ptr.vmem [resolvable:$true] %s285_s10 }
  0x57   : > { %s2790_s20 = scalar_lea.hbm %s3066_s2, %s2180_s14  ;;  %s299_s21 = scalar_lea.vmem [#allocation6], %s2054_s19 }
  0x58   : > { %s2792_s23 = sshll.u32 %s299_s21, 4  ;;  %s2794_s3 = scalar_lea.sflag [#allocation4], %s273_s18  ;;  %s2826_s23 = int_to_ptr.vmem [resolvable:$true] %s2792_s23 }
  0x59   : > { %p2450_p0 = pneg %p2783_p11 }
  0x5b   : > { %s2779_s11 = scalar_lea.hbm %s3091_s1, %s2180_s14  ;;  %s2453_s22 = scalar_lea.hbm %s3091_s1, 1024 }
  0x5c   : > { %s2448_s29 = scalar_lea.hbm %s2779_s11, 512  ;;  %p2454_p13 = scmp.lt.u32.totalorder %s2779_s11, %s3091_s1 }
  0x5d   : > { %p2449_p12 = scmp.ne.s32.totalorder %s2779_s11, %s2448_s29  ;;  %p2455_p6 = scmp.lt.u32.totalorder %s2453_s22, %s2448_s29 }
  0x5e   : > { %p2457_p3 = scmp.lt.u32.totalorder %s2448_s29, %s2779_s11 }
  0x5f   : > { %p2451_p2 = pnand %p2450_p0, %p2449_p12  ;;  %p2456_p10 = por %p2455_p6, %p2454_p13 }
  0x61   : > { %p2452_p1 = pneg %p2451_p2  ;;  %p2458_p5 = por %p2457_p3, %p2456_p10 }
  0x63   : > { %p2459_p9 = pnand %p2458_p5, %p2452_p1 }
  0x65   : > { %2462 = shalt.err (!%p2459_p9)
}
  0x66   : > { %s2463_s18 = scalar_lea.vmem %s2781_s10, 512  ;;  %s2594_s5 = smov [#allocation3]  }
  0x67   : > { %p2464_p12 = scmp.ne.s32.totalorder %s2781_s10, %s2463_s18  ;;  %s2468_s17 = sshll.u32 %s2594_s5, 4  ;;  %s2469_s17 = int_to_ptr.vmem [resolvable:$false] %s2468_s17 }
  0x68   : > { %s2470_s19 = scalar_lea.vmem %s2469_s17, 1024  ;;  %p2471_p4 = scmp.lt.s32.totalorder %s2781_s10, %s2469_s17 }
  0x69   : > { %p2466_p2 = pnand %p2464_p12, %p2450_p0  ;;  %p2472_p13 = scmp.lt.s32.totalorder %s2470_s19, %s2463_s18 }
  0x6b   : > { %p2467_p7 = pneg %p2466_p2  ;;  %p2473_p6 = por %p2472_p13, %p2471_p4 }
  0x6d   : > { %p2474_p10 = pnand %p2473_p6, %p2467_p7 }
  0x6f   : > { %2477 = shalt.err (!%p2474_p10)
}
  0x70   : > { %s3093_s21 = smov 4   ;;  %s3094_s29 = smov 64  }
  0x71   : > { %2302 = dma.hbm_to_vmem [thread:$0]  (!%p2783_p11), %s2779_s11, 512, %s2781_s10, %s2794_s3, %s3094_s29, %s3094_s29, %s3093_s21  }
  0x72   : > { %s295_s22 = sand.u32 1, %s2586_s27   ;;  %s2478_s14 = scalar_lea.hbm %s2790_s20, 512 }
  0x73   : > { %s2829_s16 = scalar_lea.sflag [#allocation7], %s295_s22  ;;  %p2479_p4 = scmp.ne.s32.totalorder %s2790_s20, %s2478_s14 }
  0x74   : > { %s2483_s17 = scalar_lea.hbm %s3066_s2, 1024  ;;  %p2484_p3 = scmp.lt.u32.totalorder %s2790_s20, %s3066_s2 }
  0x75   : > { %p2481_p7 = pnand %p2479_p4, %p2450_p0  ;;  %p2485_p5 = scmp.lt.u32.totalorder %s2483_s17, %s2478_s14 }
  0x76   : > { %p2487_p12 = scmp.lt.u32.totalorder %s2478_s14, %s2790_s20 }
  0x77   : > { %p2482_p1 = pneg %p2481_p7  ;;  %p2486_p9 = por %p2485_p5, %p2484_p3 }
  0x79   : > { %p2488_p2 = por %p2487_p12, %p2486_p9 }
  0x7b   : > { %p2489_p13 = pnand %p2488_p2, %p2482_p1 }
  0x7d   : > { %2492 = shalt.err (!%p2489_p13)
}
  0x7e   : > { %s2493_s3 = scalar_lea.vmem %s2826_s23, 512  ;;  %s2595_s11 = smov [#allocation6]  }
  0x7f   : > { %p2494_p6 = scmp.ne.s32.totalorder %s2826_s23, %s2493_s3  ;;  %s2498_s10 = sshll.u32 %s2595_s11, 4  ;;  %s2499_s10 = int_to_ptr.vmem [resolvable:$false] %s2498_s10 }
  0x80   : > { %s2500_s1 = scalar_lea.vmem %s2499_s10, 1024  ;;  %p2501_p7 = scmp.lt.s32.totalorder %s2826_s23, %s2499_s10 }
  0x81   : > { %p2496_p10 = pnand %p2494_p6, %p2450_p0  ;;  %p2502_p3 = scmp.lt.s32.totalorder %s2500_s1, %s2493_s3 }
  0x83   : > { %p2497_p4 = pneg %p2496_p10  ;;  %p2503_p5 = por %p2502_p3, %p2501_p7 }
  0x85   : > { %p2504_p9 = pnand %p2503_p5, %p2497_p4 }
  0x87   : > { %2507 = shalt.err (!%p2504_p9)
}
  0x88   : > { %2305 = dma.hbm_to_vmem [thread:$0]  (!%p2783_p11), %s2790_s20, 512, %s2826_s23, %s2829_s16, %s3094_s29, %s3094_s29, %s3093_s21  }
  0x89   : > { %319 = sbr.rel (%p2683_p8) target bundleno = 1452 (0x5ac), region = 48  ;;  %s2861_s22 = sand.u32 (!%p2683_p8), 1, %s2578_s25  }
  0x8a   : > { %s2864_s14 = sshll.u32 (!%p2683_p8), %s2861_s22, 5  ;;  %s322_s15 = scalar_lea.sflag (!%p2683_p8), [#allocation4], %s2861_s22 }
  0x8b   : > { %s2868_s18 = scalar_lea.vmem (!%p2683_p8), [#allocation3], %s2864_s14  ;;  %p3095_p0 = scmp.ne.s32.totalorder (!%p2683_p8), %s3082_s30, 0 }
  0x90   : > { %2553 = dma.done.wait (%p3095_p0), %s322_s15, 512  }
  0x91   : > { %2555 = vsyncadd (%p3095_p0), %s322_s15, 4294966784  ;;  %s330_s9 = sand.u32 1, %s2664_s28   ;;  %s2876_s20 = scalar_lea.vmem [#allocation6], %s2864_s14 }
  0x92   : > { %s331_s23 = scalar_lea.sflag [#allocation7], %s330_s9 }
  0x93   : > { %2557 = dma.done.wait (%p3095_p0), %s331_s23, 512  }
  0x94   : > { %2559 = vsyncadd (%p3095_p0), %s331_s23, 4294966784  ;;  %p3096_p8 = scmp.eq.s32.totalorder %s2664_s28, 0 }
  0x96   : > { %2561 = dma.done.wait (%p3096_p8), [#allocation7], 8192   ;;  %p3097_p11 = pmov %p3096_p8 }
  0x97   : > { %p3098_p1 = pmov %p3096_p8 }
  0x98   : > { %2563 = vsyncadd (%p3097_p11), [#allocation7], 4294959104 }
  0x99   : > { %2565 = dma.done.wait (%p3098_p1), [#allocation10], 1024   ;;  %p3099_p12 = pmov %p3098_p1 }
  0x9a   : > { %v2596_v0 = vmov 0   ;;  %s2068_s30 = sshll.u32 %s2664_s28, 2  ;;  %v395_v1 = vld [vmem:[#allocation8] sm:$0xff]  ;;  %v396_v3 = vld [vmem:[#allocation8 + $0x8] sm:$0xff]  ;;  %v461_v4 = vlaneseq  ;;  %v2597_v5 = vmov 1966171168  }
  0x9b   : > { %2567 = vsyncadd (%p3099_p12), [#allocation10], 4294966272  ;;  %928 = vmatprep.mubr.bf16.mxu0 %v2596_v0  ;;  %969 = vmatprep.mubr.bf16.mxu1 %v2596_v0  ;;  %v399_v2 = vld [vmem:[#allocation8 + $0x20] sm:$0xff]  ;;  %p2893_p2 = scmp.lt.s32.totalorder %s2068_s30, 7  ;;  %v513_v6 = vunpack.c.l.s4 %v2597_v5  ;;  %v400_v8 = vld [vmem:[#allocation8 + $0x28] sm:$0xff]  ;;  %vm566_vm0 = vcmask 1041409  }
  0x9c   : > { %v2074_v7 = vcombine.high %v395_v1, %v399_v2  ;;  %v2073_v9 = vcombine.low %v395_v1, %v399_v2  ;;  %v403_v10 = vld [vmem:[#allocation8 + $0x40] sm:$0xff]  ;;  %v2076_v12 = vcombine.high %v396_v3, %v400_v8  ;;  %v2075_v13 = vcombine.low %v396_v3, %v400_v8  ;;  %v404_v15 = vld [vmem:[#allocation8 + $0x48] sm:$0xff]  ;;  %s381_s10 = scalar_lea.vmem [#allocation11], %s2864_s14  ;;  %s2183_s15 = sshll.u32 %s2664_s28, 9 }
  0x9d   : > { %v407_v11 = vld [vmem:[#allocation8 + $0x60] sm:$0xff]  ;;  %v408_v16 = vld [vmem:[#allocation8 + $0x68] sm:$0xff]  ;;  %s3110_s30 = smov (!%p2893_p2, %s2068_s30), 7  ;;  %v2899_v23 = vshrl.u32 %v461_v4, 7  ;;  %v514_v24 = vunpack.c.0.s8 %v513_v6  ;;  %vm569_vm1 = vcmask 1042434   ;;  %vm572_vm2 = vcmask 1043459   ;;  %s3020_s14 = scalar_lea.hbm %s3071_s7, %s2183_s15 }
  0x9e   : > { %v2082_v14 = vcombine.high %v403_v10, %v407_v11  ;;  %v411_v17 = vld [vmem:[#allocation8 + $0x80] sm:$0xff]  ;;  %896 = vmatprep.subr.bf16.mxu0 %v2074_v7  ;;  %v2084_v18 = vcombine.high %v404_v15, %v408_v16  ;;  %v412_v20 = vld [vmem:[#allocation8 + $0x88] sm:$0xff]  ;;  %937 = vmatprep.subr.bf16.mxu1 %v2076_v12  ;;  %v2081_v22 = vcombine.low %v403_v10, %v407_v11  ;;  %s385_s5 = scalar_lea.vmem %s3064_s0, %s3110_s30  ;;  %vm2599_vm3 = vmmov 0   ;;  %s1925_s1 = sshll.u32 %s381_s10, 4  ;;  %s3015_s1 = int_to_ptr.vmem [resolvable:$true] %s1925_s1 }
  0x9f   : > { %v415_v19 = vld [vmem:[#allocation8 + $0xa0] sm:$0xff]  ;;  %v416_v21 = vld [vmem:[#allocation8 + $0xa8] sm:$0xff]  ;;  %897 = vmatpush1.bf16.msra.mxu0 %v2073_v9  ;;  %938 = vmatpush1.bf16.msra.mxu1 %v2075_v13  ;;  %v2083_v25 = vcombine.low %v404_v15, %v408_v16  ;;  %v2905_v33 = vsub.s32 %v514_v24, %v2899_v23  ;;  %v2069_v39 = vld.sshfl [vmem:[%s385_s5] sm:$0x1 pattern:$0x75316420] }
  0xa0   : > { %898 = vmatprep.subr.bf16.mxu0 %v2082_v14  ;;  %v2090_v26 = vcombine.high %v411_v17, %v415_v19  ;;  %939 = vmatprep.subr.bf16.mxu1 %v2084_v18  ;;  %v2092_v27 = vcombine.high %v412_v20, %v416_v21  ;;  %v419_v28 = vld [vmem:[#allocation8 + $0xc0] sm:$0xff]  ;;  %v420_v30 = vld [vmem:[#allocation8 + $0xc8] sm:$0xff]  ;;  %v2089_v32 = vcombine.low %v411_v17, %v415_v19  ;;  %v2070_v42 = vld.sshfl [vmem:[%s385_s5 + $0x1] sm:$0x1 pattern:$0x75316420] }
  0xa1   : > { %v423_v29 = vld [vmem:[#allocation8 + $0xe0] sm:$0xff]  ;;  %v424_v31 = vld [vmem:[#allocation8 + $0xe8] sm:$0xff]  ;;  %v2091_v34 = vcombine.low %v412_v20, %v416_v21  ;;  %v2071_v44 = vld.sshfl [vmem:[%s385_s5 + $0x2] sm:$0x1 pattern:$0x75316420]  ;;  %v532_v45 = vrot.slane %v2070_v42, %v2905_v33  ;;  %v518_v53 = vrot.slane %v2069_v39, %v2905_v33 }
  0xa2   : > { %v2098_v35 = vcombine.high %v419_v28, %v423_v29  ;;  %v2100_v36 = vcombine.high %v420_v30, %v424_v31  ;;  %v427_v37 = vld [vmem:[#allocation8 + $0x100] sm:$0xff]  ;;  %v428_v40 = vld [vmem:[#allocation8 + $0x108] sm:$0xff]  ;;  %v2097_v43 = vcombine.low %v419_v28, %v423_v29  ;;  %v2099_v46 = vcombine.low %v420_v30, %v424_v31  ;;  %v2072_v48 = vld.sshfl [vmem:[%s385_s5 + $0x3] sm:$0x1 pattern:$0x75316420] }
  0xa3   : > { %899 = vmatpush1.bf16.msra.mxu0 %v2081_v22  ;;  %940 = vmatpush1.bf16.msra.mxu1 %v2083_v25  ;;  %v431_v38 = vld [vmem:[#allocation8 + $0x120] sm:$0xff]  ;;  %v432_v41 = vld [vmem:[#allocation8 + $0x128] sm:$0xff]  ;;  %v546_v49 = vrot.slane %v2071_v44, %v2905_v33  ;;  %v560_v54 = vrot.slane %v2072_v48, %v2905_v33  ;;  %v562_v55 = vunpack.c.l.b16 %v532_v45  ;;  %v561_v2 = vunpack.c.l.b16 %v518_v53  ;;  %v397_v19 = vld [vmem:[#allocation8 + $0x10] sm:$0xff]  ;;  %s1912_s28 = scalar_lea.sflag [#allocation5], %s2861_s22  ;;  %s2508_s23 = scalar_lea.vmem %s3015_s1, 512 }
  0xa4   : > { %900 = vmatprep.subr.bf16.mxu0 %v2090_v26  ;;  %941 = vmatprep.subr.bf16.mxu1 %v2092_v27  ;;  %v2106_v47 = vcombine.high %v427_v37, %v431_v38  ;;  %v2108_v50 = vcombine.high %v428_v40, %v432_v41  ;;  %v435_v51 = vld [vmem:[#allocation8 + $0x140] sm:$0xff]  ;;  %v436_v56 = vld [vmem:[#allocation8 + $0x148] sm:$0xff]  ;;  %v2105_v58 = vcombine.low %v427_v37, %v431_v38  ;;  %v401_v20 = vld [vmem:[#allocation8 + $0x30] sm:$0xff]  ;;  %vm1528_vm4 = vcmask 130048   ;;  %p2509_p13 = scmp.ne.s32.totalorder %s3015_s1, %s2508_s23  ;;  %p3101_p6 = scmp.ne.s32.totalorder %s3090_s12, 0 }
  0xa5   : > { %v439_v52 = vld [vmem:[#allocation8 + $0x160] sm:$0xff]  ;;  %v440_v57 = vld [vmem:[#allocation8 + $0x168] sm:$0xff]  ;;  %v2107_v59 = vcombine.low %v428_v40, %v432_v41  ;;  %v563_v61 = vunpack.c.l.b16 %v546_v49  ;;  %v564_v3 = vunpack.c.l.b16 %v560_v54  ;;  %v565_v4 = vrot.slane %v562_v55, 7  ;;  %v398_v25 = vld [vmem:[#allocation8 + $0x18] sm:$0xff] }
  0xa6   : > { %v2114_v60 = vcombine.high %v435_v51, %v439_v52  ;;  %v2116_v62 = vcombine.high %v436_v56, %v440_v57  ;;  %v443_v63 = vld [vmem:[#allocation8 + $0x180] sm:$0xff]  ;;  %v444_v5 = vld [vmem:[#allocation8 + $0x188] sm:$0xff]  ;;  %v2113_v7 = vcombine.low %v435_v51, %v439_v52  ;;  %v2115_v8 = vcombine.low %v436_v56, %v440_v57  ;;  %v402_v26 = vld [vmem:[#allocation8 + $0x38] sm:$0xff]  ;;  %p2510_p10 = pnand %p2509_p13, %p3101_p6 }
  0xa7   : > { %901 = vmatpush1.bf16.msra.mxu0 %v2089_v32  ;;  %942 = vmatpush1.bf16.msra.mxu1 %v2091_v34  ;;  %v447_v1 = vld [vmem:[#allocation8 + $0x1a0] sm:$0xff]  ;;  %v448_v6 = vld [vmem:[#allocation8 + $0x1a8] sm:$0xff]  ;;  %v568_v11 = vrot.slane %v563_v61, 6  ;;  %v567_v16 = vsel %vm566_vm0, %v565_v4, %v561_v2  ;;  %v571_v17 = vrot.slane %v564_v3, 5  ;;  %v405_v30 = vld [vmem:[#allocation8 + $0x50] sm:$0xff]  ;;  %v2078_v34 = vcombine.high %v397_v19, %v401_v20 }
  0xa8   : > { %902 = vmatprep.subr.bf16.mxu0 %v2098_v35  ;;  %943 = vmatprep.subr.bf16.mxu1 %v2100_v36  ;;  %v2122_v9 = vcombine.high %v443_v63, %v447_v1  ;;  %v451_v10 = vld [vmem:[#allocation8 + $0x1c0] sm:$0xff]  ;;  %v2124_v12 = vcombine.high %v444_v5, %v448_v6  ;;  %v452_v14 = vld [vmem:[#allocation8 + $0x1c8] sm:$0xff]  ;;  %v2121_v18 = vcombine.low %v443_v63, %v447_v1  ;;  %v409_v31 = vld [vmem:[#allocation8 + $0x70] sm:$0xff]  ;;  %p2511_p4 = pneg %p2510_p10 }
  0xa9   : > { %v455_v13 = vld [vmem:[#allocation8 + $0x1e0] sm:$0xff]  ;;  %v456_v15 = vld [vmem:[#allocation8 + $0x1e8] sm:$0xff]  ;;  %v2123_v21 = vcombine.low %v444_v5, %v448_v6  ;;  %v570_v24 = vsel %vm569_vm1, %v568_v11, %v567_v16  ;;  %v406_v35 = vld [vmem:[#allocation8 + $0x58] sm:$0xff]  ;;  %v2080_v37 = vcombine.high %v398_v25, %v402_v26  ;;  %v2077_v39 = vcombine.low %v397_v19, %v401_v20 }
  0xaa   : > { %v2130_v22 = vcombine.high %v451_v10, %v455_v13  ;;  %v2132_v27 = vcombine.high %v452_v14, %v456_v15  ;;  %v2129_v28 = vcombine.low %v451_v10, %v455_v13  ;;  %v573_v29 = vsel %vm572_vm2, %v571_v17, %v570_v24  ;;  %v410_v36 = vld [vmem:[#allocation8 + $0x78] sm:$0xff]  ;;  %v417_v44 = vld [vmem:[#allocation8 + $0xb0] sm:$0xff] }
  0xab   : > { %903 = vmatpush1.bf16.msra.mxu0 %v2097_v43  ;;  %944 = vmatpush1.bf16.msra.mxu1 %v2099_v46  ;;  %v2131_v32 = vcombine.low %v452_v14, %v456_v15  ;;  %v2913_v38 = vpack.c.b16 %v573_v29, %v573_v29  ;;  %v2079_v40 = vcombine.low %v398_v25, %v402_v26  ;;  %v413_v43 = vld [vmem:[#allocation8 + $0x90] sm:$0xff]  ;;  %v414_v45 = vld [vmem:[#allocation8 + $0x98] sm:$0xff] }
  0xac   : > { %904 = vmatprep.subr.bf16.mxu0 %v2106_v47  ;;  %945 = vmatprep.subr.bf16.mxu1 %v2108_v50  ;;  %v2086_v41 = vcombine.high %v405_v30, %v409_v31  ;;  %v2088_v42 = vcombine.high %v406_v35, %v410_v36  ;;  %v418_v46 = vld [vmem:[#allocation8 + $0xb8] sm:$0xff]  ;;  %v2085_v47 = vcombine.low %v405_v30, %v409_v31  ;;  %v421_v51 = vld [vmem:[#allocation8 + $0xd0] sm:$0xff]  ;;  %v2360_v30 = vld [vmem:[%s2868_s18] sm:$0xff]   ;;  %v2598_v31 = vmov 0.0  }
  0xad   : > { %v2087_v48 = vcombine.low %v406_v35, %v410_v36  ;;  %v2094_v49 = vcombine.high %v413_v43, %v417_v44  ;;  %v2096_v50 = vcombine.high %v414_v45, %v418_v46  ;;  %v425_v52 = vld [vmem:[#allocation8 + $0xf0] sm:$0xff]  ;;  %v422_v53 = vld [vmem:[#allocation8 + $0xd8] sm:$0xff]  ;;  %v2093_v55 = vcombine.low %v413_v43, %v417_v44 }
  0xae   : > { %v426_v54 = vld [vmem:[#allocation8 + $0xf8] sm:$0xff]  ;;  %v2095_v56 = vcombine.low %v414_v45, %v418_v46  ;;  %v2102_v57 = vcombine.high %v421_v51, %v425_v52  ;;  %v2101_v63 = vcombine.low %v421_v51, %v425_v52  ;;  %v437_v3 = vld [vmem:[#allocation8 + $0x150] sm:$0xff]  ;;  %v471_v35 = vsub.s32 2, %v2899_v23 }
  0xaf   : > { %905 = vmatpush1.bf16.msra.mxu0 %v2105_v58  ;;  %946 = vmatpush1.bf16.msra.mxu1 %v2107_v59  ;;  %v2104_v58 = vcombine.high %v422_v53, %v426_v54  ;;  %v429_v59 = vld [vmem:[#allocation8 + $0x110] sm:$0xff]  ;;  %v430_v61 = vld [vmem:[#allocation8 + $0x118] sm:$0xff]  ;;  %v2103_v1 = vcombine.low %v422_v53, %v426_v54  ;;  %v467_v36 = vsub.s32 1, %v2899_v23 }
  0xb0   : > { %906 = vmatprep.subr.bf16.mxu0 %v2114_v60  ;;  %947 = vmatprep.subr.bf16.mxu1 %v2116_v62  ;;  %v433_v60 = vld [vmem:[#allocation8 + $0x130] sm:$0xff]  ;;  %v434_v62 = vld [vmem:[#allocation8 + $0x138] sm:$0xff] }
  0xb1   : > { %v2110_v2 = vcombine.high %v429_v59, %v433_v60  ;;  %v441_v4 = vld [vmem:[#allocation8 + $0x170] sm:$0xff]  ;;  %v438_v5 = vld [vmem:[#allocation8 + $0x158] sm:$0xff] }
  0xb2   : > { %v442_v6 = vld [vmem:[#allocation8 + $0x178] sm:$0xff]  ;;  %v445_v11 = vld [vmem:[#allocation8 + $0x190] sm:$0xff]  ;;  %v2117_v15 = vcombine.low %v437_v3, %v441_v4 }
  0xb3   : > { %907 = vmatpush1.bf16.msra.mxu0 %v2113_v7  ;;  %948 = vmatpush1.bf16.msra.mxu1 %v2115_v8  ;;  %v2109_v7 = vcombine.low %v429_v59, %v433_v60  ;;  %v2111_v8 = vcombine.low %v430_v61, %v434_v62  ;;  %v2120_v10 = vcombine.high %v438_v5, %v442_v6  ;;  %v446_v13 = vld [vmem:[#allocation8 + $0x198] sm:$0xff]  ;;  %v453_v19 = vld [vmem:[#allocation8 + $0x1d0] sm:$0xff] }
  0xb4   : > { %908 = vmatprep.subr.bf16.mxu0 %v2122_v9  ;;  %949 = vmatprep.subr.bf16.mxu1 %v2124_v12  ;;  %v2118_v9 = vcombine.high %v437_v3, %v441_v4  ;;  %v449_v12 = vld [vmem:[#allocation8 + $0x1b0] sm:$0xff]  ;;  %v450_v14 = vld [vmem:[#allocation8 + $0x1b8] sm:$0xff]  ;;  %v2119_v16 = vcombine.low %v438_v5, %v442_v6 }
  0xb5   : > { %v2126_v17 = vcombine.high %v445_v11, %v449_v12  ;;  %v457_v20 = vld [vmem:[#allocation8 + $0x1f0] sm:$0xff]  ;;  %v2125_v24 = vcombine.low %v445_v11, %v449_v12  ;;  %v2127_v25 = vcombine.low %v446_v13, %v450_v14 }
  0xb6   : > { %v2134_v26 = vcombine.high %v453_v19, %v457_v20 }
  0xb7   : > { %909 = vmatpush1.bf16.msra.mxu0 %v2121_v18  ;;  %950 = vmatpush1.bf16.msra.mxu1 %v2123_v21  ;;  %v2128_v18 = vcombine.high %v446_v13, %v450_v14  ;;  %v454_v21 = vld [vmem:[#allocation8 + $0x1d8] sm:$0xff]  ;;  %v479_v14 = vsub.s32 4, %v2899_v23 }
  0xb8   : > { %910 = vmatprep.subr.bf16.mxu0 %v2130_v22  ;;  %951 = vmatprep.subr.bf16.mxu1 %v2132_v27  ;;  %v458_v22 = vld [vmem:[#allocation8 + $0x1f8] sm:$0xff] }
  0xb9   : > { %v2136_v27 = vcombine.high %v454_v21, %v458_v22  ;;  %v2135_v29 = vcombine.low %v454_v21, %v458_v22 }
  0xbb   : > { %911 = vmatpush1.bf16.msra.mxu0 %v2129_v28  ;;  %952 = vmatpush1.bf16.msra.mxu1 %v2131_v32  ;;  %v2133_v28 = vcombine.low %v453_v19, %v457_v20  ;;  %v463_v32 = vsub.s32 0, %v2899_v23 }
  0xbc   : > { %978 = vmatprep.subr.bf16.mxu0 %v2078_v34  ;;  %1019 = vmatprep.subr.bf16.mxu1 %v2080_v37  ;;  %v2933_v34 = vld [vmem:[%s3068_s4] sm:$0xff]  ;;  %v475_v37 = vsub.s32 3, %v2899_v23 }
  0xbe   : > { %929 = vmatmul.mubr.bf16.vlgmr.msra.gmra.mrb[0].mxu0 %v2913_v38  ;;  %970 = vmatmul.mubr.bf16.vlgmr.msra.gmra.mrb[0].mxu1 %v2913_v38 }
  0xbf   : > { %979 = vmatpush1.bf16.msra.mxu0 %v2077_v39  ;;  %1020 = vmatpush1.bf16.msra.mxu1 %v2079_v40  ;;  %v472_v39 = vrot.slane %v2933_v34, %v471_v35  ;;  %v468_v40 = vrot.slane %v2933_v34, %v467_v36 }
  0xc0   : > { %980 = vmatprep.subr.bf16.mxu0 %v2086_v41  ;;  %1021 = vmatprep.subr.bf16.mxu1 %v2088_v42  ;;  %v476_v41 = vrot.slane %v2933_v34, %v475_v37 }
  0xc1   : > { %1010 = vmatprep.mubr.bf16.mxu0 %v2596_v0  ;;  %1051 = vmatprep.mubr.bf16.mxu1 %v2596_v0  ;;  %v2112_v0 = vcombine.high %v430_v61, %v434_v62 }
  0xc3   : > { %981 = vmatpush1.bf16.msra.mxu0 %v2085_v47  ;;  %1022 = vmatpush1.bf16.msra.mxu1 %v2087_v48 }
  0xc4   : > { %982 = vmatprep.subr.bf16.mxu0 %v2094_v49  ;;  %1023 = vmatprep.subr.bf16.mxu1 %v2096_v50 }
  0xc7   : > { %983 = vmatpush1.bf16.msra.mxu0 %v2093_v55  ;;  %1024 = vmatpush1.bf16.msra.mxu1 %v2095_v56 }
  0xc8   : > { %984 = vmatprep.subr.bf16.mxu0 %v2102_v57  ;;  %1025 = vmatprep.subr.bf16.mxu1 %v2104_v58 }
  0xcb   : > { %985 = vmatpush1.bf16.msra.mxu0 %v2101_v63  ;;  %1026 = vmatpush1.bf16.msra.mxu1 %v2103_v1 }
  0xcc   : > { %986 = vmatprep.subr.bf16.mxu0 %v2110_v2  ;;  %1027 = vmatprep.subr.bf16.mxu1 %v2112_v0 }
  0xcf   : > { %987 = vmatpush1.bf16.msra.mxu0 %v2109_v7  ;;  %1028 = vmatpush1.bf16.msra.mxu1 %v2111_v8 }
  0xd0   : > { %988 = vmatprep.subr.bf16.mxu0 %v2118_v9  ;;  %1029 = vmatprep.subr.bf16.mxu1 %v2120_v10 }
  0xd3   : > { %989 = vmatpush1.bf16.msra.mxu0 %v2117_v15  ;;  %1030 = vmatpush1.bf16.msra.mxu1 %v2119_v16  ;;  %v487_v15 = vsub.s32 6, %v2899_v23  ;;  %v483_v16 = vsub.s32 5, %v2899_v23 }
  0xd4   : > { %990 = vmatprep.subr.bf16.mxu0 %v2126_v17  ;;  %1031 = vmatprep.subr.bf16.mxu1 %v2128_v18  ;;  %v491_v17 = vsub.s32 7, %v2899_v23  ;;  %v480_v18 = vrot.slane %v2933_v34, %v479_v14 }
  0xd5   : > { %v488_v19 = vrot.slane %v2933_v34, %v487_v15  ;;  %v484_v20 = vrot.slane %v2933_v34, %v483_v16 }
  0xd6   : > { %v492_v21 = vrot.slane %v2933_v34, %v491_v17 }
  0xd7   : > { %991 = vmatpush1.bf16.msra.mxu0 %v2125_v24  ;;  %1032 = vmatpush1.bf16.msra.mxu1 %v2127_v25 }
  0xd8   : > { %992 = vmatprep.subr.bf16.mxu0 %v2134_v26  ;;  %1033 = vmatprep.subr.bf16.mxu1 %v2136_v27 }
  0xdb   : > { %993 = vmatpush1.bf16.msra.mxu0 %v2133_v28  ;;  %1034 = vmatpush1.bf16.msra.mxu1 %v2135_v29 }
  0xdc   : > { %2210 = vmatprep.subr.bf16.mxu1 %v2598_v31  ;;  %2234 = vmatprep.subr.bf16.mxu0 %v2598_v31 }
  0xde   : > { %1011 = vmatmul.mubr.bf16.vlgmr.msra.gmra.mrb[4].mxu0 %v2913_v38  ;;  %1052 = vmatmul.mubr.bf16.vlgmr.msra.gmra.mrb[4].mxu1 %v2913_v38  ;;  %v464_v38 = vrot.slane %v2933_v34, %v463_v32 }
  0xdf   : > { %2212 = vmatprep.mubr.msk.bf16.mxu1 %vm2599_vm3, %v2598_v31  ;;  %2236 = vmatprep.mubr.msk.bf16.mxu0 %vm2599_vm3, %v2598_v31 }
  0xe4   : > { %2211 = vmatpush3.bf16.xpose.msra.mxu1 %v2360_v30 }
  0xe5   : > { %2216 = vmatprep.subr.bf16.mxu1 %v2598_v31 }
 0x191   : > { %v930_v42 = vpop.f32.mrb[0].mxu0  ;;  %v971_v44 = vpop.f32.mrb[0].mxu1 }
 0x192   : > { %v931_v43 = vadd.f32 %v930_v42, %v464_v38  ;;  %v932_v45 = vpop.f32.mrb[1].mxu0  ;;  %v972_v46 = vadd.f32 %v971_v44, %v472_v39  ;;  %v973_v48 = vpop.f32.mrb[1].mxu1 }
 0x193   : > { %v933_v47 = vadd.f32 %v932_v45, %v468_v40  ;;  %v934_v49 = vpop.f32.mrb[2].mxu0  ;;  %v974_v51 = vadd.f32 %v973_v48, %v476_v41  ;;  %v975_v52 = vpop.f32.mrb[2].mxu1 }
 0x194   : > { %v1067_v50 = vrot.slane %v931_v43, %v2905_v33  ;;  %v935_v53 = vpop.f32.mrb[3].mxu0  ;;  %v1133_v54 = vrot.slane %v972_v46, %v2905_v33  ;;  %v976_v56 = vpop.f32.mrb[3].mxu1 }
 0x195   : > { %v1100_v55 = vrot.slane %v933_v47, %v2905_v33  ;;  %v1166_v59 = vrot.slane %v974_v51, %v2905_v33 }
 0x196   : > { %v1068_v57 = vcombine.high %v1067_v50, %v1067_v50  ;;  %v1075_v58 = vrot.slane %v1067_v50, %v2905_v33  ;;  %2137 = vst.sshfl [vmem:[#allocation2] sm:$0x1 pattern:$0x73625140] %v1067_v50  ;;  %v1134_v60 = vcombine.high %v1133_v54, %v1133_v54  ;;  %v1141_v61 = vrot.slane %v1133_v54, %v2905_v33 }
 0x197   : > { %2141 = vst.sshfl [vmem:[#allocation2 + $0x2] sm:$0x1 pattern:$0x73625140] %v1133_v54  ;;  %v1101_v62 = vcombine.high %v1100_v55, %v1100_v55  ;;  %v1108_v63 = vrot.slane %v1100_v55, %v2905_v33  ;;  %v1167_v0 = vcombine.high %v1166_v59, %v1166_v59  ;;  %v1174_v3 = vrot.slane %v1166_v59, %v2905_v33 }
 0x198   : > { %2139 = vst.sshfl [vmem:[#allocation2 + $0x1] sm:$0x1 pattern:$0x73625140] %v1100_v55  ;;  %v1082_v1 = vrot.slane %v1068_v57, %v2905_v33  ;;  %v1083_v2 = vcombine.high %v1075_v58, %v1075_v58  ;;  %v1148_v4 = vrot.slane %v1134_v60, %v2905_v33  ;;  %v1149_v5 = vcombine.high %v1141_v61, %v1141_v61  ;;  %v2361_v61 = vld [vmem:[%s2868_s18 + $0x8] sm:$0xff]  }
 0x199   : > { %2138 = vst.sshfl [vmem:[#allocation2 + $0x8] sm:$0x1 pattern:$0x73625140] %v1068_v57  ;;  %v1115_v6 = vrot.slane %v1101_v62, %v2905_v33  ;;  %v1116_v7 = vcombine.high %v1108_v63, %v1108_v63  ;;  %v1181_v9 = vrot.slane %v1167_v0, %v2905_v33  ;;  %v1182_v10 = vcombine.high %v1174_v3, %v1174_v3  ;;  %v2362_v63 = vld [vmem:[%s2868_s18 + $0x10] sm:$0xff]  }
 0x19a   : > { %2143 = vst.sshfl [vmem:[#allocation2 + $0x3] sm:$0x1 pattern:$0x73625140] %v1166_v59  ;;  %v1084_v8 = vcombine.high %v1082_v1, %v1082_v1  ;;  %1091 = vst [vmem:[#allocation2 + $0x10] sm:$0x1] %v1083_v2  ;;  %v1150_v11 = vcombine.high %v1148_v4, %v1148_v4 }
 0x19b   : > { %2142 = vst.sshfl [vmem:[#allocation2 + $0xa] sm:$0x1 pattern:$0x73625140] %v1134_v60  ;;  %1157 = vst [vmem:[#allocation2 + $0x12] sm:$0x1] %v1149_v5  ;;  %v1117_v12 = vcombine.high %v1115_v6, %v1115_v6  ;;  %v1183_v13 = vcombine.high %v1181_v9, %v1181_v9 }
 0x19c   : > { %2140 = vst.sshfl [vmem:[#allocation2 + $0x9] sm:$0x1 pattern:$0x73625140] %v1101_v62  ;;  %1124 = vst [vmem:[#allocation2 + $0x11] sm:$0x1] %v1116_v7 }
 0x19d   : > { %2144 = vst.sshfl [vmem:[#allocation2 + $0xb] sm:$0x1 pattern:$0x73625140] %v1167_v0  ;;  %1092 = vst [vmem:[#allocation2 + $0x18] sm:$0x1] %v1084_v8 }
 0x19e   : > { %1190 = vst [vmem:[#allocation2 + $0x13] sm:$0x1] %v1182_v10  ;;  %1158 = vst [vmem:[#allocation2 + $0x1a] sm:$0x1] %v1150_v11  ;;  %v2363_v0 = vld [vmem:[%s2868_s18 + $0x18] sm:$0xff]  }
 0x19f   : > { %1125 = vst [vmem:[#allocation2 + $0x19] sm:$0x1] %v1117_v12  ;;  %1191 = vst [vmem:[#allocation2 + $0x1b] sm:$0x1] %v1183_v13 }
 0x1b1   : > { %v1012_v22 = vpop.f32.mrb[4].mxu0  ;;  %v1053_v25 = vpop.f32.mrb[4].mxu1 }
 0x1b2   : > { %v1013_v24 = vadd.f32 %v1012_v22, %v480_v18  ;;  %v1014_v26 = vpop.f32.mrb[5].mxu0  ;;  %v1054_v27 = vadd.f32 %v1053_v25, %v488_v19  ;;  %v1055_v29 = vpop.f32.mrb[5].mxu1 }
 0x1b3   : > { %v1015_v28 = vadd.f32 %v1014_v26, %v484_v20  ;;  %v1016_v30 = vpop.f32.mrb[6].mxu0  ;;  %v1056_v35 = vadd.f32 %v1055_v29, %v492_v21  ;;  %v1057_v23 = vpop.f32.mrb[6].mxu1 }
 0x1b4   : > { %v1199_v32 = vrot.slane %v1013_v24, %v2905_v33  ;;  %v1017_v36 = vpop.f32.mrb[7].mxu0  ;;  %v1265_v37 = vrot.slane %v1054_v27, %v2905_v33  ;;  %v1058_v39 = vpop.f32.mrb[7].mxu1 }
 0x1b5   : > { %v1232_v38 = vrot.slane %v1015_v28, %v2905_v33  ;;  %v1298_v41 = vrot.slane %v1056_v35, %v2905_v33 }
 0x1b6   : > { %v1200_v40 = vcombine.high %v1199_v32, %v1199_v32  ;;  %v1207_v34 = vrot.slane %v1199_v32, %v2905_v33  ;;  %2145 = vst.sshfl [vmem:[#allocation2 + $0x4] sm:$0x1 pattern:$0x73625140] %v1199_v32  ;;  %v1266_v42 = vcombine.high %v1265_v37, %v1265_v37  ;;  %v1273_v43 = vrot.slane %v1265_v37, %v2905_v33 }
 0x1b7   : > { %2149 = vst.sshfl [vmem:[#allocation2 + $0x6] sm:$0x1 pattern:$0x73625140] %v1265_v37  ;;  %v1233_v44 = vcombine.high %v1232_v38, %v1232_v38  ;;  %v1240_v45 = vrot.slane %v1232_v38, %v2905_v33  ;;  %v1299_v48 = vcombine.high %v1298_v41, %v1298_v41  ;;  %v1306_v49 = vrot.slane %v1298_v41, %v2905_v33 }
 0x1b8   : > { %2147 = vst.sshfl [vmem:[#allocation2 + $0x5] sm:$0x1 pattern:$0x73625140] %v1232_v38  ;;  %v1214_v46 = vrot.slane %v1200_v40, %v2905_v33  ;;  %v1215_v47 = vcombine.high %v1207_v34, %v1207_v34  ;;  %v1280_v50 = vrot.slane %v1266_v42, %v2905_v33  ;;  %v1281_v51 = vcombine.high %v1273_v43, %v1273_v43 }
 0x1b9   : > { %2146 = vst.sshfl [vmem:[#allocation2 + $0xc] sm:$0x1 pattern:$0x73625140] %v1200_v40  ;;  %v1247_v52 = vrot.slane %v1233_v44, %v2905_v33  ;;  %v1248_v53 = vcombine.high %v1240_v45, %v1240_v45  ;;  %v1313_v55 = vrot.slane %v1299_v48, %v2905_v33  ;;  %v1314_v56 = vcombine.high %v1306_v49, %v1306_v49 }
 0x1ba   : > { %2151 = vst.sshfl [vmem:[#allocation2 + $0x7] sm:$0x1 pattern:$0x73625140] %v1298_v41  ;;  %v1216_v54 = vcombine.high %v1214_v46, %v1214_v46  ;;  %1223 = vst [vmem:[#allocation2 + $0x14] sm:$0x1] %v1215_v47  ;;  %v1282_v57 = vcombine.high %v1280_v50, %v1280_v50 }
 0x1bb   : > { %2150 = vst.sshfl [vmem:[#allocation2 + $0xe] sm:$0x1 pattern:$0x73625140] %v1266_v42  ;;  %1289 = vst [vmem:[#allocation2 + $0x16] sm:$0x1] %v1281_v51  ;;  %v1249_v58 = vcombine.high %v1247_v52, %v1247_v52  ;;  %v1315_v59 = vcombine.high %v1313_v55, %v1313_v55 }
 0x1bc   : > { %2148 = vst.sshfl [vmem:[#allocation2 + $0xd] sm:$0x1 pattern:$0x73625140] %v1233_v44  ;;  %1256 = vst [vmem:[#allocation2 + $0x15] sm:$0x1] %v1248_v53 }
 0x1bd   : > { %2152 = vst.sshfl [vmem:[#allocation2 + $0xf] sm:$0x1 pattern:$0x73625140] %v1299_v48  ;;  %1224 = vst [vmem:[#allocation2 + $0x1c] sm:$0x1] %v1216_v54 }
 0x1be   : > { %1322 = vst [vmem:[#allocation2 + $0x17] sm:$0x1] %v1314_v56  ;;  %1290 = vst [vmem:[#allocation2 + $0x1e] sm:$0x1] %v1282_v57  ;;  %v2364_v52 = vld [vmem:[%s2876_s20] sm:$0xff]   ;;  %v2365_v53 = vld [vmem:[%s2876_s20 + $0x8] sm:$0xff]  }
 0x1bf   : > { %1257 = vst [vmem:[#allocation2 + $0x1d] sm:$0x1] %v1249_v58  ;;  %1323 = vst [vmem:[#allocation2 + $0x1f] sm:$0x1] %v1315_v59  ;;  %2235 = vmatpush3.bf16.msra.mxu0 %v2364_v52  ;;  %v2366_v58 = vld [vmem:[%s2876_s20 + $0x10] sm:$0xff]  }
 0x1c0   : > { %2246 = vmatprep.subr.bf16.mxu0 %v2598_v31 }
 0x1c1   : > { %v1324_v60 = vld [vmem:[#allocation2] sm:$0xff] }
 0x1c2   : > { %v1328_v62 = vpack.c.bf16 %v1324_v60, %v1324_v60  ;;  %v2368_v60 = vld [vmem:[#allocation9] sm:$0xff]  }
 0x1c4   : > { %2213 = vmatmul.mubr.bf16.vlgmr.msra.gmra.mrb[8].mxu1 %v1328_v62  ;;  %v1325_v33 = vld [vmem:[#allocation2 + $0x8] sm:$0xff] }
 0x1c5   : > { %2217 = vmatpush3.bf16.xpose.msra.mxu1 %v2361_v61  ;;  %2218 = vmatprep.mubr.msk.bf16.mxu1 %vm2599_vm3, %v2598_v31  ;;  %v1329_v1 = vpack.c.bf16 %v1325_v33, %v1325_v33  ;;  %v1326_v2 = vld [vmem:[#allocation2 + $0x10] sm:$0xff] }
 0x1c6   : > { %2222 = vmatprep.subr.bf16.mxu1 %v2598_v31  ;;  %v1330_v3 = vpack.c.bf16 %v1326_v2, %v1326_v2  ;;  %v1327_v4 = vld [vmem:[#allocation2 + $0x18] sm:$0xff] }
 0x1c7   : > { %v1331_v5 = vpack.c.bf16 %v1327_v4, %v1327_v4 }
 0x1cc   : > { %2219 = vmatmul.mubr.bf16.vlgmr.msra.gmra.mrb[12].mxu1 %v1329_v1 }
 0x1cd   : > { %2223 = vmatpush3.bf16.xpose.msra.mxu1 %v2362_v63  ;;  %2224 = vmatprep.mubr.msk.bf16.mxu1 %vm2599_vm3, %v2598_v31  ;;  %v2367_v63 = vld [vmem:[%s2876_s20 + $0x18] sm:$0xff]   ;;  %s2600_s20 = smov [#allocation11]  }
 0x1ce   : > { %2228 = vmatprep.subr.bf16.mxu1 %v2598_v31  ;;  %s2512_s30 = sshll.u32 %s2600_s20, 4  ;;  %s2513_s30 = int_to_ptr.vmem [resolvable:$false] %s2512_s30 }
 0x1cf   : > { %s2514_s21 = scalar_lea.vmem %s2513_s30, 1024  ;;  %p2515_p7 = scmp.lt.s32.totalorder %s3015_s1, %s2513_s30 }
 0x1d0   : > { %p2516_p3 = scmp.lt.s32.totalorder %s2514_s21, %s2508_s23 }
 0x1d2   : > { %p2517_p5 = por %p2516_p3, %p2515_p7 }
 0x1d4   : > { %2225 = vmatmul.mubr.bf16.vlgmr.msra.gmra.mrb[16].mxu1 %v1330_v3  ;;  %p2518_p9 = pnand %p2517_p5, %p2511_p4 }
 0x1d5   : > { %2229 = vmatpush3.bf16.xpose.msra.mxu1 %v2363_v0  ;;  %2230 = vmatprep.mubr.msk.bf16.mxu1 %vm2599_vm3, %v2598_v31 }
 0x1d6   : > { %2240 = vmatprep.subr.bf16.mxu1 %v2598_v31 }
 0x1dc   : > { %2231 = vmatmul.mubr.bf16.vlgmr.msra.gmra.mrb[20].mxu1 %v1331_v5  ;;  %v2369_v5 = vld [vmem:[#allocation9 + $0x8] sm:$0xff]  }
 0x1dd   : > { %2242 = vmatprep.mubr.msk.bf16.mxu1 %vm2599_vm3, %v2598_v31  ;;  %2241 = vmatpush3.bf16.msra.mxu1 %v2365_v53 }
 0x1de   : > { %2252 = vmatprep.subr.bf16.mxu1 %v2598_v31 }
 0x297   : > { %v1380_v6 = vpop.f32.mrb[8].mxu1 }
 0x298   : > { %v1524_v7 = vmul.f32 0.088388346, %v1380_v6  ;;  %v2214_v8 = vpop.f32.mrb[9].mxu1 }
 0x299   : > { %v1383_v9 = vpop.f32.mrb[10].mxu1 }
 0x29a   : > { %v2215_v10 = vpop.f32.mrb[11].mxu1  ;;  %v1529_v11 = vsel %vm1528_vm4, %v1524_v7, -inf  ;;  %v2370_v9 = vld [vmem:[#allocation9 + $0x10] sm:$0xff]  }
 0x29b   : > { %1530 = vmax.xlane.f32.xlu0 %v1529_v11  ;;  %v2371_v10 = vld [vmem:[#allocation9 + $0x18] sm:$0xff]   ;;  %v2373_v11 = vld [vmem:[#allocation9 + $0x28] sm:$0xff]  }
 0x29f   : > { %v1426_v12 = vpop.f32.mrb[12].mxu1 }
 0x2a0   : > { %v1525_v13 = vmul.f32 0.088388346, %v1426_v12  ;;  %v2220_v14 = vpop.f32.mrb[13].mxu1  ;;  %v2374_v12 = vld [vmem:[#allocation9 + $0x30] sm:$0xff]  }
 0x2a1   : > { %v1429_v15 = vpop.f32.mrb[14].mxu1 }
 0x2a2   : > { %v2221_v16 = vpop.f32.mrb[15].mxu1  ;;  %v1532_v17 = vsel %vm1528_vm4, %v1525_v13, -inf }
 0x2a3   : > { %1533 = vmax.xlane.f32.xlu0 %v1532_v17 }
 0x2a7   : > { %v1472_v18 = vpop.f32.mrb[16].mxu1 }
 0x2a8   : > { %v1526_v19 = vmul.f32 0.088388346, %v1472_v18  ;;  %v2226_v20 = vpop.f32.mrb[17].mxu1 }
 0x2a9   : > { %v1475_v21 = vpop.f32.mrb[18].mxu1 }
 0x2aa   : > { %v2227_v22 = vpop.f32.mrb[19].mxu1  ;;  %v1535_v24 = vsel %vm1528_vm4, %v1526_v19, -inf }
 0x2ab   : > { %1536 = vmax.xlane.f32.xlu1 %v1535_v24 }
 0x2af   : > { %v1518_v25 = vpop.f32.mrb[20].mxu1 }
 0x2b0   : > { %v1527_v26 = vmul.f32 0.088388346, %v1518_v25  ;;  %v2232_v27 = vpop.f32.mrb[21].mxu1 }
 0x2b1   : > { %v1521_v28 = vpop.f32.mrb[22].mxu1 }
 0x2b2   : > { %v2233_v29 = vpop.f32.mrb[23].mxu1  ;;  %v1538_v30 = vsel %vm1528_vm4, %v1527_v26, -inf }
 0x2b3   : > { %1539 = vmax.xlane.f32.xlu1 %v1538_v30 }
 0x328   : > { %v1531_v32 = vpop.xlane.xlu0 %1530 }
 0x329   : > { %v1541_v35 = vsub.f32 %v1524_v7, %v1531_v32 }
 0x32b   : > { %v1545_v23 = vmul.f32 1.442695, %v1541_v35 }
 0x32d   : > { %2376 = vpow2.f32 %v1545_v23  ;;  %v2173_v23 = vld [vmem:[%s3070_s6] ss:$0 sm:$0xff] }
 0x330   : > { %v1534_v36 = vpop.xlane.xlu0 %1533 }
 0x331   : > { %v1542_v37 = vsub.f32 %v1525_v13, %v1534_v36  ;;  %v2375_v13 = vld [vmem:[#allocation9 + $0x38] sm:$0xff]  }
 0x333   : > { %v1547_v38 = vmul.f32 1.442695, %v1542_v37 }
 0x335   : > { %2378 = vpow2.f32 %v1547_v38 }
 0x337   : > { %v2377_v39 = vpop.eup %2376 }
 0x338   : > { %v1537_v40 = vpop.xlane.xlu1 %1536  ;;  %v1553_v34 = vsel %vm1528_vm4, %v2377_v39, 0.0 }
 0x339   : > { %v1543_v41 = vsub.f32 %v1526_v19, %v1537_v40  ;;  %1554 = vadd.xlane.f32.xlu0 %v1553_v34 }
 0x33b   : > { %v1549_v42 = vmul.f32 1.442695, %v1543_v41 }
 0x33d   : > { %2380 = vpow2.f32 %v1549_v42 }
 0x33f   : > { %v2379_v43 = vpop.eup %2378 }
 0x340   : > { %v1540_v44 = vpop.xlane.xlu1 %1539  ;;  %v1556_v45 = vsel %vm1528_vm4, %v2379_v43, 0.0 }
 0x341   : > { %v1544_v46 = vsub.f32 %v1527_v26, %v1540_v44  ;;  %1557 = vadd.xlane.f32.xlu1 %v1556_v45 }
 0x343   : > { %v1551_v47 = vmul.f32 1.442695, %v1544_v46 }
 0x345   : > { %2382 = vpow2.f32 %v1551_v47 }
 0x347   : > { %v2381_v48 = vpop.eup %2380 }
 0x348   : > { %v1559_v49 = vsel %vm1528_vm4, %v2381_v48, 0.0 }
 0x349   : > { %1560 = vadd.xlane.f32.xlu0 %v1559_v49 }
 0x34f   : > { %v2383_v50 = vpop.eup %2382 }
 0x350   : > { %v1562_v51 = vsel %vm1528_vm4, %v2383_v50, 0.0 }
 0x351   : > { %1563 = vadd.xlane.f32.xlu1 %v1562_v51 }
 0x3c6   : > { %v1555_v54 = vpop.xlane.xlu0 %1554 }
 0x3c7   : > { %2384 = vrcp.f32 %v1555_v54 }
 0x3ce   : > { %v1558_v55 = vpop.xlane.xlu1 %1557 }
 0x3cf   : > { %2386 = vrcp.f32 %v1558_v55 }
 0x3d1   : > { %v2385_v56 = vpop.eup %2384 }
 0x3d2   : > { %v1569_v57 = vmul.f32 %v2385_v56, %v2377_v39 }
 0x3d4   : > { %v1573_v59 = vpack.c.bf16 %v1569_v57, %v1569_v57 }
 0x3d6   : > { %2237 = vmatmul.mubr.msk.bf16.vlgmr.msra.gmra.mrb[8].mxu0 %vm1528_vm4, %v1573_v59  ;;  %v1561_v61 = vpop.xlane.xlu0 %1560 }
 0x3d7   : > { %2388 = vrcp.f32 %v1561_v61  ;;  %2247 = vmatpush3.bf16.msra.mxu0 %v2366_v58  ;;  %2248 = vmatprep.mubr.msk.bf16.mxu0 %vm2599_vm3, %v2598_v31 }
 0x3d8   : > { %2258 = vmatprep.subr.bf16.mxu0 %v2368_v60 }
 0x3d9   : > { %v2387_v62 = vpop.eup %2386 }
 0x3da   : > { %v1570_v33 = vmul.f32 %v2387_v62, %v2379_v43 }
 0x3dc   : > { %v1574_v1 = vpack.c.bf16 %v1570_v33, %v1570_v33 }
 0x3de   : > { %2243 = vmatmul.mubr.msk.bf16.vlgmr.msra.gmra.mrb[24].mxu1 %vm1528_vm4, %v1574_v1  ;;  %v1564_v2 = vpop.xlane.xlu1 %1563 }
 0x3df   : > { %2390 = vrcp.f32 %v1564_v2  ;;  %2253 = vmatpush3.bf16.msra.mxu1 %v2367_v63  ;;  %2254 = vmatprep.mubr.msk.bf16.mxu1 %vm2599_vm3, %v2598_v31  ;;  %v2372_v31 = vld [vmem:[#allocation9 + $0x20] sm:$0xff]  }
 0x3e1   : > { %v2389_v0 = vpop.eup %2388 }
 0x3e2   : > { %v1571_v3 = vmul.f32 %v2389_v0, %v2381_v48 }
 0x3e4   : > { %v1575_v4 = vpack.c.bf16 %v1571_v3, %v1571_v3 }
 0x3e6   : > { %2249 = vmatmul.mubr.msk.bf16.vlgmr.msra.gmra.mrb[12].mxu0 %vm1528_vm4, %v1575_v4 }
 0x3e7   : > { %2259 = vmatpush3.bf16.msra.mxu0 %v2368_v60 }
 0x3e8   : > { %2260 = vmatprep.subr.bf16.mxu0 %v2369_v5 }
 0x3e9   : > { %v2391_v6 = vpop.eup %2390 }
 0x3ea   : > { %v1572_v7 = vmul.f32 %v2391_v6, %v2383_v50 }
 0x3eb   : > { %2261 = vmatpush3.bf16.msra.mxu0 %v2369_v5 }
 0x3ec   : > { %v1576_v8 = vpack.c.bf16 %v1572_v7, %v1572_v7  ;;  %2262 = vmatprep.subr.bf16.mxu0 %v2370_v9 }
 0x3ee   : > { %2255 = vmatmul.mubr.msk.bf16.vlgmr.msra.gmra.mrb[28].mxu1 %vm1528_vm4, %v1576_v8 }
 0x3ef   : > { %2263 = vmatpush3.bf16.msra.mxu0 %v2370_v9 }
 0x3f0   : > { %2264 = vmatprep.subr.bf16.mxu0 %v2371_v10 }
 0x3f3   : > { %2265 = vmatpush3.bf16.msra.mxu0 %v2371_v10 }
 0x3f4   : > { %2266 = vmatprep.subr.bf16.mxu0 %v2372_v31 }
 0x3f7   : > { %2267 = vmatpush3.bf16.msra.mxu0 %v2372_v31 }
 0x3f8   : > { %2268 = vmatprep.subr.bf16.mxu0 %v2373_v11 }
 0x3fb   : > { %2269 = vmatpush3.bf16.msra.mxu0 %v2373_v11 }
 0x3fc   : > { %2270 = vmatprep.subr.bf16.mxu0 %v2374_v12 }
 0x3ff   : > { %2271 = vmatpush3.bf16.msra.mxu0 %v2374_v12 }
 0x400   : > { %2272 = vmatprep.subr.bf16.mxu0 %v2375_v13 }
 0x403   : > { %2273 = vmatpush3.bf16.msra.mxu0 %v2375_v13 }
 0x4a9   : > { %v1628_v14 = vpop.f32.mrb[8].mxu0 }
 0x4aa   : > { %v2238_v15 = vpop.f32.mrb[9].mxu0 }
 0x4ab   : > { %v1631_v16 = vpop.f32.mrb[10].mxu0 }
 0x4ac   : > { %v2239_v17 = vpop.f32.mrb[11].mxu0 }
 0x4b1   : > { %v1677_v18 = vpop.f32.mrb[24].mxu1 }
 0x4b2   : > { %v1781_v19 = vpack.c.bf16 %v1677_v18, %v1628_v14  ;;  %v2244_v20 = vpop.f32.mrb[25].mxu1 }
 0x4b3   : > { %v1680_v21 = vpop.f32.mrb[26].mxu1 }
 0x4b4   : > { %v2245_v22 = vpop.f32.mrb[27].mxu1  ;;  %2274 = vmatprep.mubr.bf16.mxu0 %v1781_v19 }
 0x4b9   : > { %v1726_v24 = vpop.f32.mrb[12].mxu0 }
 0x4ba   : > { %v2250_v25 = vpop.f32.mrb[13].mxu0 }
 0x4bb   : > { %v1729_v26 = vpop.f32.mrb[14].mxu0 }
 0x4bc   : > { %v2251_v27 = vpop.f32.mrb[15].mxu0 }
 0x4c1   : > { %v1775_v28 = vpop.f32.mrb[28].mxu1 }
 0x4c2   : > { %v1782_v29 = vpack.c.bf16 %v1775_v28, %v1726_v24  ;;  %v2256_v30 = vpop.f32.mrb[29].mxu1 }
 0x4c3   : > { %v1778_v32 = vpop.f32.mrb[30].mxu1 }
 0x4c4   : > { %v2257_v35 = vpop.f32.mrb[31].mxu1  ;;  %2275 = vmatmul.mubr.bf16.vlgmr.msra.gmra.mrb[16].mxu0 %v1782_v29 }
 0x597   : > { %v2276_v36 = vpop.f32.mrb[16].mxu0 }
 0x598   : > { %v1905_v37 = vadd.f32 %v2276_v36, %v2173_v23  ;;  %v1881_v38 = vpop.f32.mrb[17].mxu0 }
 0x599   : > { %v1903_v39 = vadd.f32 %v2173_v23, %v1881_v38  ;;  %v2277_v40 = vpop.f32.mrb[18].mxu0 }
 0x59a   : > { %1909 = vst [vmem:[%s381_s10 + $0x10] sm:$0xff] %v1905_v37  ;;  %v1906_v34 = vadd.f32 %v2277_v40, %v2173_v23  ;;  %v1884_v41 = vpop.f32.mrb[19].mxu0 }
 0x59b   : > { %1907 = vst [vmem:[%s381_s10] sm:$0xff] %v1903_v39  ;;  %v1904_v42 = vadd.f32 %v2173_v23, %v1884_v41 }
 0x59c   : > { %1910 = vst [vmem:[%s381_s10 + $0x18] sm:$0xff] %v1906_v34 }
 0x59d   : > { %1908 = vst [vmem:[%s381_s10 + $0x8] sm:$0xff] %v1904_v42 }
 0x59e   : > { %2521 = shalt.err (!%p2518_p9)
}
 0x59f   : > { %s2522_s29 = scalar_lea.hbm %s3020_s14, 512  ;;  %s2526_s17 = scalar_lea.hbm %s3071_s7, 1024 }
 0x5a0   : > { %p2523_p0 = scmp.ne.s32.totalorder %s3020_s14, %s2522_s29  ;;  %p2527_p1 = scmp.lt.u32.totalorder %s3020_s14, %s3071_s7 }
 0x5a1   : > { %p2528_p12 = scmp.lt.u32.totalorder %s2526_s17, %s2522_s29  ;;  %p2530_p13 = scmp.lt.u32.totalorder %s2522_s29, %s3020_s14 }
 0x5a2   : > { %p2524_p8 = pnand %p2523_p0, %p3101_p6 }
 0x5a3   : > { %p2529_p2 = por %p2528_p12, %p2527_p1 }
 0x5a4   : > { %p2525_p11 = pneg %p2524_p8 }
 0x5a5   : > { %p2531_p10 = por %p2530_p13, %p2529_p2 }
 0x5a7   : > { %p2532_p4 = pnand %p2531_p10, %p2525_p11 }
 0x5a9   : > { %2535 = shalt.err (!%p2532_p4)
}
 0x5aa   : > { %s2601_s11 = smov 128   ;;  %s2602_s10 = smov 8  }
 0x5ab   : > { %2290 = dma.vmem_to_hbm [thread:$0]  (%p3101_p6), %s3015_s1, 512, %s3020_s14, %s1912_s28, %s2601_s11, %s2601_s11, %s2602_s10  }
 0x5ac PF: > { %s1940_s15 = sand.u32 1, %s2574_s24   ;;  %p3102_p7 = scmp.ne.s32.totalorder %s3083_s8, 0 }
 0x5ad   : > { %p3103_p3 = scmp.ge.s32.totalorder %s2586_s27, 2  ;;  %s1941_s18 = scalar_lea.sflag [#allocation5], %s1940_s15 }
 0x5af   : > { %p2307_p5 = pnand %p3103_p3, %p3102_p7 }
 0x5b1   : > { %2569 = dma.done.wait (!%p2307_p5), %s1941_s18, 512  }
 0x5b2   : > { %2571 = vsyncadd (!%p2307_p5), %s1941_s18, 4294966784  ;;  %s3104_s9 = sld [smem:[#allocation17_spill]]  ;;  %p24_p9 = scmp.ge.s32.totalorder %s2756_s13, 4  }
 0x5b3   : > { %s3105_s24 = smov %s2578_s25  ;;  %s3106_s25 = smov %s2582_s26 }
 0x5b4   : > { %s3108_s27 = smov %s2756_s13  ;;  %26 = sbr.rel (!%p24_p9) target bundleno = 12 (0xc), region = 117 }
 0x5b8   : > { %s3107_s26 = smov %s3104_s9 }
 0x5bb   :  { %1946 = vsyncpa [#allocation4], 1 }
 0x5bc   :  { %1948 = vsyncpa [#allocation4 + $0x1], 1 }
 0x5bd   :  { %1949 = vsyncpa [#allocation7], 1 }
 0x5be   :  { %1951 = vsyncpa [#allocation7 + $0x1], 1 }
 0x5bf   :  { %1952 = vsyncpa [#allocation10], 1 }
 0x5c0   :  { %1953 = vsyncpa [#allocation5], 1 }
 0x5c1   :  { %1955 = vsyncpa [#allocation5 + $0x1], 1 }

</bundles_post_ra>
